<compile_context>
chip_gen: v6e
topology: v6e:2x2x1
jax: 0.10.0
libtpu: 0.0.40
codegen_flags: <defaults>
</compile_context>

<pallas_src>
import functools
import math

import jax
import jax.numpy as jnp
from jax.experimental import pallas as pl
from jax.experimental.pallas import tpu as pltpu

BN_EPS = 1e-5
VMEM_LIMIT = 32 * 1024 * 1024  # safe on v5e(16 MiB default)/v6e/v7x(64 MiB phys)


def _cparams(grid_ndim, parallel=True):
    sem = ("parallel",) if parallel else ("arbitrary",)
    return pltpu.CompilerParams(
        dimension_semantics=sem * grid_ndim,
        vmem_limit_bytes=VMEM_LIMIT,
    )


def _parity_planes(xp):
    """Split a padded NHWC tensor (even H, W) into 4 row/col parity planes.

    (N, Hp, Wp, C) -> (N*4, Hp//2, Wp//2, C), plane order (ee, eo, oe, oo).
    Total bytes unchanged; lets stride-2 kernels read unit-stride taps.
    """
    n, hp, wp, c = xp.shape
    planes = jnp.stack(
        [xp[:, pi::2, pj::2, :] for pi in (0, 1) for pj in (0, 1)], axis=1)
    return planes.reshape(n * 4, hp // 2, wp // 2, c)


# ---------------------------------------------------------------------------
# Pallas kernels
# ---------------------------------------------------------------------------
def _conv3x3_s2_kernel(xp_ref, w_ref, s_ref, b_ref, o_ref):
    """3x3 stride-2 conv (+folded BN +ReLU) as 9 accumulated matmuls.

    xp_ref: (4, Hp/2, Wp/2, Cin) parity planes of the padded image (one batch
            element per grid step).  w_ref: (3, 3, Cin, Cout) bf16.
    """
    _, hp2, wp2, cin = xp_ref.shape
    _, ho, wo, cout = o_ref.shape
    xp = xp_ref[...]                       # (4, hp2, wp2, cin)
    w = w_ref[...]                         # (3, 3, cin, cout) bf16
    acc = jnp.zeros((ho * wo, cout), jnp.float32)
    for ki in range(3):
        for kj in range(3):
            pi, qi = ki % 2, ki // 2
            pj, qj = kj % 2, kj // 2
            tap = xp[pi * 2 + pj, qi:qi + ho, qj:qj + wo, :]      # (ho, wo, cin)
            tap2d = tap.reshape(ho * wo, cin).astype(jnp.bfloat16)
            acc = acc + jnp.dot(tap2d, w[ki, kj],
                                preferred_element_type=jnp.float32)
    y = jnp.maximum(acc * s_ref[...] + b_ref[...], 0.0)
    o_ref[...] = y.reshape(1, ho, wo, cout).astype(o_ref.dtype)


def _dwsep_s1_kernel(x_ref, dww_ref, dws_ref, dwb_ref,
                     pww_ref, pws_ref, pwb_ref, o_ref):
    """Fused stride-1 depthwise 3x3 + BN + ReLU + pointwise 1x1 + BN + ReLU."""
    _, hp, wp, c = x_ref.shape
    _, h, w, cout = o_ref.shape
    x = x_ref[...]                         # (1, hp, wp, c) bf16
    dww = dww_ref[...]                     # (3, 3, c) f32
    acc = jnp.zeros((1, h, w, c), jnp.float32)
    for ki in range(3):
        for kj in range(3):
            tap = x[:, ki:ki + h, kj:kj + w, :].astype(jnp.float32)
            acc = acc + tap * dww[ki, kj]
    y = jnp.maximum(acc * dws_ref[...] + dwb_ref[...], 0.0)       # (1, h, w, c)
    y2d = y.reshape(h * w, c).astype(jnp.bfloat16)
    z = jnp.dot(y2d, pww_ref[...], preferred_element_type=jnp.float32)
    z = jnp.maximum(z * pws_ref[...] + pwb_ref[...], 0.0)
    o_ref[...] = z.reshape(1, h, w, cout).astype(o_ref.dtype)


def _dwsep_s2_kernel(xp_ref, dww_ref, dws_ref, dwb_ref,
                     pww_ref, pws_ref, pwb_ref, o_ref):
    """Fused stride-2 depthwise 3x3 + BN + ReLU + pointwise 1x1 + BN + ReLU.

    Stride-2 taps are unit-stride reads from the 4 parity planes, so only the
    needed (Ho, Wo) outputs are ever computed.
    """
    _, hp2, wp2, c = xp_ref.shape
    _, ho, wo, cout = o_ref.shape
    xp = xp_ref[...]                       # (4, hp2, wp2, c) bf16
    dww = dww_ref[...]                     # (3, 3, c) f32
    acc = jnp.zeros((ho, wo, c), jnp.float32)
    for ki in range(3):
        for kj in range(3):
            pi, qi = ki % 2, ki // 2
            pj, qj = kj % 2, kj // 2
            tap = xp[pi * 2 + pj, qi:qi + ho, qj:qj + wo, :].astype(jnp.float32)
            acc = acc + tap * dww[ki, kj]
    y = jnp.maximum(acc * dws_ref[...] + dwb_ref[...], 0.0)       # (ho, wo, c)
    y2d = y.reshape(ho * wo, c).astype(jnp.bfloat16)
    z = jnp.dot(y2d, pww_ref[...], preferred_element_type=jnp.float32)
    z = jnp.maximum(z * pws_ref[...] + pwb_ref[...], 0.0)
    o_ref[...] = z.reshape(1, ho, wo, cout).astype(o_ref.dtype)


def _gap_fc_kernel(x_ref, w_ref, b_ref, o_ref):
    """Fused global-average-pool + Linear: logits = mean_HW(x) @ W + b."""
    pooled = jnp.mean(x_ref[...].astype(jnp.float32), axis=1)     # (n, c)
    y = jnp.dot(pooled.astype(jnp.bfloat16), w_ref[...],
                preferred_element_type=jnp.float32)
    o_ref[...] = y + b_ref[...]


# ---------------------------------------------------------------------------
# Layer wrappers (pallas_call plumbing)
# ---------------------------------------------------------------------------
def conv_bn_s2(x, w_kkio, scale, shift):
    n, h, w, cin = x.shape
    assert h % 2 == 0 and w % 2 == 0
    ho, wo = h // 2, w // 2
    cout = w_kkio.shape[-1]
    xp = jnp.pad(x, ((0, 0), (1, 1), (1, 1), (0, 0)))
    planes = _parity_planes(xp)                       # (N*4, hp2, wp2, cin)
    _, hp2, wp2, _ = planes.shape
    return pl.pallas_call(
        _conv3x3_s2_kernel,
        out_shape=jax.ShapeDtypeStruct((n, ho, wo, cout), jnp.bfloat16),
        grid=(n,),
        in_specs=[
            pl.BlockSpec((4, hp2, wp2, cin), lambda b: (b, 0, 0, 0)),
            pl.BlockSpec((3, 3, cin, cout), lambda b: (0, 0, 0, 0)),
            pl.BlockSpec((1, cout), lambda b: (0, 0)),
            pl.BlockSpec((1, cout), lambda b: (0, 0)),
        ],
        out_specs=pl.BlockSpec((1, ho, wo, cout), lambda b: (b, 0, 0, 0)),
        compiler_params=_cparams(1),
    )(planes, w_kkio, scale, shift)


def dwsep_block(x, dww, dws, dwb, pww, pws, pwb, stride):
    n, h, w, c = x.shape
    cout = pww.shape[-1]
    xp = jnp.pad(x, ((0, 0), (1, 1), (1, 1), (0, 0)))
    if stride == 1:
        hp, wp = h + 2, w + 2
        return pl.pallas_call(
            _dwsep_s1_kernel,
            out_shape=jax.ShapeDtypeStruct((n, h, w, cout), jnp.bfloat16),
            grid=(n,),
            in_specs=[
                pl.BlockSpec((1, hp, wp, c), lambda b: (b, 0, 0, 0)),
                pl.BlockSpec((3, 3, c), lambda b: (0, 0, 0)),
                pl.BlockSpec((1, c), lambda b: (0, 0)),
                pl.BlockSpec((1, c), lambda b: (0, 0)),
                pl.BlockSpec((c, cout), lambda b: (0, 0)),
                pl.BlockSpec((1, cout), lambda b: (0, 0)),
                pl.BlockSpec((1, cout), lambda b: (0, 0)),
            ],
            out_specs=pl.BlockSpec((1, h, w, cout), lambda b: (b, 0, 0, 0)),
            compiler_params=_cparams(1),
        )(xp, dww, dws, dwb, pww, pws, pwb)
    else:
        assert stride == 2 and h % 2 == 0 and w % 2 == 0
        ho, wo = h // 2, w // 2
        planes = _parity_planes(xp)                    # (N*4, hp2, wp2, c)
        _, hp2, wp2, _ = planes.shape
        return pl.pallas_call(
            _dwsep_s2_kernel,
            out_shape=jax.ShapeDtypeStruct((n, ho, wo, cout), jnp.bfloat16),
            grid=(n,),
            in_specs=[
                pl.BlockSpec((4, hp2, wp2, c), lambda b: (b, 0, 0, 0)),
                pl.BlockSpec((3, 3, c), lambda b: (0, 0, 0)),
                pl.BlockSpec((1, c), lambda b: (0, 0)),
                pl.BlockSpec((1, c), lambda b: (0, 0)),
                pl.BlockSpec((c, cout), lambda b: (0, 0)),
                pl.BlockSpec((1, cout), lambda b: (0, 0)),
                pl.BlockSpec((1, cout), lambda b: (0, 0)),
            ],
            out_specs=pl.BlockSpec((1, ho, wo, cout), lambda b: (b, 0, 0, 0)),
            compiler_params=_cparams(1),
        )(planes, dww, dws, dwb, pww, pws, pwb)


def gap_fc(x, fcw, fcb):
    n, h, w, c = x.shape
    ncp = fcw.shape[-1]
    xf = x.reshape(n, h * w, c)
    return pl.pallas_call(
        _gap_fc_kernel,
        out_shape=jax.ShapeDtypeStruct((n, ncp), jnp.float32),
        grid=(1,),
        in_specs=[
            pl.BlockSpec((n, h * w, c), lambda i: (0, 0, 0)),
            pl.BlockSpec((c, ncp), lambda i: (0, 0)),
            pl.BlockSpec((1, ncp), lambda i: (0, 0)),
        ],
        out_specs=pl.BlockSpec((n, ncp), lambda i: (0, 0)),
        compiler_params=_cparams(1, parallel=False),
    )(xf, fcw, fcb)


# ---------------------------------------------------------------------------
# Parameter init (mirrors VGG._initialize_weights) and packing
# ---------------------------------------------------------------------------
def _kaiming_normal_fan_out(key, shape):
    fan_out = shape[0] * shape[2] * shape[3]
    std = math.sqrt(2.0 / fan_out)
    return jax.random.normal(key, shape, jnp.float32) * std


def _bn_folded(c):
    gamma = jnp.ones((c,), jnp.float32)
    beta = jnp.zeros((c,), jnp.float32)
    mean = jnp.zeros((c,), jnp.float32)
    var = jnp.ones((c,), jnp.float32)
    scale = gamma / jnp.sqrt(var + BN_EPS)
    shift = beta - mean * scale
    return scale, shift


def init_params(key, num_classes=10):
    ks = jax.random.split(key, 6)
    p = {}
    p["conv1_w"] = _kaiming_normal_fan_out(ks[0], (32, 3, 3, 3))   # conv_bn 3->32 s2
    p["bn1"] = _bn_folded(32)
    p["dw1_w"] = _kaiming_normal_fan_out(ks[1], (32, 1, 3, 3))     # dw 3x3 s1
    p["bn_dw1"] = _bn_folded(32)
    p["pw1_w"] = _kaiming_normal_fan_out(ks[2], (64, 32, 1, 1))    # pw 32->64
    p["bn_pw1"] = _bn_folded(64)
    p["dw2_w"] = _kaiming_normal_fan_out(ks[3], (64, 1, 3, 3))     # dw 3x3 s2
    p["bn_dw2"] = _bn_folded(64)
    p["pw2_w"] = _kaiming_normal_fan_out(ks[4], (1024, 64, 1, 1))  # pw 64->1024
    p["bn_pw2"] = _bn_folded(1024)
    # classifier: nn.Linear(1024, num_classes), normal(0, 0.01), zero bias
    p["fc_w"] = jax.random.normal(ks[5], (num_classes, 1024), jnp.float32) * 0.01
    p["fc_b"] = jnp.zeros((num_classes,), jnp.float32)
    return p


def prepare_params(p):
    """One-time packing: transpose / bf16-cast weights, pad classifier to 128 lanes."""
    def bn(sb):
        s, b = sb
        return (s.reshape(1, -1).astype(jnp.float32),
                b.reshape(1, -1).astype(jnp.float32))

    q = {}
    q["conv1_w"] = jnp.transpose(p["conv1_w"], (2, 3, 1, 0)).astype(jnp.bfloat16)
    q["bn1_s"], q["bn1_b"] = bn(p["bn1"])
    q["dw1_w"] = jnp.transpose(p["dw1_w"][:, 0], (1, 2, 0)).astype(jnp.float32)
    q["bn_dw1_s"], q["bn_dw1_b"] = bn(p["bn_dw1"])
    q["pw1_w"] = jnp.transpose(p["pw1_w"][:, :, 0, 0], (1, 0)).astype(jnp.bfloat16)
    q["bn_pw1_s"], q["bn_pw1_b"] = bn(p["bn_pw1"])
    q["dw2_w"] = jnp.transpose(p["dw2_w"][:, 0], (1, 2, 0)).astype(jnp.float32)
    q["bn_dw2_s"], q["bn_dw2_b"] = bn(p["bn_dw2"])
    q["pw2_w"] = jnp.transpose(p["pw2_w"][:, :, 0, 0], (1, 0)).astype(jnp.bfloat16)
    q["bn_pw2_s"], q["bn_pw2_b"] = bn(p["bn_pw2"])
    nc = p["fc_w"].shape[0]
    ncp = ((nc + 127) // 128) * 128
    fcw = jnp.zeros((p["fc_w"].shape[1], ncp), jnp.float32)
    fcw = fcw.at[:, :nc].set(jnp.transpose(p["fc_w"], (1, 0)))
    q["fc_w"] = fcw.astype(jnp.bfloat16)
    q["fc_b"] = jnp.zeros((1, ncp), jnp.float32).at[:, :nc].set(p["fc_b"].reshape(1, -1))
    return q


# ---------------------------------------------------------------------------
# Forward pass: x = features(x); x = classifier(x)
# ---------------------------------------------------------------------------
def vgg_forward(x_nchw, q, num_classes):
    x = jnp.transpose(x_nchw, (0, 2, 3, 1)).astype(jnp.float32)   # NCHW -> NHWC
    # features
    x = conv_bn_s2(x, q["conv1_w"], q["bn1_s"], q["bn1_b"])                       # (N, 8, 8, 32)
    x = dwsep_block(x, q["dw1_w"], q["bn_dw1_s"], q["bn_dw1_b"],
                    q["pw1_w"], q["bn_pw1_s"], q["bn_pw1_b"], stride=1)           # (N, 8, 8, 64)
    x = dwsep_block(x, q["dw2_w"], q["bn_dw2_s"], q["bn_dw2_b"],
                    q["pw2_w"], q["bn_pw2_s"], q["bn_pw2_b"], stride=2)           # (N, 4, 4, 1024)
    # classifier (fused with global average pool)
    logits = gap_fc(x, q["fc_w"], q["fc_b"])                                      # (N, 128)
    return logits[:, :num_classes]


if __name__ == "__main__":
    key = jax.random.PRNGKey(0)
    kx, kp = jax.random.split(key)
    x = jax.random.normal(kx, (2, 3, 16, 16), jnp.float32)   # NCHW input, like PyTorch
    params = init_params(kp, num_classes=10)
    packed = prepare_params(params)
    fwd = jax.jit(functools.partial(vgg_forward, num_classes=10))
    out = fwd(x, packed)
    out = jax.block_until_ready(out)
    assert out.shape == (2, 10) and out.dtype == jnp.float32
    print("KERNEL_OK")
</pallas_src>

<mosaic_0001>
module attributes {stable_mosaic.version = 11 : i64} {
  func.func @_conv3x3_s2_kernel(%arg0: i32, %arg1: memref<4x9x9x3xf32, #tpu.memory_space<vmem>>, %arg2: memref<3x3x3x32xbf16, #tpu.memory_space<vmem>>, %arg3: memref<1x32xf32, #tpu.memory_space<vmem>>, %arg4: memref<1x32xf32, #tpu.memory_space<vmem>>, %arg5: memref<1x8x8x32xbf16, #tpu.memory_space<vmem>>) attributes {dimension_semantics = [#tpu.dimension_semantics<parallel>], iteration_bounds = array<i64: 2>, scalar_prefetch = 0 : i64, scratch_operands = 0 : i64, tpu.core_type = #tpu.core_type<tc>, window_params = [{transform_indices = @transform_0, window_bounds = array<i64: 4, 9, 9, 3>}, {pipeline_mode = #tpu.pipeline_mode<synchronous>, transform_indices = @transform_1, window_bounds = array<i64: 3, 3, 3, 32>}, {pipeline_mode = #tpu.pipeline_mode<synchronous>, transform_indices = @transform_2, window_bounds = array<i64: 1, 32>}, {pipeline_mode = #tpu.pipeline_mode<synchronous>, transform_indices = @transform_3, window_bounds = array<i64: 1, 32>}, {transform_indices = @transform_4, window_bounds = array<i64: 1, 8, 8, 32>}]} {
    %c0 = arith.constant 0 : index
    %c0_0 = arith.constant 0 : index
    %c0_1 = arith.constant 0 : index
    %c0_2 = arith.constant 0 : index
    %0 = vector.load %arg1[%c0, %c0_0, %c0_1, %c0_2] : memref<4x9x9x3xf32, #tpu.memory_space<vmem>>, vector<4x9x9x3xf32>
    %c0_3 = arith.constant 0 : index
    %c0_4 = arith.constant 0 : index
    %c0_5 = arith.constant 0 : index
    %c0_6 = arith.constant 0 : index
    %1 = vector.load %arg2[%c0_3, %c0_4, %c0_5, %c0_6] : memref<3x3x3x32xbf16, #tpu.memory_space<vmem>>, vector<3x3x3x32xbf16>
    %cst = arith.constant 0.000000e+00 : f32
    %2 = vector.broadcast %cst : f32 to vector<64x32xf32>
    %3 = vector.extract_strided_slice %0 {offsets = [0, 0, 0, 0], sizes = [1, 8, 8, 3], strides = [1, 1, 1, 1]} : vector<4x9x9x3xf32> to vector<1x8x8x3xf32>
    %4 = vector.shape_cast %3 : vector<1x8x8x3xf32> to vector<8x8x3xf32>
    %5 = vector.shape_cast %4 : vector<8x8x3xf32> to vector<64x3xf32>
    %6 = arith.truncf %5 : vector<64x3xf32> to vector<64x3xbf16>
    %7 = vector.extract_strided_slice %1 {offsets = [0, 0, 0, 0], sizes = [1, 1, 3, 32], strides = [1, 1, 1, 1]} : vector<3x3x3x32xbf16> to vector<1x1x3x32xbf16>
    %8 = vector.shape_cast %7 : vector<1x1x3x32xbf16> to vector<3x32xbf16>
    %cst_7 = arith.constant dense<0.000000e+00> : vector<64x32xf32>
    %9 = tpu.matmul %6, %8, %cst_7 {dimension_numbers = #tpu.dot_dimension_numbers<[1], [0], [0], [1], [0, 0, 1, 1], [], []>} : vector<64x3xbf16>, vector<3x32xbf16>, vector<64x32xf32> -> vector<64x32xf32>
    %10 = arith.addf %2, %9 : vector<64x32xf32>
    %11 = vector.extract_strided_slice %0 {offsets = [1, 0, 0, 0], sizes = [1, 8, 8, 3], strides = [1, 1, 1, 1]} : vector<4x9x9x3xf32> to vector<1x8x8x3xf32>
    %12 = vector.shape_cast %11 : vector<1x8x8x3xf32> to vector<8x8x3xf32>
    %13 = vector.shape_cast %12 : vector<8x8x3xf32> to vector<64x3xf32>
    %14 = arith.truncf %13 : vector<64x3xf32> to vector<64x3xbf16>
    %15 = vector.extract_strided_slice %1 {offsets = [0, 1, 0, 0], sizes = [1, 1, 3, 32], strides = [1, 1, 1, 1]} : vector<3x3x3x32xbf16> to vector<1x1x3x32xbf16>
    %16 = vector.shape_cast %15 : vector<1x1x3x32xbf16> to vector<3x32xbf16>
    %cst_8 = arith.constant dense<0.000000e+00> : vector<64x32xf32>
    %17 = tpu.matmul %14, %16, %cst_8 {dimension_numbers = #tpu.dot_dimension_numbers<[1], [0], [0], [1], [0, 0, 1, 1], [], []>} : vector<64x3xbf16>, vector<3x32xbf16>, vector<64x32xf32> -> vector<64x32xf32>
    %18 = arith.addf %10, %17 : vector<64x32xf32>
    %19 = vector.extract_strided_slice %0 {offsets = [0, 0, 1, 0], sizes = [1, 8, 8, 3], strides = [1, 1, 1, 1]} : vector<4x9x9x3xf32> to vector<1x8x8x3xf32>
    %20 = vector.shape_cast %19 : vector<1x8x8x3xf32> to vector<8x8x3xf32>
    %21 = vector.shape_cast %20 : vector<8x8x3xf32> to vector<64x3xf32>
    %22 = arith.truncf %21 : vector<64x3xf32> to vector<64x3xbf16>
    %23 = vector.extract_strided_slice %1 {offsets = [0, 2, 0, 0], sizes = [1, 1, 3, 32], strides = [1, 1, 1, 1]} : vector<3x3x3x32xbf16> to vector<1x1x3x32xbf16>
    %24 = vector.shape_cast %23 : vector<1x1x3x32xbf16> to vector<3x32xbf16>
    %cst_9 = arith.constant dense<0.000000e+00> : vector<64x32xf32>
    %25 = tpu.matmul %22, %24, %cst_9 {dimension_numbers = #tpu.dot_dimension_numbers<[1], [0], [0], [1], [0, 0, 1, 1], [], []>} : vector<64x3xbf16>, vector<3x32xbf16>, vector<64x32xf32> -> vector<64x32xf32>
    %26 = arith.addf %18, %25 : vector<64x32xf32>
    %27 = vector.extract_strided_slice %0 {offsets = [2, 0, 0, 0], sizes = [1, 8, 8, 3], strides = [1, 1, 1, 1]} : vector<4x9x9x3xf32> to vector<1x8x8x3xf32>
    %28 = vector.shape_cast %27 : vector<1x8x8x3xf32> to vector<8x8x3xf32>
    %29 = vector.shape_cast %28 : vector<8x8x3xf32> to vector<64x3xf32>
    %30 = arith.truncf %29 : vector<64x3xf32> to vector<64x3xbf16>
    %31 = vector.extract_strided_slice %1 {offsets = [1, 0, 0, 0], sizes = [1, 1, 3, 32], strides = [1, 1, 1, 1]} : vector<3x3x3x32xbf16> to vector<1x1x3x32xbf16>
    %32 = vector.shape_cast %31 : vector<1x1x3x32xbf16> to vector<3x32xbf16>
    %cst_10 = arith.constant dense<0.000000e+00> : vector<64x32xf32>
    %33 = tpu.matmul %30, %32, %cst_10 {dimension_numbers = #tpu.dot_dimension_numbers<[1], [0], [0], [1], [0, 0, 1, 1], [], []>} : vector<64x3xbf16>, vector<3x32xbf16>, vector<64x32xf32> -> vector<64x32xf32>
    %34 = arith.addf %26, %33 : vector<64x32xf32>
    %35 = vector.extract_strided_slice %0 {offsets = [3, 0, 0, 0], sizes = [1, 8, 8, 3], strides = [1, 1, 1, 1]} : vector<4x9x9x3xf32> to vector<1x8x8x3xf32>
    %36 = vector.shape_cast %35 : vector<1x8x8x3xf32> to vector<8x8x3xf32>
    %37 = vector.shape_cast %36 : vector<8x8x3xf32> to vector<64x3xf32>
    %38 = arith.truncf %37 : vector<64x3xf32> to vector<64x3xbf16>
    %39 = vector.extract_strided_slice %1 {offsets = [1, 1, 0, 0], sizes = [1, 1, 3, 32], strides = [1, 1, 1, 1]} : vector<3x3x3x32xbf16> to vector<1x1x3x32xbf16>
    %40 = vector.shape_cast %39 : vector<1x1x3x32xbf16> to vector<3x32xbf16>
    %cst_11 = arith.constant dense<0.000000e+00> : vector<64x32xf32>
    %41 = tpu.matmul %38, %40, %cst_11 {dimension_numbers = #tpu.dot_dimension_numbers<[1], [0], [0], [1], [0, 0, 1, 1], [], []>} : vector<64x3xbf16>, vector<3x32xbf16>, vector<64x32xf32> -> vector<64x32xf32>
    %42 = arith.addf %34, %41 : vector<64x32xf32>
    %43 = vector.extract_strided_slice %0 {offsets = [2, 0, 1, 0], sizes = [1, 8, 8, 3], strides = [1, 1, 1, 1]} : vector<4x9x9x3xf32> to vector<1x8x8x3xf32>
    %44 = vector.shape_cast %43 : vector<1x8x8x3xf32> to vector<8x8x3xf32>
    %45 = vector.shape_cast %44 : vector<8x8x3xf32> to vector<64x3xf32>
    %46 = arith.truncf %45 : vector<64x3xf32> to vector<64x3xbf16>
    %47 = vector.extract_strided_slice %1 {offsets = [1, 2, 0, 0], sizes = [1, 1, 3, 32], strides = [1, 1, 1, 1]} : vector<3x3x3x32xbf16> to vector<1x1x3x32xbf16>
    %48 = vector.shape_cast %47 : vector<1x1x3x32xbf16> to vector<3x32xbf16>
    %cst_12 = arith.constant dense<0.000000e+00> : vector<64x32xf32>
    %49 = tpu.matmul %46, %48, %cst_12 {dimension_numbers = #tpu.dot_dimension_numbers<[1], [0], [0], [1], [0, 0, 1, 1], [], []>} : vector<64x3xbf16>, vector<3x32xbf16>, vector<64x32xf32> -> vector<64x32xf32>
    %50 = arith.addf %42, %49 : vector<64x32xf32>
    %51 = vector.extract_strided_slice %0 {offsets = [0, 1, 0, 0], sizes = [1, 8, 8, 3], strides = [1, 1, 1, 1]} : vector<4x9x9x3xf32> to vector<1x8x8x3xf32>
    %52 = vector.shape_cast %51 : vector<1x8x8x3xf32> to vector<8x8x3xf32>
    %53 = vector.shape_cast %52 : vector<8x8x3xf32> to vector<64x3xf32>
    %54 = arith.truncf %53 : vector<64x3xf32> to vector<64x3xbf16>
    %55 = vector.extract_strided_slice %1 {offsets = [2, 0, 0, 0], sizes = [1, 1, 3, 32], strides = [1, 1, 1, 1]} : vector<3x3x3x32xbf16> to vector<1x1x3x32xbf16>
    %56 = vector.shape_cast %55 : vector<1x1x3x32xbf16> to vector<3x32xbf16>
    %cst_13 = arith.constant dense<0.000000e+00> : vector<64x32xf32>
    %57 = tpu.matmul %54, %56, %cst_13 {dimension_numbers = #tpu.dot_dimension_numbers<[1], [0], [0], [1], [0, 0, 1, 1], [], []>} : vector<64x3xbf16>, vector<3x32xbf16>, vector<64x32xf32> -> vector<64x32xf32>
    %58 = arith.addf %50, %57 : vector<64x32xf32>
    %59 = vector.extract_strided_slice %0 {offsets = [1, 1, 0, 0], sizes = [1, 8, 8, 3], strides = [1, 1, 1, 1]} : vector<4x9x9x3xf32> to vector<1x8x8x3xf32>
    %60 = vector.shape_cast %59 : vector<1x8x8x3xf32> to vector<8x8x3xf32>
    %61 = vector.shape_cast %60 : vector<8x8x3xf32> to vector<64x3xf32>
    %62 = arith.truncf %61 : vector<64x3xf32> to vector<64x3xbf16>
    %63 = vector.extract_strided_slice %1 {offsets = [2, 1, 0, 0], sizes = [1, 1, 3, 32], strides = [1, 1, 1, 1]} : vector<3x3x3x32xbf16> to vector<1x1x3x32xbf16>
    %64 = vector.shape_cast %63 : vector<1x1x3x32xbf16> to vector<3x32xbf16>
    %cst_14 = arith.constant dense<0.000000e+00> : vector<64x32xf32>
    %65 = tpu.matmul %62, %64, %cst_14 {dimension_numbers = #tpu.dot_dimension_numbers<[1], [0], [0], [1], [0, 0, 1, 1], [], []>} : vector<64x3xbf16>, vector<3x32xbf16>, vector<64x32xf32> -> vector<64x32xf32>
    %66 = arith.addf %58, %65 : vector<64x32xf32>
    %67 = vector.extract_strided_slice %0 {offsets = [0, 1, 1, 0], sizes = [1, 8, 8, 3], strides = [1, 1, 1, 1]} : vector<4x9x9x3xf32> to vector<1x8x8x3xf32>
    %68 = vector.shape_cast %67 : vector<1x8x8x3xf32> to vector<8x8x3xf32>
    %69 = vector.shape_cast %68 : vector<8x8x3xf32> to vector<64x3xf32>
    %70 = arith.truncf %69 : vector<64x3xf32> to vector<64x3xbf16>
    %71 = vector.extract_strided_slice %1 {offsets = [2, 2, 0, 0], sizes = [1, 1, 3, 32], strides = [1, 1, 1, 1]} : vector<3x3x3x32xbf16> to vector<1x1x3x32xbf16>
    %72 = vector.shape_cast %71 : vector<1x1x3x32xbf16> to vector<3x32xbf16>
    %cst_15 = arith.constant dense<0.000000e+00> : vector<64x32xf32>
    %73 = tpu.matmul %70, %72, %cst_15 {dimension_numbers = #tpu.dot_dimension_numbers<[1], [0], [0], [1], [0, 0, 1, 1], [], []>} : vector<64x3xbf16>, vector<3x32xbf16>, vector<64x32xf32> -> vector<64x32xf32>
    %74 = arith.addf %66, %73 : vector<64x32xf32>
    %c0_16 = arith.constant 0 : index
    %c0_17 = arith.constant 0 : index
    %75 = vector.load %arg3[%c0_16, %c0_17] : memref<1x32xf32, #tpu.memory_space<vmem>>, vector<1x32xf32>
    %76 = vector.broadcast %75 : vector<1x32xf32> to vector<64x32xf32>
    %77 = arith.mulf %74, %76 : vector<64x32xf32>
    %c0_18 = arith.constant 0 : index
    %c0_19 = arith.constant 0 : index
    %78 = vector.load %arg4[%c0_18, %c0_19] : memref<1x32xf32, #tpu.memory_space<vmem>>, vector<1x32xf32>
    %79 = vector.broadcast %78 : vector<1x32xf32> to vector<64x32xf32>
    %80 = arith.addf %77, %79 : vector<64x32xf32>
    %cst_20 = arith.constant 0.000000e+00 : f32
    %81 = vector.broadcast %cst_20 : f32 to vector<64x32xf32>
    %82 = arith.maximumf %80, %81 : vector<64x32xf32>
    %83 = vector.shape_cast %82 : vector<64x32xf32> to vector<1x8x8x32xf32>
    %84 = arith.truncf %83 : vector<1x8x8x32xf32> to vector<1x8x8x32xbf16>
    %c0_21 = arith.constant 0 : index
    %c0_22 = arith.constant 0 : index
    %c0_23 = arith.constant 0 : index
    %c0_24 = arith.constant 0 : index
    %85 = vector.load %arg5[%c0_21, %c0_22, %c0_23, %c0_24] : memref<1x8x8x32xbf16, #tpu.memory_space<vmem>>, vector<1x8x8x32xbf16>
    tpu.vector_store %arg5[%c0_21, %c0_22, %c0_23, %c0_24], %84 {strides = array<i32>} : memref<1x8x8x32xbf16, #tpu.memory_space<vmem>>, vector<1x8x8x32xbf16>,
    return
  }
  func.func @transform_0(%arg0: i32) -> (i32, i32, i32, i32) {
    %c0_i32 = arith.constant 0 : i32
    %c0_i32_0 = arith.constant 0 : i32
    %c0_i32_1 = arith.constant 0 : i32
    %c0_i32_2 = arith.constant 0 : i32
    return %arg0, %c0_i32, %c0_i32_0, %c0_i32_1 : i32, i32, i32, i32
  }
  func.func @transform_1(%arg0: i32) -> (i32, i32, i32, i32) {
    %c0_i32 = arith.constant 0 : i32
    %c0_i32_0 = arith.constant 0 : i32
    %c0_i32_1 = arith.constant 0 : i32
    %c0_i32_2 = arith.constant 0 : i32
    %c0_i32_3 = arith.constant 0 : i32
    return %c0_i32, %c0_i32_0, %c0_i32_1, %c0_i32_2 : i32, i32, i32, i32
  }
  func.func @transform_2(%arg0: i32) -> (i32, i32) {
    %c0_i32 = arith.constant 0 : i32
    %c0_i32_0 = arith.constant 0 : i32
    %c0_i32_1 = arith.constant 0 : i32
    return %c0_i32, %c0_i32_0 : i32, i32
  }
  func.func @transform_3(%arg0: i32) -> (i32, i32) {
    %c0_i32 = arith.constant 0 : i32
    %c0_i32_0 = arith.constant 0 : i32
    %c0_i32_1 = arith.constant 0 : i32
    return %c0_i32, %c0_i32_0 : i32, i32
  }
  func.func @transform_4(%arg0: i32) -> (i32, i32, i32, i32) {
    %c0_i32 = arith.constant 0 : i32
    %c0_i32_0 = arith.constant 0 : i32
    %c0_i32_1 = arith.constant 0 : i32
    %c0_i32_2 = arith.constant 0 : i32
    return %arg0, %c0_i32, %c0_i32_0, %c0_i32_1 : i32, i32, i32, i32
  }
}

module attributes {stable_mosaic.version = 11 : i64} {
  func.func @_dwsep_s1_kernel(%arg0: i32, %arg1: memref<1x10x10x32xbf16, #tpu.memory_space<vmem>>, %arg2: memref<3x3x32xf32, #tpu.memory_space<vmem>>, %arg3: memref<1x32xf32, #tpu.memory_space<vmem>>, %arg4: memref<1x32xf32, #tpu.memory_space<vmem>>, %arg5: memref<32x64xbf16, #tpu.memory_space<vmem>>, %arg6: memref<1x64xf32, #tpu.memory_space<vmem>>, %arg7: memref<1x64xf32, #tpu.memory_space<vmem>>, %arg8: memref<1x8x8x64xbf16, #tpu.memory_space<vmem>>) attributes {dimension_semantics = [#tpu.dimension_semantics<parallel>], iteration_bounds = array<i64: 2>, scalar_prefetch = 0 : i64, scratch_operands = 0 : i64, tpu.core_type = #tpu.core_type<tc>, window_params = [{transform_indices = @transform_0, window_bounds = array<i64: 1, 10, 10, 32>}, {pipeline_mode = #tpu.pipeline_mode<synchronous>, transform_indices = @transform_1, window_bounds = array<i64: 3, 3, 32>}, {pipeline_mode = #tpu.pipeline_mode<synchronous>, transform_indices = @transform_2, window_bounds = array<i64: 1, 32>}, {pipeline_mode = #tpu.pipeline_mode<synchronous>, transform_indices = @transform_3, window_bounds = array<i64: 1, 32>}, {pipeline_mode = #tpu.pipeline_mode<synchronous>, transform_indices = @transform_4, window_bounds = array<i64: 32, 64>}, {pipeline_mode = #tpu.pipeline_mode<synchronous>, transform_indices = @transform_5, window_bounds = array<i64: 1, 64>}, {pipeline_mode = #tpu.pipeline_mode<synchronous>, transform_indices = @transform_6, window_bounds = array<i64: 1, 64>}, {transform_indices = @transform_7, window_bounds = array<i64: 1, 8, 8, 64>}]} {
    %c0 = arith.constant 0 : index
    %c0_0 = arith.constant 0 : index
    %c0_1 = arith.constant 0 : index
    %c0_2 = arith.constant 0 : index
    %0 = vector.load %arg1[%c0, %c0_0, %c0_1, %c0_2] : memref<1x10x10x32xbf16, #tpu.memory_space<vmem>>, vector<1x10x10x32xbf16>
    %c0_3 = arith.constant 0 : index
    %c0_4 = arith.constant 0 : index
    %c0_5 = arith.constant 0 : index
    %1 = vector.load %arg2[%c0_3, %c0_4, %c0_5] : memref<3x3x32xf32, #tpu.memory_space<vmem>>, vector<3x3x32xf32>
    %cst = arith.constant 0.000000e+00 : f32
    %2 = vector.broadcast %cst : f32 to vector<1x8x8x32xf32>
    %3 = vector.extract_strided_slice %0 {offsets = [0, 0, 0, 0], sizes = [1, 8, 8, 32], strides = [1, 1, 1, 1]} : vector<1x10x10x32xbf16> to vector<1x8x8x32xbf16>
    %4 = arith.extf %3 : vector<1x8x8x32xbf16> to vector<1x8x8x32xf32>
    %5 = vector.extract_strided_slice %1 {offsets = [0, 0, 0], sizes = [1, 1, 32], strides = [1, 1, 1]} : vector<3x3x32xf32> to vector<1x1x32xf32>
    %6 = vector.shape_cast %5 : vector<1x1x32xf32> to vector<32xf32>
    %7 = vector.shape_cast %6 : vector<32xf32> to vector<1x1x1x32xf32>
    %8 = vector.broadcast %7 : vector<1x1x1x32xf32> to vector<1x8x8x32xf32>
    %9 = arith.mulf %4, %8 : vector<1x8x8x32xf32>
    %10 = arith.addf %2, %9 : vector<1x8x8x32xf32>
    %11 = vector.extract_strided_slice %0 {offsets = [0, 0, 1, 0], sizes = [1, 8, 8, 32], strides = [1, 1, 1, 1]} : vector<1x10x10x32xbf16> to vector<1x8x8x32xbf16>
    %12 = arith.extf %11 : vector<1x8x8x32xbf16> to vector<1x8x8x32xf32>
    %13 = vector.extract_strided_slice %1 {offsets = [0, 1, 0], sizes = [1, 1, 32], strides = [1, 1, 1]} : vector<3x3x32xf32> to vector<1x1x32xf32>
    %14 = vector.shape_cast %13 : vector<1x1x32xf32> to vector<32xf32>
    %15 = vector.shape_cast %14 : vector<32xf32> to vector<1x1x1x32xf32>
    %16 = vector.broadcast %15 : vector<1x1x1x32xf32> to vector<1x8x8x32xf32>
    %17 = arith.mulf %12, %16 : vector<1x8x8x32xf32>
    %18 = arith.addf %10, %17 : vector<1x8x8x32xf32>
    %19 = vector.extract_strided_slice %0 {offsets = [0, 0, 2, 0], sizes = [1, 8, 8, 32], strides = [1, 1, 1, 1]} : vector<1x10x10x32xbf16> to vector<1x8x8x32xbf16>
    %20 = arith.extf %19 : vector<1x8x8x32xbf16> to vector<1x8x8x32xf32>
    %21 = vector.extract_strided_slice %1 {offsets = [0, 2, 0], sizes = [1, 1, 32], strides = [1, 1, 1]} : vector<3x3x32xf32> to vector<1x1x32xf32>
    %22 = vector.shape_cast %21 : vector<1x1x32xf32> to vector<32xf32>
    %23 = vector.shape_cast %22 : vector<32xf32> to vector<1x1x1x32xf32>
    %24 = vector.broadcast %23 : vector<1x1x1x32xf32> to vector<1x8x8x32xf32>
    %25 = arith.mulf %20, %24 : vector<1x8x8x32xf32>
    %26 = arith.addf %18, %25 : vector<1x8x8x32xf32>
    %27 = vector.extract_strided_slice %0 {offsets = [0, 1, 0, 0], sizes = [1, 8, 8, 32], strides = [1, 1, 1, 1]} : vector<1x10x10x32xbf16> to vector<1x8x8x32xbf16>
    %28 = arith.extf %27 : vector<1x8x8x32xbf16> to vector<1x8x8x32xf32>
    %29 = vector.extract_strided_slice %1 {offsets = [1, 0, 0], sizes = [1, 1, 32], strides = [1, 1, 1]} : vector<3x3x32xf32> to vector<1x1x32xf32>
    %30 = vector.shape_cast %29 : vector<1x1x32xf32> to vector<32xf32>
    %31 = vector.shape_cast %30 : vector<32xf32> to vector<1x1x1x32xf32>
    %32 = vector.broadcast %31 : vector<1x1x1x32xf32> to vector<1x8x8x32xf32>
    %33 = arith.mulf %28, %32 : vector<1x8x8x32xf32>
    %34 = arith.addf %26, %33 : vector<1x8x8x32xf32>
    %35 = vector.extract_strided_slice %0 {offsets = [0, 1, 1, 0], sizes = [1, 8, 8, 32], strides = [1, 1, 1, 1]} : vector<1x10x10x32xbf16> to vector<1x8x8x32xbf16>
    %36 = arith.extf %35 : vector<1x8x8x32xbf16> to vector<1x8x8x32xf32>
    %37 = vector.extract_strided_slice %1 {offsets = [1, 1, 0], sizes = [1, 1, 32], strides = [1, 1, 1]} : vector<3x3x32xf32> to vector<1x1x32xf32>
    %38 = vector.shape_cast %37 : vector<1x1x32xf32> to vector<32xf32>
    %39 = vector.shape_cast %38 : vector<32xf32> to vector<1x1x1x32xf32>
    %40 = vector.broadcast %39 : vector<1x1x1x32xf32> to vector<1x8x8x32xf32>
    %41 = arith.mulf %36, %40 : vector<1x8x8x32xf32>
    %42 = arith.addf %34, %41 : vector<1x8x8x32xf32>
    %43 = vector.extract_strided_slice %0 {offsets = [0, 1, 2, 0], sizes = [1, 8, 8, 32], strides = [1, 1, 1, 1]} : vector<1x10x10x32xbf16> to vector<1x8x8x32xbf16>
    %44 = arith.extf %43 : vector<1x8x8x32xbf16> to vector<1x8x8x32xf32>
    %45 = vector.extract_strided_slice %1 {offsets = [1, 2, 0], sizes = [1, 1, 32], strides = [1, 1, 1]} : vector<3x3x32xf32> to vector<1x1x32xf32>
    %46 = vector.shape_cast %45 : vector<1x1x32xf32> to vector<32xf32>
    %47 = vector.shape_cast %46 : vector<32xf32> to vector<1x1x1x32xf32>
    %48 = vector.broadcast %47 : vector<1x1x1x32xf32> to vector<1x8x8x32xf32>
    %49 = arith.mulf %44, %48 : vector<1x8x8x32xf32>
    %50 = arith.addf %42, %49 : vector<1x8x8x32xf32>
    %51 = vector.extract_strided_slice %0 {offsets = [0, 2, 0, 0], sizes = [1, 8, 8, 32], strides = [1, 1, 1, 1]} : vector<1x10x10x32xbf16> to vector<1x8x8x32xbf16>
    %52 = arith.extf %51 : vector<1x8x8x32xbf16> to vector<1x8x8x32xf32>
    %53 = vector.extract_strided_slice %1 {offsets = [2, 0, 0], sizes = [1, 1, 32], strides = [1, 1, 1]} : vector<3x3x32xf32> to vector<1x1x32xf32>
    %54 = vector.shape_cast %53 : vector<1x1x32xf32> to vector<32xf32>
    %55 = vector.shape_cast %54 : vector<32xf32> to vector<1x1x1x32xf32>
    %56 = vector.broadcast %55 : vector<1x1x1x32xf32> to vector<1x8x8x32xf32>
    %57 = arith.mulf %52, %56 : vector<1x8x8x32xf32>
    %58 = arith.addf %50, %57 : vector<1x8x8x32xf32>
    %59 = vector.extract_strided_slice %0 {offsets = [0, 2, 1, 0], sizes = [1, 8, 8, 32], strides = [1, 1, 1, 1]} : vector<1x10x10x32xbf16> to vector<1x8x8x32xbf16>
    %60 = arith.extf %59 : vector<1x8x8x32xbf16> to vector<1x8x8x32xf32>
    %61 = vector.extract_strided_slice %1 {offsets = [2, 1, 0], sizes = [1, 1, 32], strides = [1, 1, 1]} : vector<3x3x32xf32> to vector<1x1x32xf32>
    %62 = vector.shape_cast %61 : vector<1x1x32xf32> to vector<32xf32>
    %63 = vector.shape_cast %62 : vector<32xf32> to vector<1x1x1x32xf32>
    %64 = vector.broadcast %63 : vector<1x1x1x32xf32> to vector<1x8x8x32xf32>
    %65 = arith.mulf %60, %64 : vector<1x8x8x32xf32>
    %66 = arith.addf %58, %65 : vector<1x8x8x32xf32>
    %67 = vector.extract_strided_slice %0 {offsets = [0, 2, 2, 0], sizes = [1, 8, 8, 32], strides = [1, 1, 1, 1]} : vector<1x10x10x32xbf16> to vector<1x8x8x32xbf16>
    %68 = arith.extf %67 : vector<1x8x8x32xbf16> to vector<1x8x8x32xf32>
    %69 = vector.extract_strided_slice %1 {offsets = [2, 2, 0], sizes = [1, 1, 32], strides = [1, 1, 1]} : vector<3x3x32xf32> to vector<1x1x32xf32>
    %70 = vector.shape_cast %69 : vector<1x1x32xf32> to vector<32xf32>
    %71 = vector.shape_cast %70 : vector<32xf32> to vector<1x1x1x32xf32>
    %72 = vector.broadcast %71 : vector<1x1x1x32xf32> to vector<1x8x8x32xf32>
    %73 = arith.mulf %68, %72 : vector<1x8x8x32xf32>
    %74 = arith.addf %66, %73 : vector<1x8x8x32xf32>
    %c0_6 = arith.constant 0 : index
    %c0_7 = arith.constant 0 : index
    %75 = vector.load %arg3[%c0_6, %c0_7] : memref<1x32xf32, #tpu.memory_space<vmem>>, vector<1x32xf32>
    %76 = vector.shape_cast %75 : vector<1x32xf32> to vector<1x1x1x32xf32>
    %77 = vector.broadcast %76 : vector<1x1x1x32xf32> to vector<1x8x8x32xf32>
    %78 = arith.mulf %74, %77 : vector<1x8x8x32xf32>
    %c0_8 = arith.constant 0 : index
    %c0_9 = arith.constant 0 : index
    %79 = vector.load %arg4[%c0_8, %c0_9] : memref<1x32xf32, #tpu.memory_space<vmem>>, vector<1x32xf32>
    %80 = vector.shape_cast %79 : vector<1x32xf32> to vector<1x1x1x32xf32>
    %81 = vector.broadcast %80 : vector<1x1x1x32xf32> to vector<1x8x8x32xf32>
    %82 = arith.addf %78, %81 : vector<1x8x8x32xf32>
    %cst_10 = arith.constant 0.000000e+00 : f32
    %83 = vector.broadcast %cst_10 : f32 to vector<1x8x8x32xf32>
    %84 = arith.maximumf %82, %83 : vector<1x8x8x32xf32>
    %85 = vector.shape_cast %84 : vector<1x8x8x32xf32> to vector<64x32xf32>
    %86 = arith.truncf %85 : vector<64x32xf32> to vector<64x32xbf16>
    %c0_11 = arith.constant 0 : index
    %c0_12 = arith.constant 0 : index
    %87 = vector.load %arg5[%c0_11, %c0_12] : memref<32x64xbf16, #tpu.memory_space<vmem>>, vector<32x64xbf16>
    %cst_13 = arith.constant dense<0.000000e+00> : vector<64x64xf32>
    %88 = tpu.matmul %86, %87, %cst_13 {dimension_numbers = #tpu.dot_dimension_numbers<[1], [0], [0], [1], [0, 0, 1, 1], [], []>} : vector<64x32xbf16>, vector<32x64xbf16>, vector<64x64xf32> -> vector<64x64xf32>
    %c0_14 = arith.constant 0 : index
    %c0_15 = arith.constant 0 : index
    %89 = vector.load %arg6[%c0_14, %c0_15] : memref<1x64xf32, #tpu.memory_space<vmem>>, vector<1x64xf32>
    %90 = vector.broadcast %89 : vector<1x64xf32> to vector<64x64xf32>
    %91 = arith.mulf %88, %90 : vector<64x64xf32>
    %c0_16 = arith.constant 0 : index
    %c0_17 = arith.constant 0 : index
    %92 = vector.load %arg7[%c0_16, %c0_17] : memref<1x64xf32, #tpu.memory_space<vmem>>, vector<1x64xf32>
    %93 = vector.broadcast %92 : vector<1x64xf32> to vector<64x64xf32>
    %94 = arith.addf %91, %93 : vector<64x64xf32>
    %cst_18 = arith.constant 0.000000e+00 : f32
    %95 = vector.broadcast %cst_18 : f32 to vector<64x64xf32>
    %96 = arith.maximumf %94, %95 : vector<64x64xf32>
    %97 = vector.shape_cast %96 : vector<64x64xf32> to vector<1x8x8x64xf32>
    %98 = arith.truncf %97 : vector<1x8x8x64xf32> to vector<1x8x8x64xbf16>
    %c0_19 = arith.constant 0 : index
    %c0_20 = arith.constant 0 : index
    %c0_21 = arith.constant 0 : index
    %c0_22 = arith.constant 0 : index
    %99 = vector.load %arg8[%c0_19, %c0_20, %c0_21, %c0_22] : memref<1x8x8x64xbf16, #tpu.memory_space<vmem>>, vector<1x8x8x64xbf16>
    tpu.vector_store %arg8[%c0_19, %c0_20, %c0_21, %c0_22], %98 {strides = array<i32>} : memref<1x8x8x64xbf16, #tpu.memory_space<vmem>>, vector<1x8x8x64xbf16>,
    return
  }
  func.func @transform_0(%arg0: i32) -> (i32, i32, i32, i32) {
    %c0_i32 = arith.constant 0 : i32
    %c0_i32_0 = arith.constant 0 : i32
    %c0_i32_1 = arith.constant 0 : i32
    %c0_i32_2 = arith.constant 0 : i32
    return %arg0, %c0_i32, %c0_i32_0, %c0_i32_1 : i32, i32, i32, i32
  }
  func.func @transform_1(%arg0: i32) -> (i32, i32, i32) {
    %c0_i32 = arith.constant 0 : i32
    %c0_i32_0 = arith.constant 0 : i32
    %c0_i32_1 = arith.constant 0 : i32
    %c0_i32_2 = arith.constant 0 : i32
    return %c0_i32, %c0_i32_0, %c0_i32_1 : i32, i32, i32
  }
  func.func @transform_2(%arg0: i32) -> (i32, i32) {
    %c0_i32 = arith.constant 0 : i32
    %c0_i32_0 = arith.constant 0 : i32
    %c0_i32_1 = arith.constant 0 : i32
    return %c0_i32, %c0_i32_0 : i32, i32
  }
  func.func @transform_3(%arg0: i32) -> (i32, i32) {
    %c0_i32 = arith.constant 0 : i32
    %c0_i32_0 = arith.constant 0 : i32
    %c0_i32_1 = arith.constant 0 : i32
    return %c0_i32, %c0_i32_0 : i32, i32
  }
  func.func @transform_4(%arg0: i32) -> (i32, i32) {
    %c0_i32 = arith.constant 0 : i32
    %c0_i32_0 = arith.constant 0 : i32
    %c0_i32_1 = arith.constant 0 : i32
    return %c0_i32, %c0_i32_0 : i32, i32
  }
  func.func @transform_5(%arg0: i32) -> (i32, i32) {
    %c0_i32 = arith.constant 0 : i32
    %c0_i32_0 = arith.constant 0 : i32
    %c0_i32_1 = arith.constant 0 : i32
    return %c0_i32, %c0_i32_0 : i32, i32
  }
  func.func @transform_6(%arg0: i32) -> (i32, i32) {
    %c0_i32 = arith.constant 0 : i32
    %c0_i32_0 = arith.constant 0 : i32
    %c0_i32_1 = arith.constant 0 : i32
    return %c0_i32, %c0_i32_0 : i32, i32
  }
  func.func @transform_7(%arg0: i32) -> (i32, i32, i32, i32) {
    %c0_i32 = arith.constant 0 : i32
    %c0_i32_0 = arith.constant 0 : i32
    %c0_i32_1 = arith.constant 0 : i32
    %c0_i32_2 = arith.constant 0 : i32
    return %arg0, %c0_i32, %c0_i32_0, %c0_i32_1 : i32, i32, i32, i32
  }
}

module attributes {stable_mosaic.version = 11 : i64} {
  func.func @_dwsep_s2_kernel(%arg0: i32, %arg1: memref<4x5x5x64xbf16, #tpu.memory_space<vmem>>, %arg2: memref<3x3x64xf32, #tpu.memory_space<vmem>>, %arg3: memref<1x64xf32, #tpu.memory_space<vmem>>, %arg4: memref<1x64xf32, #tpu.memory_space<vmem>>, %arg5: memref<64x1024xbf16, #tpu.memory_space<vmem>>, %arg6: memref<1x1024xf32, #tpu.memory_space<vmem>>, %arg7: memref<1x1024xf32, #tpu.memory_space<vmem>>, %arg8: memref<1x4x4x1024xbf16, #tpu.memory_space<vmem>>) attributes {dimension_semantics = [#tpu.dimension_semantics<parallel>], iteration_bounds = array<i64: 2>, scalar_prefetch = 0 : i64, scratch_operands = 0 : i64, tpu.core_type = #tpu.core_type<tc>, window_params = [{transform_indices = @transform_0, window_bounds = array<i64: 4, 5, 5, 64>}, {pipeline_mode = #tpu.pipeline_mode<synchronous>, transform_indices = @transform_1, window_bounds = array<i64: 3, 3, 64>}, {pipeline_mode = #tpu.pipeline_mode<synchronous>, transform_indices = @transform_2, window_bounds = array<i64: 1, 64>}, {pipeline_mode = #tpu.pipeline_mode<synchronous>, transform_indices = @transform_3, window_bounds = array<i64: 1, 64>}, {pipeline_mode = #tpu.pipeline_mode<synchronous>, transform_indices = @transform_4, window_bounds = array<i64: 64, 1024>}, {pipeline_mode = #tpu.pipeline_mode<synchronous>, transform_indices = @transform_5, window_bounds = array<i64: 1, 1024>}, {pipeline_mode = #tpu.pipeline_mode<synchronous>, transform_indices = @transform_6, window_bounds = array<i64: 1, 1024>}, {transform_indices = @transform_7, window_bounds = array<i64: 1, 4, 4, 1024>}]} {
    %c0 = arith.constant 0 : index
    %c0_0 = arith.constant 0 : index
    %c0_1 = arith.constant 0 : index
    %c0_2 = arith.constant 0 : index
    %0 = vector.load %arg1[%c0, %c0_0, %c0_1, %c0_2] : memref<4x5x5x64xbf16, #tpu.memory_space<vmem>>, vector<4x5x5x64xbf16>
    %c0_3 = arith.constant 0 : index
    %c0_4 = arith.constant 0 : index
    %c0_5 = arith.constant 0 : index
    %1 = vector.load %arg2[%c0_3, %c0_4, %c0_5] : memref<3x3x64xf32, #tpu.memory_space<vmem>>, vector<3x3x64xf32>
    %cst = arith.constant 0.000000e+00 : f32
    %2 = vector.broadcast %cst : f32 to vector<4x4x64xf32>
    %3 = vector.extract_strided_slice %0 {offsets = [0, 0, 0, 0], sizes = [1, 4, 4, 64], strides = [1, 1, 1, 1]} : vector<4x5x5x64xbf16> to vector<1x4x4x64xbf16>
    %4 = vector.shape_cast %3 : vector<1x4x4x64xbf16> to vector<4x4x64xbf16>
    %5 = arith.extf %4 : vector<4x4x64xbf16> to vector<4x4x64xf32>
    %6 = vector.extract_strided_slice %1 {offsets = [0, 0, 0], sizes = [1, 1, 64], strides = [1, 1, 1]} : vector<3x3x64xf32> to vector<1x1x64xf32>
    %7 = vector.shape_cast %6 : vector<1x1x64xf32> to vector<64xf32>
    %8 = vector.shape_cast %7 : vector<64xf32> to vector<1x1x64xf32>
    %9 = vector.broadcast %8 : vector<1x1x64xf32> to vector<4x4x64xf32>
    %10 = arith.mulf %5, %9 : vector<4x4x64xf32>
    %11 = arith.addf %2, %10 : vector<4x4x64xf32>
    %12 = vector.extract_strided_slice %0 {offsets = [1, 0, 0, 0], sizes = [1, 4, 4, 64], strides = [1, 1, 1, 1]} : vector<4x5x5x64xbf16> to vector<1x4x4x64xbf16>
    %13 = vector.shape_cast %12 : vector<1x4x4x64xbf16> to vector<4x4x64xbf16>
    %14 = arith.extf %13 : vector<4x4x64xbf16> to vector<4x4x64xf32>
    %15 = vector.extract_strided_slice %1 {offsets = [0, 1, 0], sizes = [1, 1, 64], strides = [1, 1, 1]} : vector<3x3x64xf32> to vector<1x1x64xf32>
    %16 = vector.shape_cast %15 : vector<1x1x64xf32> to vector<64xf32>
    %17 = vector.shape_cast %16 : vector<64xf32> to vector<1x1x64xf32>
    %18 = vector.broadcast %17 : vector<1x1x64xf32> to vector<4x4x64xf32>
    %19 = arith.mulf %14, %18 : vector<4x4x64xf32>
    %20 = arith.addf %11, %19 : vector<4x4x64xf32>
    %21 = vector.extract_strided_slice %0 {offsets = [0, 0, 1, 0], sizes = [1, 4, 4, 64], strides = [1, 1, 1, 1]} : vector<4x5x5x64xbf16> to vector<1x4x4x64xbf16>
    %22 = vector.shape_cast %21 : vector<1x4x4x64xbf16> to vector<4x4x64xbf16>
    %23 = arith.extf %22 : vector<4x4x64xbf16> to vector<4x4x64xf32>
    %24 = vector.extract_strided_slice %1 {offsets = [0, 2, 0], sizes = [1, 1, 64], strides = [1, 1, 1]} : vector<3x3x64xf32> to vector<1x1x64xf32>
    %25 = vector.shape_cast %24 : vector<1x1x64xf32> to vector<64xf32>
    %26 = vector.shape_cast %25 : vector<64xf32> to vector<1x1x64xf32>
    %27 = vector.broadcast %26 : vector<1x1x64xf32> to vector<4x4x64xf32>
    %28 = arith.mulf %23, %27 : vector<4x4x64xf32>
    %29 = arith.addf %20, %28 : vector<4x4x64xf32>
    %30 = vector.extract_strided_slice %0 {offsets = [2, 0, 0, 0], sizes = [1, 4, 4, 64], strides = [1, 1, 1, 1]} : vector<4x5x5x64xbf16> to vector<1x4x4x64xbf16>
    %31 = vector.shape_cast %30 : vector<1x4x4x64xbf16> to vector<4x4x64xbf16>
    %32 = arith.extf %31 : vector<4x4x64xbf16> to vector<4x4x64xf32>
    %33 = vector.extract_strided_slice %1 {offsets = [1, 0, 0], sizes = [1, 1, 64], strides = [1, 1, 1]} : vector<3x3x64xf32> to vector<1x1x64xf32>
    %34 = vector.shape_cast %33 : vector<1x1x64xf32> to vector<64xf32>
    %35 = vector.shape_cast %34 : vector<64xf32> to vector<1x1x64xf32>
    %36 = vector.broadcast %35 : vector<1x1x64xf32> to vector<4x4x64xf32>
    %37 = arith.mulf %32, %36 : vector<4x4x64xf32>
    %38 = arith.addf %29, %37 : vector<4x4x64xf32>
    %39 = vector.extract_strided_slice %0 {offsets = [3, 0, 0, 0], sizes = [1, 4, 4, 64], strides = [1, 1, 1, 1]} : vector<4x5x5x64xbf16> to vector<1x4x4x64xbf16>
    %40 = vector.shape_cast %39 : vector<1x4x4x64xbf16> to vector<4x4x64xbf16>
    %41 = arith.extf %40 : vector<4x4x64xbf16> to vector<4x4x64xf32>
    %42 = vector.extract_strided_slice %1 {offsets = [1, 1, 0], sizes = [1, 1, 64], strides = [1, 1, 1]} : vector<3x3x64xf32> to vector<1x1x64xf32>
    %43 = vector.shape_cast %42 : vector<1x1x64xf32> to vector<64xf32>
    %44 = vector.shape_cast %43 : vector<64xf32> to vector<1x1x64xf32>
    %45 = vector.broadcast %44 : vector<1x1x64xf32> to vector<4x4x64xf32>
    %46 = arith.mulf %41, %45 : vector<4x4x64xf32>
    %47 = arith.addf %38, %46 : vector<4x4x64xf32>
    %48 = vector.extract_strided_slice %0 {offsets = [2, 0, 1, 0], sizes = [1, 4, 4, 64], strides = [1, 1, 1, 1]} : vector<4x5x5x64xbf16> to vector<1x4x4x64xbf16>
    %49 = vector.shape_cast %48 : vector<1x4x4x64xbf16> to vector<4x4x64xbf16>
    %50 = arith.extf %49 : vector<4x4x64xbf16> to vector<4x4x64xf32>
    %51 = vector.extract_strided_slice %1 {offsets = [1, 2, 0], sizes = [1, 1, 64], strides = [1, 1, 1]} : vector<3x3x64xf32> to vector<1x1x64xf32>
    %52 = vector.shape_cast %51 : vector<1x1x64xf32> to vector<64xf32>
    %53 = vector.shape_cast %52 : vector<64xf32> to vector<1x1x64xf32>
    %54 = vector.broadcast %53 : vector<1x1x64xf32> to vector<4x4x64xf32>
    %55 = arith.mulf %50, %54 : vector<4x4x64xf32>
    %56 = arith.addf %47, %55 : vector<4x4x64xf32>
    %57 = vector.extract_strided_slice %0 {offsets = [0, 1, 0, 0], sizes = [1, 4, 4, 64], strides = [1, 1, 1, 1]} : vector<4x5x5x64xbf16> to vector<1x4x4x64xbf16>
    %58 = vector.shape_cast %57 : vector<1x4x4x64xbf16> to vector<4x4x64xbf16>
    %59 = arith.extf %58 : vector<4x4x64xbf16> to vector<4x4x64xf32>
    %60 = vector.extract_strided_slice %1 {offsets = [2, 0, 0], sizes = [1, 1, 64], strides = [1, 1, 1]} : vector<3x3x64xf32> to vector<1x1x64xf32>
    %61 = vector.shape_cast %60 : vector<1x1x64xf32> to vector<64xf32>
    %62 = vector.shape_cast %61 : vector<64xf32> to vector<1x1x64xf32>
    %63 = vector.broadcast %62 : vector<1x1x64xf32> to vector<4x4x64xf32>
    %64 = arith.mulf %59, %63 : vector<4x4x64xf32>
    %65 = arith.addf %56, %64 : vector<4x4x64xf32>
    %66 = vector.extract_strided_slice %0 {offsets = [1, 1, 0, 0], sizes = [1, 4, 4, 64], strides = [1, 1, 1, 1]} : vector<4x5x5x64xbf16> to vector<1x4x4x64xbf16>
    %67 = vector.shape_cast %66 : vector<1x4x4x64xbf16> to vector<4x4x64xbf16>
    %68 = arith.extf %67 : vector<4x4x64xbf16> to vector<4x4x64xf32>
    %69 = vector.extract_strided_slice %1 {offsets = [2, 1, 0], sizes = [1, 1, 64], strides = [1, 1, 1]} : vector<3x3x64xf32> to vector<1x1x64xf32>
    %70 = vector.shape_cast %69 : vector<1x1x64xf32> to vector<64xf32>
    %71 = vector.shape_cast %70 : vector<64xf32> to vector<1x1x64xf32>
    %72 = vector.broadcast %71 : vector<1x1x64xf32> to vector<4x4x64xf32>
    %73 = arith.mulf %68, %72 : vector<4x4x64xf32>
    %74 = arith.addf %65, %73 : vector<4x4x64xf32>
    %75 = vector.extract_strided_slice %0 {offsets = [0, 1, 1, 0], sizes = [1, 4, 4, 64], strides = [1, 1, 1, 1]} : vector<4x5x5x64xbf16> to vector<1x4x4x64xbf16>
    %76 = vector.shape_cast %75 : vector<1x4x4x64xbf16> to vector<4x4x64xbf16>
    %77 = arith.extf %76 : vector<4x4x64xbf16> to vector<4x4x64xf32>
    %78 = vector.extract_strided_slice %1 {offsets = [2, 2, 0], sizes = [1, 1, 64], strides = [1, 1, 1]} : vector<3x3x64xf32> to vector<1x1x64xf32>
    %79 = vector.shape_cast %78 : vector<1x1x64xf32> to vector<64xf32>
    %80 = vector.shape_cast %79 : vector<64xf32> to vector<1x1x64xf32>
    %81 = vector.broadcast %80 : vector<1x1x64xf32> to vector<4x4x64xf32>
    %82 = arith.mulf %77, %81 : vector<4x4x64xf32>
    %83 = arith.addf %74, %82 : vector<4x4x64xf32>
    %c0_6 = arith.constant 0 : index
    %c0_7 = arith.constant 0 : index
    %84 = vector.load %arg3[%c0_6, %c0_7] : memref<1x64xf32, #tpu.memory_space<vmem>>, vector<1x64xf32>
    %85 = vector.shape_cast %84 : vector<1x64xf32> to vector<1x1x64xf32>
    %86 = vector.broadcast %85 : vector<1x1x64xf32> to vector<4x4x64xf32>
    %87 = arith.mulf %83, %86 : vector<4x4x64xf32>
    %c0_8 = arith.constant 0 : index
    %c0_9 = arith.constant 0 : index
    %88 = vector.load %arg4[%c0_8, %c0_9] : memref<1x64xf32, #tpu.memory_space<vmem>>, vector<1x64xf32>
    %89 = vector.shape_cast %88 : vector<1x64xf32> to vector<1x1x64xf32>
    %90 = vector.broadcast %89 : vector<1x1x64xf32> to vector<4x4x64xf32>
    %91 = arith.addf %87, %90 : vector<4x4x64xf32>
    %cst_10 = arith.constant 0.000000e+00 : f32
    %92 = vector.broadcast %cst_10 : f32 to vector<4x4x64xf32>
    %93 = arith.maximumf %91, %92 : vector<4x4x64xf32>
    %94 = vector.shape_cast %93 : vector<4x4x64xf32> to vector<16x64xf32>
    %95 = arith.truncf %94 : vector<16x64xf32> to vector<16x64xbf16>
    %c0_11 = arith.constant 0 : index
    %c0_12 = arith.constant 0 : index
    %96 = vector.load %arg5[%c0_11, %c0_12] : memref<64x1024xbf16, #tpu.memory_space<vmem>>, vector<64x1024xbf16>
    %cst_13 = arith.constant dense<0.000000e+00> : vector<16x1024xf32>
    %97 = tpu.matmul %95, %96, %cst_13 {dimension_numbers = #tpu.dot_dimension_numbers<[1], [0], [0], [1], [0, 0, 1, 1], [], []>} : vector<16x64xbf16>, vector<64x1024xbf16>, vector<16x1024xf32> -> vector<16x1024xf32>
    %c0_14 = arith.constant 0 : index
    %c0_15 = arith.constant 0 : index
    %98 = vector.load %arg6[%c0_14, %c0_15] : memref<1x1024xf32, #tpu.memory_space<vmem>>, vector<1x1024xf32>
    %99 = vector.broadcast %98 : vector<1x1024xf32> to vector<16x1024xf32>
    %100 = arith.mulf %97, %99 : vector<16x1024xf32>
    %c0_16 = arith.constant 0 : index
    %c0_17 = arith.constant 0 : index
    %101 = vector.load %arg7[%c0_16, %c0_17] : memref<1x1024xf32, #tpu.memory_space<vmem>>, vector<1x1024xf32>
    %102 = vector.broadcast %101 : vector<1x1024xf32> to vector<16x1024xf32>
    %103 = arith.addf %100, %102 : vector<16x1024xf32>
    %cst_18 = arith.constant 0.000000e+00 : f32
    %104 = vector.broadcast %cst_18 : f32 to vector<16x1024xf32>
    %105 = arith.maximumf %103, %104 : vector<16x1024xf32>
    %106 = vector.shape_cast %105 : vector<16x1024xf32> to vector<1x4x4x1024xf32>
    %107 = arith.truncf %106 : vector<1x4x4x1024xf32> to vector<1x4x4x1024xbf16>
    %c0_19 = arith.constant 0 : index
    %c0_20 = arith.constant 0 : index
    %c0_21 = arith.constant 0 : index
    %c0_22 = arith.constant 0 : index
    %108 = vector.load %arg8[%c0_19, %c0_20, %c0_21, %c0_22] : memref<1x4x4x1024xbf16, #tpu.memory_space<vmem>>, vector<1x4x4x1024xbf16>
    tpu.vector_store %arg8[%c0_19, %c0_20, %c0_21, %c0_22], %107 {strides = array<i32>} : memref<1x4x4x1024xbf16, #tpu.memory_space<vmem>>, vector<1x4x4x1024xbf16>,
    return
  }
  func.func @transform_0(%arg0: i32) -> (i32, i32, i32, i32) {
    %c0_i32 = arith.constant 0 : i32
    %c0_i32_0 = arith.constant 0 : i32
    %c0_i32_1 = arith.constant 0 : i32
    %c0_i32_2 = arith.constant 0 : i32
    return %arg0, %c0_i32, %c0_i32_0, %c0_i32_1 : i32, i32, i32, i32
  }
  func.func @transform_1(%arg0: i32) -> (i32, i32, i32) {
    %c0_i32 = arith.constant 0 : i32
    %c0_i32_0 = arith.constant 0 : i32
    %c0_i32_1 = arith.constant 0 : i32
    %c0_i32_2 = arith.constant 0 : i32
    return %c0_i32, %c0_i32_0, %c0_i32_1 : i32, i32, i32
  }
  func.func @transform_2(%arg0: i32) -> (i32, i32) {
    %c0_i32 = arith.constant 0 : i32
    %c0_i32_0 = arith.constant 0 : i32
    %c0_i32_1 = arith.constant 0 : i32
    return %c0_i32, %c0_i32_0 : i32, i32
  }
  func.func @transform_3(%arg0: i32) -> (i32, i32) {
    %c0_i32 = arith.constant 0 : i32
    %c0_i32_0 = arith.constant 0 : i32
    %c0_i32_1 = arith.constant 0 : i32
    return %c0_i32, %c0_i32_0 : i32, i32
  }
  func.func @transform_4(%arg0: i32) -> (i32, i32) {
    %c0_i32 = arith.constant 0 : i32
    %c0_i32_0 = arith.constant 0 : i32
    %c0_i32_1 = arith.constant 0 : i32
    return %c0_i32, %c0_i32_0 : i32, i32
  }
  func.func @transform_5(%arg0: i32) -> (i32, i32) {
    %c0_i32 = arith.constant 0 : i32
    %c0_i32_0 = arith.constant 0 : i32
    %c0_i32_1 = arith.constant 0 : i32
    return %c0_i32, %c0_i32_0 : i32, i32
  }
  func.func @transform_6(%arg0: i32) -> (i32, i32) {
    %c0_i32 = arith.constant 0 : i32
    %c0_i32_0 = arith.constant 0 : i32
    %c0_i32_1 = arith.constant 0 : i32
    return %c0_i32, %c0_i32_0 : i32, i32
  }
  func.func @transform_7(%arg0: i32) -> (i32, i32, i32, i32) {
    %c0_i32 = arith.constant 0 : i32
    %c0_i32_0 = arith.constant 0 : i32
    %c0_i32_1 = arith.constant 0 : i32
    %c0_i32_2 = arith.constant 0 : i32
    return %arg0, %c0_i32, %c0_i32_0, %c0_i32_1 : i32, i32, i32, i32
  }
}

module attributes {stable_mosaic.version = 11 : i64} {
  func.func @_gap_fc_kernel(%arg0: i32, %arg1: memref<2x16x1024xbf16, #tpu.memory_space<vmem>>, %arg2: memref<1024x128xbf16, #tpu.memory_space<vmem>>, %arg3: memref<1x128xf32, #tpu.memory_space<vmem>>, %arg4: memref<2x128xf32, #tpu.memory_space<vmem>>) attributes {dimension_semantics = [#tpu.dimension_semantics<arbitrary>], iteration_bounds = array<i64: 1>, scalar_prefetch = 0 : i64, scratch_operands = 0 : i64, tpu.core_type = #tpu.core_type<tc>, window_params = [{pipeline_mode = #tpu.pipeline_mode<synchronous>, transform_indices = @transform_0, window_bounds = array<i64: 2, 16, 1024>}, {pipeline_mode = #tpu.pipeline_mode<synchronous>, transform_indices = @transform_1, window_bounds = array<i64: 1024, 128>}, {pipeline_mode = #tpu.pipeline_mode<synchronous>, transform_indices = @transform_2, window_bounds = array<i64: 1, 128>}, {pipeline_mode = #tpu.pipeline_mode<synchronous>, transform_indices = @transform_3, window_bounds = array<i64: 2, 128>}]} {
    %c0 = arith.constant 0 : index
    %c0_0 = arith.constant 0 : index
    %c0_1 = arith.constant 0 : index
    %0 = vector.load %arg1[%c0, %c0_0, %c0_1] : memref<2x16x1024xbf16, #tpu.memory_space<vmem>>, vector<2x16x1024xbf16>
    %1 = arith.extf %0 : vector<2x16x1024xbf16> to vector<2x16x1024xf32>
    %cst = arith.constant dense<0.000000e+00> : vector<2x1024xf32>
    %2 = vector.multi_reduction <add>, %1, %cst [1] : vector<2x16x1024xf32> to vector<2x1024xf32>
    %cst_2 = arith.constant 1.600000e+01 : f32
    %3 = vector.broadcast %cst_2 : f32 to vector<2x1024xf32>
    %4 = arith.divf %2, %3 : vector<2x1024xf32>
    %5 = arith.truncf %4 : vector<2x1024xf32> to vector<2x1024xbf16>
    %c0_3 = arith.constant 0 : index
    %c0_4 = arith.constant 0 : index
    %6 = vector.load %arg2[%c0_3, %c0_4] : memref<1024x128xbf16, #tpu.memory_space<vmem>>, vector<1024x128xbf16>
    %cst_5 = arith.constant dense<0.000000e+00> : vector<2x128xf32>
    %7 = tpu.matmul %5, %6, %cst_5 {dimension_numbers = #tpu.dot_dimension_numbers<[1], [0], [0], [1], [0, 0, 1, 1], [], []>} : vector<2x1024xbf16>, vector<1024x128xbf16>, vector<2x128xf32> -> vector<2x128xf32>
    %c0_6 = arith.constant 0 : index
    %c0_7 = arith.constant 0 : index
    %8 = vector.load %arg3[%c0_6, %c0_7] : memref<1x128xf32, #tpu.memory_space<vmem>>, vector<1x128xf32>
    %9 = vector.broadcast %8 : vector<1x128xf32> to vector<2x128xf32>
    %10 = arith.addf %7, %9 : vector<2x128xf32>
    %c0_8 = arith.constant 0 : index
    %c0_9 = arith.constant 0 : index
    %11 = vector.load %arg4[%c0_8, %c0_9] : memref<2x128xf32, #tpu.memory_space<vmem>>, vector<2x128xf32>
    tpu.vector_store %arg4[%c0_8, %c0_9], %10 {strides = array<i32>} : memref<2x128xf32, #tpu.memory_space<vmem>>, vector<2x128xf32>,
    return
  }
  func.func @transform_0(%arg0: i32) -> (i32, i32, i32) {
    %c0_i32 = arith.constant 0 : i32
    %c0_i32_0 = arith.constant 0 : i32
    %c0_i32_1 = arith.constant 0 : i32
    %c0_i32_2 = arith.constant 0 : i32
    return %c0_i32, %c0_i32_0, %c0_i32_1 : i32, i32, i32
  }
  func.func @transform_1(%arg0: i32) -> (i32, i32) {
    %c0_i32 = arith.constant 0 : i32
    %c0_i32_0 = arith.constant 0 : i32
    %c0_i32_1 = arith.constant 0 : i32
    return %c0_i32, %c0_i32_0 : i32, i32
  }
  func.func @transform_2(%arg0: i32) -> (i32, i32) {
    %c0_i32 = arith.constant 0 : i32
    %c0_i32_0 = arith.constant 0 : i32
    %c0_i32_1 = arith.constant 0 : i32
    return %c0_i32, %c0_i32_0 : i32, i32
  }
  func.func @transform_3(%arg0: i32) -> (i32, i32) {
    %c0_i32 = arith.constant 0 : i32
    %c0_i32_0 = arith.constant 0 : i32
    %c0_i32_1 = arith.constant 0 : i32
    return %c0_i32, %c0_i32_0 : i32, i32
  }
}

</mosaic_0001>

<bundles_post_ra>
// kernel: vgg_forward.5
= control target key start
LH: loop header
LB: loop body
LE: loop exit
PB: predicated region body
PF: predicated region fallthrough
CT: control target
= control target key end

     0   :  { %s1189_s24 = smov 0   ;;  %s1611_s0 = inlined_call_operand.vmem [shape: bf16[2,10,10,32], index: 0, kind: input, shape index: {}]   ;;  %s1612_s1 = inlined_call_operand.vmem [shape: f32[3,3,32], index: 1, kind: input, shape index: {}]   ;;  %s1613_s2 = inlined_call_operand.vmem [shape: f32[1,32], index: 2, kind: input, shape index: {}]   ;;  %s1614_s3 = inlined_call_operand.vmem [shape: f32[1,32], index: 3, kind: input, shape index: {}]   ;;  %s1615_s4 = inlined_call_operand.vmem [shape: bf16[32,64], index: 4, kind: input, shape index: {}]   ;;  %s1616_s5 = inlined_call_operand.vmem [shape: f32[1,64], index: 5, kind: input, shape index: {}]   ;;  %s1617_s6 = inlined_call_operand.vmem [shape: f32[1,64], index: 6, kind: input, shape index: {}]   ;;  %s1618_s7 = inlined_call_operand.vmem [shape: bf16[2,8,8,64], index: 7, kind: output, shape index: {}]  }
   0x1 LB: > { %s1087_s25 = sadd.s32 4294967295, %s1147_s24   ;;  %p1091_p0 = scmp.ge.s32.totalorder %s1147_s24, 1  ;;  %s1147_s24 = sphi %s1189_s24, %s17_s24  }
   0x2   : > { %p237_p1 = scmp.lt.s32.totalorder %s1147_s24, 3 }
   0x4   : > { %p238_p2 = pnand %p1091_p0, %p237_p1 }
   0x5   : > { %p269_p3 = scmp.lt.s32.totalorder (!%p238_p2), %s1087_s25, 1 }
   0x6   : > { %241 = sbr.rel (%p238_p2) target bundleno = 330 (0x14a), region = 48 }
   0xb   : > { %v1139_v0 = vld [vmem:[%s1615_s4 + $0x8] sm:$0xff]   ;;  %v311_v1 = vlaneseq  ;;  %v1140_v2 = vld [vmem:[%s1615_s4] sm:$0xff]   ;;  %s1620_s25 = smov (!%p269_p3, %s1087_s25), 1  ;;  %vm375_vm0 = vcmask 1046528   ;;  %vm452_vm1 = vcmask 1045504   ;;  %vm899_vm2 = vcmask 261120  }
   0xc   : > { %1114 = vmatprep.subr.bf16.mxu0 %v1139_v0  ;;  %1126 = vmatprep.subr.bf16.mxu1 %v1139_v0  ;;  %v300_v4 = vld [vmem:[%s1612_s1] sm:$0x7]  ;;  %v301_v5 = vld [vmem:[%s1612_s1 + $0x4] sm:$0x7]  ;;  %s1130_s11 = smul.u32 80, %s1620_s25  ;;  %s1107_s27 = sshll.u32 %s1620_s25, 5 }
   0xd   : > { %v312_v3 = vshrl.u32 %v311_v1, 7  ;;  %1115 = vmatpush3.bf16.msra.mxu0 %v1139_v0  ;;  %1128 = vmatpush3.bf16.msra.mxu1 %v1139_v0  ;;  %v1215_v6 = vld [vmem:[%s1612_s1 + $0x8] sm:$0x7]  ;;  %s1590_s30 = scalar_lea.vmem %s1618_s7, %s1107_s27  ;;  %vm1023_vm3 = vcmask 519168  }
   0xe   : > { %1116 = vmatprep.subr.bf16.mxu0 %v1140_v2  ;;  %1127 = vmatprep.subr.bf16.mxu1 %v1140_v2  ;;  %s1224_s16 = scalar_lea.vmem %s1611_s0, %s1130_s11 }
   0xf   : > { %v313_v7 = vsub.s32 0, %v312_v3  ;;  %v1217_v8 = vsub.s32 1, %v312_v3  ;;  %v1219_v9 = vsub.s32 2, %v312_v3  ;;  %v280_v14 = vld [vmem:[%s1224_s16] ss:$8 sps:$4 sm:$0xff]  }
  0x10   : > { %v281_v15 = vld [vmem:[%s1224_s16 + $0x4] sm:$0x1]  ;;  %v283_v16 = vld [vmem:[%s1224_s16 + $0xc] sm:$0x1]  ;;  %v284_v20 = vld [vmem:[%s1224_s16 + $0x10] ss:$8 sps:$4 sm:$0xff]   ;;  %v303_v23 = vunpack.c.l.bf16 %v280_v14  ;;  %v304_v24 = vunpack.c.h.bf16 %v280_v14 }
  0x11   : > { %v1226_v10 = vrot.slane %v300_v4, %v313_v7  ;;  %v1229_v11 = vrot.slane %v300_v4, %v1217_v8  ;;  %v1232_v12 = vrot.slane %v300_v4, %v1219_v9  ;;  %v1234_v13 = vrot.slane %v301_v5, %v313_v7  ;;  %1117 = vmatpush3.bf16.msra.mxu0 %v1140_v2  ;;  %v285_v21 = vld [vmem:[%s1224_s16 + $0x14] sm:$0x1]  ;;  %v287_v22 = vld [vmem:[%s1224_s16 + $0x1c] sm:$0x1] }
  0x12   : > { %1129 = vmatpush3.bf16.msra.mxu1 %v1140_v2  ;;  %v1240_v17 = vrot.slane %v301_v5, %v1217_v8  ;;  %v1243_v18 = vrot.slane %v301_v5, %v1219_v9  ;;  %v1246_v19 = vrot.slane %v1215_v6, %v313_v7  ;;  %v331_v25 = vunpack.c.l.bf16 %v281_v15 }
  0x13   : > { %v332_v26 = vunpack.c.l.bf16 %v283_v16  ;;  %v1251_v27 = vunpack.c.l.bf16 %v284_v20  ;;  %v1253_v28 = vunpack.c.h.bf16 %v284_v20  ;;  %v1255_v29 = vunpack.c.l.bf16 %v285_v21  ;;  %v288_v21 = vld [vmem:[%s1224_s16 + $0x20] ss:$8 sps:$4 sm:$0xff]  }
  0x14   : > { %v1257_v30 = vunpack.c.l.bf16 %v287_v22  ;;  %v315_v31 = vmul.f32 %v1226_v10, %v303_v23  ;;  %v316_v32 = vmul.f32 %v1226_v10, %v304_v24  ;;  %v343_v33 = vmul.f32 %v1229_v11, %v303_v23 }
  0x15   : > { %v344_v34 = vmul.f32 %v1229_v11, %v331_v25  ;;  %v345_v35 = vmul.f32 %v1229_v11, %v304_v24  ;;  %v346_v36 = vmul.f32 %v1229_v11, %v332_v26  ;;  %v420_v37 = vmul.f32 %v1232_v12, %v303_v23 }
  0x16   : > { %v421_v38 = vmul.f32 %v1232_v12, %v331_v25  ;;  %v376_v39 = vrot.slane %v343_v33, 1  ;;  %v422_v41 = vmul.f32 %v1232_v12, %v304_v24  ;;  %v423_v42 = vmul.f32 %v1232_v12, %v332_v26 }
  0x17   : > { %v377_v40 = vrot.slane %v344_v34, 1  ;;  %v379_v43 = vrot.slane %v345_v35, 1  ;;  %v380_v44 = vrot.slane %v346_v36, 1  ;;  %v453_v45 = vrot.slane %v420_v37, 2 }
  0x18   : > { %v454_v46 = vrot.slane %v421_v38, 2  ;;  %v456_v48 = vrot.slane %v422_v41, 2  ;;  %v457_v49 = vrot.slane %v423_v42, 2  ;;  %v498_v50 = vmul.f32 %v1234_v13, %v304_v24 }
  0x19   : > { %v378_v47 = vsel %vm375_vm0, %v376_v39, %v377_v40  ;;  %v381_v51 = vsel %vm375_vm0, %v379_v43, %v380_v44  ;;  %v499_v54 = vmul.f32 %v1234_v13, %v1251_v27  ;;  %v519_v57 = vmul.f32 %v1240_v17, %v304_v24 }
  0x1a   : > { %v408_v52 = vadd.f32 %v378_v47, %v315_v31  ;;  %v455_v53 = vsel %vm452_vm1, %v453_v45, %v454_v46  ;;  %v409_v55 = vadd.f32 %v381_v51, %v316_v32  ;;  %v458_v56 = vsel %vm452_vm1, %v456_v48, %v457_v49 }
  0x1b   : > { %v520_v58 = vmul.f32 %v1240_v17, %v332_v26  ;;  %v521_v60 = vmul.f32 %v1240_v17, %v1251_v27  ;;  %v522_v61 = vmul.f32 %v1240_v17, %v1255_v29  ;;  %v595_v62 = vmul.f32 %v1243_v18, %v304_v24 }
  0x1c   : > { %v485_v59 = vadd.f32 %v455_v53, %v408_v52  ;;  %v486_v63 = vadd.f32 %v458_v56, %v409_v55  ;;  %v551_v0 = vrot.slane %v519_v57, 1  ;;  %v596_v2 = vmul.f32 %v1243_v18, %v332_v26  ;;  %v292_v26 = vld [vmem:[%s1224_s16 + $0x30] ss:$8 sps:$4 sm:$0xff]   ;;  %v289_v56 = vld [vmem:[%s1224_s16 + $0x24] sm:$0x1] }
  0x1d   : > { %v552_v1 = vrot.slane %v520_v58, 1  ;;  %v554_v4 = vrot.slane %v521_v60, 1  ;;  %v555_v5 = vrot.slane %v522_v61, 1  ;;  %v597_v7 = vmul.f32 %v1243_v18, %v1251_v27  ;;  %v293_v60 = vld [vmem:[%s1224_s16 + $0x34] sm:$0x1] }
  0x1e   : > { %v506_v3 = vadd.f32 %v498_v50, %v485_v59  ;;  %v507_v14 = vadd.f32 %v499_v54, %v486_v63  ;;  %v598_v16 = vmul.f32 %v1243_v18, %v1255_v29  ;;  %v627_v20 = vrot.slane %v595_v62, 2  ;;  %v291_v59 = vld [vmem:[%s1224_s16 + $0x2c] sm:$0x1] }
  0x1f   : > { %v553_v15 = vsel %vm375_vm0, %v551_v0, %v552_v1  ;;  %v556_v22 = vsel %vm375_vm0, %v554_v4, %v555_v5  ;;  %v628_v24 = vrot.slane %v596_v2, 2  ;;  %v630_v25 = vrot.slane %v597_v7, 2  ;;  %v1342_v7 = vld [vmem:[%s1613_s2] ss:$0 sm:$0xff] }
  0x20   : > { %v583_v23 = vadd.f32 %v553_v15, %v506_v3  ;;  %v584_v31 = vadd.f32 %v556_v22, %v507_v14  ;;  %v631_v32 = vrot.slane %v598_v16, 2  ;;  %v672_v33 = vmul.f32 %v1246_v19, %v1251_v27  ;;  %v295_v3 = vld [vmem:[%s1224_s16 + $0x3c] sm:$0x1] }
  0x21   : > { %v673_v34 = vmul.f32 %v1246_v19, %v1253_v28  ;;  %v629_v35 = vsel %vm452_vm1, %v627_v20, %v628_v24  ;;  %v1299_v36 = vrot.slane %v1215_v6, %v1217_v8  ;;  %v1303_v37 = vrot.slane %v1215_v6, %v1219_v9  ;;  %v1356_v24 = vld [vmem:[%s1614_s3] ss:$0 sm:$0xff] }
  0x22   : > { %v1305_v38 = vunpack.c.l.bf16 %v288_v21  ;;  %v632_v39 = vsel %vm452_vm1, %v630_v25, %v631_v32  ;;  %v659_v40 = vadd.f32 %v629_v35, %v583_v23  ;;  %v1308_v41 = vunpack.c.h.bf16 %v288_v21 }
  0x23   : > { %v1310_v42 = vunpack.c.l.bf16 %v292_v26  ;;  %v660_v43 = vadd.f32 %v632_v39, %v584_v31  ;;  %v693_v44 = vmul.f32 %v1299_v36, %v1251_v27  ;;  %v694_v8 = vmul.f32 %v1299_v36, %v1255_v29 }
  0x24   : > { %v695_v6 = vmul.f32 %v1299_v36, %v1253_v28  ;;  %v680_v9 = vadd.f32 %v672_v33, %v659_v40  ;;  %v696_v45 = vmul.f32 %v1299_v36, %v1257_v30  ;;  %v769_v46 = vmul.f32 %v1303_v37, %v1251_v27 }
  0x25   : > { %v770_v47 = vmul.f32 %v1303_v37, %v1255_v29  ;;  %v681_v48 = vadd.f32 %v673_v34, %v660_v43  ;;  %v725_v49 = vrot.slane %v693_v44, 1  ;;  %v726_v50 = vrot.slane %v694_v8, 1 }
  0x26   : > { %v728_v51 = vrot.slane %v695_v6, 1  ;;  %v729_v52 = vrot.slane %v696_v45, 1  ;;  %v771_v53 = vmul.f32 %v1303_v37, %v1253_v28  ;;  %v772_v54 = vmul.f32 %v1303_v37, %v1257_v30 }
  0x27   : > { %v801_v55 = vrot.slane %v769_v46, 2  ;;  %v727_v57 = vsel %vm375_vm0, %v725_v49, %v726_v50  ;;  %v802_v58 = vrot.slane %v770_v47, 2  ;;  %v1332_v61 = vunpack.c.h.bf16 %v292_v26 }
  0x28   : > { %v319_v62 = vmul.f32 %v1226_v10, %v1305_v38  ;;  %v730_v63 = vsel %vm375_vm0, %v728_v51, %v729_v52  ;;  %v757_v0 = vadd.f32 %v727_v57, %v680_v9  ;;  %v804_v1 = vrot.slane %v771_v53, 2 }
  0x29   : > { %v805_v2 = vrot.slane %v772_v54, 2  ;;  %v758_v4 = vadd.f32 %v730_v63, %v681_v48  ;;  %v803_v5 = vsel %vm452_vm1, %v801_v55, %v802_v58  ;;  %v320_v14 = vmul.f32 %v1226_v10, %v1308_v41 }
  0x2a   : > { %v1346_v15 = vunpack.c.l.bf16 %v289_v56  ;;  %v833_v20 = vadd.f32 %v803_v5, %v757_v0  ;;  %v1349_v21 = vunpack.c.l.bf16 %v291_v59  ;;  %v1351_v22 = vunpack.c.l.bf16 %v293_v60 }
  0x2b   : > { %v806_v16 = vsel %vm452_vm1, %v804_v1, %v805_v2  ;;  %v1358_v25 = vunpack.c.l.bf16 %v295_v3  ;;  %v351_v26 = vmul.f32 %v1229_v11, %v1305_v38  ;;  %v353_v33 = vmul.f32 %v1229_v11, %v1308_v41 }
  0x2c   : > { %v834_v23 = vadd.f32 %v806_v16, %v758_v4  ;;  %v352_v31 = vmul.f32 %v1229_v11, %v1346_v15  ;;  %v848_v32 = vmul.f32 %v1342_v7, %v833_v20  ;;  %v354_v34 = vmul.f32 %v1229_v11, %v1349_v21 }
  0x2d   : > { %v428_v35 = vmul.f32 %v1232_v12, %v1305_v38  ;;  %v388_v40 = vrot.slane %v351_v26, 1  ;;  %v429_v44 = vmul.f32 %v1232_v12, %v1346_v15  ;;  %v391_v6 = vrot.slane %v353_v33, 1 }
  0x2e   : > { %v849_v39 = vmul.f32 %v1342_v7, %v834_v23  ;;  %v389_v43 = vrot.slane %v352_v31, 1  ;;  %v863_v8 = vadd.f32 %v1356_v24, %v848_v32  ;;  %v392_v9 = vrot.slane %v354_v34, 1 }
  0x2f   : > { %v430_v45 = vmul.f32 %v1232_v12, %v1308_v41  ;;  %v431_v48 = vmul.f32 %v1232_v12, %v1349_v21  ;;  %v465_v49 = vrot.slane %v428_v35, 2  ;;  %v466_v53 = vrot.slane %v429_v44, 2 }
  0x30   : > { %v864_v46 = vadd.f32 %v1356_v24, %v849_v39  ;;  %v390_v47 = vsel %vm375_vm0, %v388_v40, %v389_v43  ;;  %v871_v50 = vmax.f32 %v863_v8, 0.0  ;;  %v393_v51 = vsel %vm375_vm0, %v391_v6, %v392_v9 }
  0x31   : > { %v412_v52 = vadd.f32 %v390_v47, %v319_v62  ;;  %v413_v55 = vadd.f32 %v393_v51, %v320_v14  ;;  %v468_v56 = vrot.slane %v430_v45, 2  ;;  %v469_v57 = vrot.slane %v431_v48, 2 }
  0x32   : > { %v872_v54 = vmax.f32 %v864_v46, 0.0  ;;  %v467_v58 = vsel %vm452_vm1, %v465_v49, %v466_v53  ;;  %v502_v59 = vmul.f32 %v1234_v13, %v1308_v41  ;;  %v503_v60 = vmul.f32 %v1234_v13, %v1310_v42 }
  0x33   : > { %v527_v63 = vmul.f32 %v1240_v17, %v1308_v41  ;;  %v470_v1 = vsel %vm452_vm1, %v468_v56, %v469_v57  ;;  %v489_v62 = vadd.f32 %v467_v58, %v412_v52  ;;  %v528_v2 = vmul.f32 %v1240_v17, %v1349_v21 }
  0x34   : > { %v879_v0 = vpack.c.bf16 %v872_v54, %v871_v50  ;;  %v490_v3 = vadd.f32 %v470_v1, %v413_v55  ;;  %v529_v4 = vmul.f32 %v1240_v17, %v1310_v42  ;;  %v530_v5 = vmul.f32 %v1240_v17, %v1351_v22 }
  0x35   : > { %v563_v14 = vrot.slane %v527_v63, 1  ;;  %v510_v16 = vadd.f32 %v502_v59, %v489_v62  ;;  %v564_v20 = vrot.slane %v528_v2, 1  ;;  %v603_v23 = vmul.f32 %v1243_v18, %v1308_v41 }
  0x36   : > { %1118 = vmatprep.mubr.msk.bf16.mxu0 %vm899_vm2, %v879_v0  ;;  %v604_v26 = vmul.f32 %v1243_v18, %v1349_v21  ;;  %v511_v31 = vadd.f32 %v503_v60, %v490_v3  ;;  %v566_v32 = vrot.slane %v529_v4, 1  ;;  %v567_v33 = vrot.slane %v530_v5, 1 }
  0x37   : > { %v605_v34 = vmul.f32 %v1243_v18, %v1310_v42  ;;  %v565_v35 = vsel %vm375_vm0, %v563_v14, %v564_v20  ;;  %v606_v39 = vmul.f32 %v1243_v18, %v1351_v22  ;;  %v639_v40 = vrot.slane %v603_v23, 2 }
  0x38   : > { %v640_v43 = vrot.slane %v604_v26, 2  ;;  %v568_v44 = vsel %vm375_vm0, %v566_v32, %v567_v33  ;;  %v587_v8 = vadd.f32 %v565_v35, %v510_v16  ;;  %v676_v9 = vmul.f32 %v1246_v19, %v1310_v42 }
  0x39   : > { %v642_v6 = vrot.slane %v605_v34, 2  ;;  %v588_v45 = vadd.f32 %v568_v44, %v511_v31  ;;  %v643_v47 = vrot.slane %v606_v39, 2  ;;  %v677_v48 = vmul.f32 %v1246_v19, %v1332_v61 }
  0x3a   : > { %v641_v46 = vsel %vm452_vm1, %v639_v40, %v640_v43  ;;  %v701_v50 = vmul.f32 %v1299_v36, %v1310_v42  ;;  %v702_v51 = vmul.f32 %v1299_v36, %v1351_v22  ;;  %v703_v52 = vmul.f32 %v1299_v36, %v1332_v61 }
  0x3b   : > { %v663_v49 = vadd.f32 %v641_v46, %v587_v8  ;;  %v644_v53 = vsel %vm452_vm1, %v642_v6, %v643_v47  ;;  %v704_v54 = vmul.f32 %v1299_v36, %v1358_v25  ;;  %v777_v55 = vmul.f32 %v1303_v37, %v1310_v42 }
  0x3c   : > { %v778_v56 = vmul.f32 %v1303_v37, %v1351_v22  ;;  %v664_v57 = vadd.f32 %v644_v53, %v588_v45  ;;  %v737_v59 = vrot.slane %v701_v50, 1  ;;  %v738_v60 = vrot.slane %v702_v51, 1 }
  0x3d   : > { %v684_v58 = vadd.f32 %v676_v9, %v663_v49  ;;  %v740_v63 = vrot.slane %v703_v52, 1  ;;  %v741_v0 = vrot.slane %v704_v54, 1  ;;  %v779_v1 = vmul.f32 %v1303_v37, %v1332_v61 }
  0x3e   : > { %v780_v62 = vmul.f32 %v1303_v37, %v1358_v25  ;;  %v685_v2 = vadd.f32 %v677_v48, %v664_v57  ;;  %v739_v3 = vsel %vm375_vm0, %v737_v59, %v738_v60  ;;  %v813_v4 = vrot.slane %v777_v55, 2 }
  0x3f   : > { %v814_v5 = vrot.slane %v778_v56, 2  ;;  %v742_v14 = vsel %vm375_vm0, %v740_v63, %v741_v0  ;;  %v761_v16 = vadd.f32 %v739_v3, %v684_v58  ;;  %v816_v20 = vrot.slane %v779_v1, 2 }
  0x40   : > { %v817_v23 = vrot.slane %v780_v62, 2  ;;  %v762_v26 = vadd.f32 %v742_v14, %v685_v2  ;;  %v317_v32 = vmul.f32 %v1226_v10, %v1251_v27  ;;  %v318_v33 = vmul.f32 %v1226_v10, %v1253_v28 }
  0x41   : > { %v815_v31 = vsel %vm452_vm1, %v813_v4, %v814_v5  ;;  %v347_v39 = vmul.f32 %v1229_v11, %v1251_v27  ;;  %v348_v40 = vmul.f32 %v1229_v11, %v1255_v29  ;;  %v349_v44 = vmul.f32 %v1229_v11, %v1253_v28 }
  0x42   : > { %v818_v34 = vsel %vm452_vm1, %v816_v20, %v817_v23  ;;  %v837_v35 = vadd.f32 %v815_v31, %v761_v16  ;;  %v350_v8 = vmul.f32 %v1229_v11, %v1257_v30  ;;  %v424_v6 = vmul.f32 %v1232_v12, %v1251_v27 }
  0x43   : > { %v838_v43 = vadd.f32 %v818_v34, %v762_v26  ;;  %v382_v45 = vrot.slane %v347_v39, 1  ;;  %v383_v46 = vrot.slane %v348_v40, 1  ;;  %v425_v47 = vmul.f32 %v1232_v12, %v1255_v29 }
  0x44   : > { %v852_v9 = vmul.f32 %v1342_v7, %v837_v35  ;;  %v385_v49 = vrot.slane %v349_v44, 1  ;;  %v386_v50 = vrot.slane %v350_v8, 1  ;;  %v426_v51 = vmul.f32 %v1232_v12, %v1253_v28 }
  0x45   : > { %v853_v48 = vmul.f32 %v1342_v7, %v838_v43  ;;  %v384_v53 = vsel %vm375_vm0, %v382_v45, %v383_v46  ;;  %v427_v27 = vmul.f32 %v1232_v12, %v1257_v30  ;;  %v459_v54 = vrot.slane %v424_v6, 2 }
  0x46   : > { %v867_v52 = vadd.f32 %v1356_v24, %v852_v9  ;;  %v387_v56 = vsel %vm375_vm0, %v385_v49, %v386_v50  ;;  %v410_v29 = vadd.f32 %v384_v53, %v317_v32  ;;  %v460_v57 = vrot.slane %v425_v47, 2 }
  0x47   : > { %v868_v55 = vadd.f32 %v1356_v24, %v853_v48  ;;  %v411_v59 = vadd.f32 %v387_v56, %v318_v33  ;;  %v462_v60 = vrot.slane %v426_v51, 2  ;;  %v463_v63 = vrot.slane %v427_v27, 2 }
  0x48   : > { %v875_v58 = vmax.f32 %v867_v52, 0.0  ;;  %v461_v1 = vsel %vm452_vm1, %v459_v54, %v460_v57  ;;  %v500_v62 = vmul.f32 %v1234_v13, %v1253_v28  ;;  %v501_v2 = vmul.f32 %v1234_v13, %v1305_v38 }
  0x49   : > { %v876_v0 = vmax.f32 %v868_v55, 0.0  ;;  %v464_v3 = vsel %vm452_vm1, %v462_v60, %v463_v63  ;;  %v487_v4 = vadd.f32 %v461_v1, %v410_v29  ;;  %v523_v5 = vmul.f32 %v1240_v17, %v1253_v28 }
  0x4a   : > { %v524_v14 = vmul.f32 %v1240_v17, %v1257_v30  ;;  %v488_v20 = vadd.f32 %v464_v3, %v411_v59  ;;  %v525_v23 = vmul.f32 %v1240_v17, %v1305_v38  ;;  %v526_v26 = vmul.f32 %v1240_v17, %v1346_v15 }
  0x4b   : > { %v881_v16 = vpack.c.bf16 %v876_v0, %v875_v58  ;;  %v508_v31 = vadd.f32 %v500_v62, %v487_v4  ;;  %v557_v32 = vrot.slane %v523_v5, 1  ;;  %v599_v34 = vmul.f32 %v1243_v18, %v1253_v28 }
  0x4c   : > { %v558_v33 = vrot.slane %v524_v14, 1  ;;  %v509_v35 = vadd.f32 %v501_v2, %v488_v20  ;;  %v560_v39 = vrot.slane %v525_v23, 1  ;;  %v561_v40 = vrot.slane %v526_v26, 1 }
  0x4d   : > { %1122 = vmatprep.mubr.msk.bf16.mxu1 %vm899_vm2, %v881_v16  ;;  %v600_v43 = vmul.f32 %v1243_v18, %v1257_v30  ;;  %v601_v8 = vmul.f32 %v1243_v18, %v1305_v38  ;;  %v602_v6 = vmul.f32 %v1243_v18, %v1346_v15  ;;  %v633_v9 = vrot.slane %v599_v34, 2 }
  0x4e   : > { %v559_v44 = vsel %vm375_vm0, %v557_v32, %v558_v33  ;;  %v562_v45 = vsel %vm375_vm0, %v560_v39, %v561_v40  ;;  %v674_v47 = vmul.f32 %v1246_v19, %v1305_v38  ;;  %v675_v30 = vmul.f32 %v1246_v19, %v1308_v41 }
  0x4f   : > { %v585_v28 = vadd.f32 %v559_v44, %v508_v31  ;;  %v634_v46 = vrot.slane %v600_v43, 2  ;;  %v586_v48 = vadd.f32 %v562_v45, %v509_v35  ;;  %v636_v49 = vrot.slane %v601_v8, 2 }
  0x50   : > { %v637_v50 = vrot.slane %v602_v6, 2  ;;  %v697_v52 = vmul.f32 %v1299_v36, %v1305_v38  ;;  %v698_v53 = vmul.f32 %v1299_v36, %v1346_v15  ;;  %v699_v27 = vmul.f32 %v1299_v36, %v1308_v41 }
  0x51   : > { %v635_v51 = vsel %vm452_vm1, %v633_v9, %v634_v46  ;;  %v700_v56 = vmul.f32 %v1299_v36, %v1349_v21  ;;  %v773_v29 = vmul.f32 %v1303_v37, %v1305_v38  ;;  %v774_v1 = vmul.f32 %v1303_v37, %v1346_v15 }
  0x52   : > { %v638_v54 = vsel %vm452_vm1, %v636_v49, %v637_v50  ;;  %v661_v55 = vadd.f32 %v635_v51, %v585_v28  ;;  %v731_v58 = vrot.slane %v697_v52, 1  ;;  %v732_v59 = vrot.slane %v698_v53, 1  ;;  %v297_v50 = vld [vmem:[%s1224_s16 + $0x44] sm:$0x1] }
  0x53   : > { %v662_v57 = vadd.f32 %v638_v54, %v586_v48  ;;  %v734_v60 = vrot.slane %v699_v27, 1  ;;  %v735_v0 = vrot.slane %v700_v56, 1  ;;  %v775_v62 = vmul.f32 %v1303_v37, %v1308_v41 }
  0x54   : > { %v682_v63 = vadd.f32 %v674_v47, %v661_v55  ;;  %v733_v3 = vsel %vm375_vm0, %v731_v58, %v732_v59  ;;  %v776_v4 = vmul.f32 %v1303_v37, %v1349_v21  ;;  %v807_v5 = vrot.slane %v773_v29, 2 }
  0x55   : > { %v683_v2 = vadd.f32 %v675_v30, %v662_v57  ;;  %v736_v38 = vsel %vm375_vm0, %v734_v60, %v735_v0  ;;  %v808_v16 = vrot.slane %v774_v1, 2  ;;  %v810_v20 = vrot.slane %v775_v62, 2 }
  0x56   : > { %v759_v14 = vadd.f32 %v733_v3, %v682_v63  ;;  %v811_v26 = vrot.slane %v776_v4, 2  ;;  %v321_v15 = vmul.f32 %v1226_v10, %v1310_v42  ;;  %v322_v41 = vmul.f32 %v1226_v10, %v1332_v61 }
  0x57   : > { %v760_v23 = vadd.f32 %v736_v38, %v683_v2  ;;  %v809_v31 = vsel %vm452_vm1, %v807_v5, %v808_v16  ;;  %v355_v32 = vmul.f32 %v1229_v11, %v1310_v42  ;;  %v356_v21 = vmul.f32 %v1229_v11, %v1351_v22 }
  0x58   : > { %v357_v33 = vmul.f32 %v1229_v11, %v1332_v61  ;;  %v812_v34 = vsel %vm452_vm1, %v810_v20, %v811_v26  ;;  %v835_v35 = vadd.f32 %v809_v31, %v759_v14  ;;  %v358_v39 = vmul.f32 %v1229_v11, %v1358_v25  ;;  %v296_v11 = vld [vmem:[%s1224_s16 + $0x40] ss:$8 sps:$4 sm:$0xff]  }
  0x59   : > { %v432_v10 = vmul.f32 %v1232_v12, %v1310_v42  ;;  %v836_v40 = vadd.f32 %v812_v34, %v760_v23  ;;  %v394_v43 = vrot.slane %v355_v32, 1  ;;  %v395_v44 = vrot.slane %v356_v21, 1 }
  0x5a   : > { %v397_v8 = vrot.slane %v357_v33, 1  ;;  %v850_v6 = vmul.f32 %v1342_v7, %v835_v35  ;;  %v398_v9 = vrot.slane %v358_v39, 1  ;;  %v433_v45 = vmul.f32 %v1232_v12, %v1351_v22 }
  0x5b   : > { %v434_v28 = vmul.f32 %v1232_v12, %v1332_v61  ;;  %v851_v46 = vmul.f32 %v1342_v7, %v836_v40  ;;  %v396_v47 = vsel %vm375_vm0, %v394_v43, %v395_v44  ;;  %v435_v42 = vmul.f32 %v1232_v12, %v1358_v25 }
  0x5c   : > { %v471_v48 = vrot.slane %v432_v10, 2  ;;  %v865_v49 = vadd.f32 %v1356_v24, %v850_v6  ;;  %v399_v30 = vsel %vm375_vm0, %v397_v8, %v398_v9  ;;  %v414_v51 = vadd.f32 %v396_v47, %v321_v15 }
  0x5d   : > { %v472_v52 = vrot.slane %v433_v45, 2  ;;  %v866_v22 = vadd.f32 %v1356_v24, %v851_v46  ;;  %v415_v53 = vadd.f32 %v399_v30, %v322_v41  ;;  %v474_v27 = vrot.slane %v434_v28, 2  ;;  %v299_v41 = vld [vmem:[%s1224_s16 + $0x4c] sm:$0x1] }
  0x5e   : > { %v475_v54 = vrot.slane %v435_v42, 2  ;;  %v873_v55 = vmax.f32 %v865_v49, 0.0  ;;  %v493_v29 = vunpack.c.l.bf16 %v296_v11  ;;  %v504_v12 = vmul.f32 %v1234_v13, %v1332_v61 }
  0x5f   : > { %v473_v56 = vsel %vm452_vm1, %v471_v48, %v472_v52  ;;  %v874_v57 = vmax.f32 %v866_v22, 0.0  ;;  %v514_v60 = vunpack.c.l.bf16 %v297_v50  ;;  %v531_v1 = vmul.f32 %v1240_v17, %v1332_v61 }
  0x60   : > { %v476_v58 = vsel %vm452_vm1, %v474_v27, %v475_v54  ;;  %v491_v59 = vadd.f32 %v473_v56, %v414_v51  ;;  %v505_v0 = vmul.f32 %v1234_v13, %v493_v29  ;;  %v532_v62 = vmul.f32 %v1240_v17, %v1358_v25 }
  0x61   : > { %v492_v63 = vadd.f32 %v476_v58, %v415_v53  ;;  %v880_v2 = vpack.c.bf16 %v874_v57, %v873_v55  ;;  %v533_v4 = vmul.f32 %v1240_v17, %v493_v29  ;;  %v534_v5 = vmul.f32 %v1240_v17, %v514_v60 }
  0x62   : > { %v512_v3 = vadd.f32 %v504_v12, %v491_v59  ;;  %v569_v14 = vrot.slane %v531_v1, 1  ;;  %v570_v16 = vrot.slane %v532_v62, 1  ;;  %v607_v20 = vmul.f32 %v1243_v18, %v1332_v61 }
  0x63   : > { %v513_v38 = vadd.f32 %v505_v0, %v492_v63  ;;  %1119 = vmatmul.mubr.msk.bf16.vlgmr.msra.gmra.mxu0 %vm899_vm2, %v880_v2  ;;  %v572_v13 = vrot.slane %v533_v4, 1  ;;  %v573_v23 = vrot.slane %v534_v5, 1  ;;  %v608_v26 = vmul.f32 %v1243_v18, %v1358_v25  ;;  %v1104_v5 = vld [vmem:[%s1617_s6] ss:$0 sm:$0xff] }
  0x64   : > { %v609_v15 = vmul.f32 %v1243_v18, %v493_v29  ;;  %v571_v31 = vsel %vm375_vm0, %v569_v14, %v570_v16  ;;  %v610_v17 = vmul.f32 %v1243_v18, %v514_v60  ;;  %v645_v32 = vrot.slane %v607_v20, 2 }
  0x65   : > { %v667_v21 = vunpack.c.h.bf16 %v296_v11  ;;  %v574_v33 = vsel %vm375_vm0, %v572_v13, %v573_v23  ;;  %v589_v34 = vadd.f32 %v571_v31, %v512_v3  ;;  %v646_v61 = vrot.slane %v608_v26, 2  ;;  %v1103_v3 = vld [vmem:[%s1616_s5] ss:$0 sm:$0xff] }
  0x66   : > { %v648_v35 = vrot.slane %v609_v15, 2  ;;  %v590_v39 = vadd.f32 %v574_v33, %v513_v38  ;;  %v649_v10 = vrot.slane %v610_v17, 2  ;;  %v678_v40 = vmul.f32 %v1246_v19, %v493_v29 }
  0x67   : > { %v679_v25 = vmul.f32 %v1246_v19, %v667_v21  ;;  %v647_v43 = vsel %vm452_vm1, %v645_v32, %v646_v61  ;;  %v688_v44 = vunpack.c.l.bf16 %v299_v41  ;;  %v705_v8 = vmul.f32 %v1299_v36, %v493_v29 }
  0x68   : > { %v706_v18 = vmul.f32 %v1299_v36, %v514_v60  ;;  %v650_v6 = vsel %vm452_vm1, %v648_v35, %v649_v10  ;;  %v665_v9 = vadd.f32 %v647_v43, %v589_v34  ;;  %v707_v45 = vmul.f32 %v1299_v36, %v667_v21 }
  0x69   : > { %v781_v28 = vmul.f32 %v1303_v37, %v493_v29  ;;  %v666_v46 = vadd.f32 %v650_v6, %v590_v39  ;;  %v708_v11 = vmul.f32 %v1299_v36, %v688_v44  ;;  %v743_v47 = vrot.slane %v705_v8, 1 }
  0x6a   : > { %v744_v42 = vrot.slane %v706_v18, 1  ;;  %v686_v19 = vadd.f32 %v678_v40, %v665_v9  ;;  %v746_v48 = vrot.slane %v707_v45, 1  ;;  %v782_v49 = vmul.f32 %v1303_v37, %v514_v60 }
  0x6b   : > { %v783_v50 = vmul.f32 %v1303_v37, %v667_v21  ;;  %v687_v30 = vadd.f32 %v679_v25, %v666_v46  ;;  %v747_v52 = vrot.slane %v708_v11, 1  ;;  %v784_v22 = vmul.f32 %v1303_v37, %v688_v44 }
  0x6c   : > { %v745_v51 = vsel %vm375_vm0, %v743_v47, %v744_v42  ;;  %v819_v27 = vrot.slane %v781_v28, 2  ;;  %v820_v54 = vrot.slane %v782_v49, 2 }
  0x6d   : > { %v763_v53 = vadd.f32 %v745_v51, %v686_v19  ;;  %v822_v55 = vrot.slane %v783_v50, 2  ;;  %v748_v36 = vsel %vm375_vm0, %v746_v48, %v747_v52  ;;  %v823_v56 = vrot.slane %v784_v22, 2 }
  0x6e   : > { %v764_v29 = vadd.f32 %v748_v36, %v687_v30  ;;  %v821_v12 = vsel %vm452_vm1, %v819_v27, %v820_v54 }
  0x6f   : > { %v824_v57 = vsel %vm452_vm1, %v822_v55, %v823_v56  ;;  %v839_v58 = vadd.f32 %v821_v12, %v763_v53 }
  0x70   : > { %v840_v59 = vadd.f32 %v824_v57, %v764_v29 }
  0x71   : > { %v854_v60 = vmul.f32 %v1342_v7, %v839_v58 }
  0x72   : > { %v855_v63 = vmul.f32 %v1342_v7, %v840_v59 }
  0x73   : > { %v869_v37 = vadd.f32 %v1356_v24, %v854_v60 }
  0x74   : > { %v870_v0 = vadd.f32 %v1356_v24, %v855_v63 }
  0x75   : > { %v877_v1 = vmax.f32 %v869_v37, 0.0 }
  0x76   : > { %v878_v62 = vmax.f32 %v870_v0, 0.0 }
  0x78   : > { %v882_v2 = vpack.c.bf16 %v878_v62, %v877_v1 }
  0x7a   : > { %1123 = vmatmul.mubr.msk.bf16.vlgmr.msra.gmra.mxu1 %vm899_vm2, %v882_v2 }
 0x123   : > { %v1120_v4 = vpop.f32.mrf.mxu0 }
 0x124   : > { %v986_v38 = vmul.f32 %v1120_v4, %v1103_v3 }
 0x125   : > { %v946_v7 = vpop.f32.mrf.mxu0 }
 0x126   : > { %v1001_v14 = vadd.f32 %v1104_v5, %v986_v38  ;;  %v984_v16 = vmul.f32 %v1103_v3, %v946_v7 }
 0x127   : > { %v1121_v24 = vpop.f32.mrf.mxu0 }
 0x128   : > { %v1009_v20 = vmax.f32 %v1001_v14, 0.0  ;;  %v999_v13 = vadd.f32 %v1104_v5, %v984_v16  ;;  %v987_v23 = vmul.f32 %v1121_v24, %v1103_v3 }
 0x129   : > { %v949_v26 = vpop.f32.mrf.mxu0 }
 0x12a   : > { %v1017_v15 = vpack.c.bf16 %v1009_v20, %v1009_v20  ;;  %v1007_v41 = vmax.f32 %v999_v13, 0.0  ;;  %v1002_v31 = vadd.f32 %v1104_v5, %v987_v23  ;;  %v985_v17 = vmul.f32 %v1103_v3, %v949_v26 }
 0x12c   : > { %1026 = vst.msk [vmem:[%s1590_s30 + $0x8] sm:$0xf] %vm1023_vm3, %v1017_v15  ;;  %v1015_v32 = vpack.c.bf16 %v1007_v41, %v1007_v41  ;;  %v1010_v21 = vmax.f32 %v1002_v31, 0.0  ;;  %v1000_v33 = vadd.f32 %v1104_v5, %v985_v17 }
 0x12e   : > { %1024 = vst.msk [vmem:[%s1590_s30] sm:$0xf] %vm1023_vm3, %v1015_v32  ;;  %v1018_v34 = vpack.c.bf16 %v1010_v21, %v1010_v21  ;;  %v1008_v61 = vmax.f32 %v1000_v33, 0.0 }
 0x130   : > { %1027 = vst.msk [vmem:[%s1590_s30 + $0xc] sm:$0xf] %vm1023_vm3, %v1018_v34  ;;  %v1016_v35 = vpack.c.bf16 %v1008_v61, %v1008_v61 }
 0x132   : > { %1025 = vst.msk [vmem:[%s1590_s30 + $0x4] sm:$0xf] %vm1023_vm3, %v1016_v35 }
 0x13a   : > { %v1124_v39 = vpop.f32.mrf.mxu1 }
 0x13b   : > { %v990_v10 = vmul.f32 %v1124_v39, %v1103_v3 }
 0x13c   : > { %v962_v40 = vpop.f32.mrf.mxu1 }
 0x13d   : > { %v1005_v25 = vadd.f32 %v1104_v5, %v990_v10  ;;  %v988_v43 = vmul.f32 %v1103_v3, %v962_v40 }
 0x13e   : > { %v1125_v44 = vpop.f32.mrf.mxu1 }
 0x13f   : > { %v1013_v8 = vmax.f32 %v1005_v25, 0.0  ;;  %v1003_v18 = vadd.f32 %v1104_v5, %v988_v43  ;;  %v991_v6 = vmul.f32 %v1125_v44, %v1103_v3 }
 0x140   : > { %v965_v9 = vpop.f32.mrf.mxu1 }
 0x141   : > { %v1021_v45 = vpack.c.bf16 %v1013_v8, %v1013_v8  ;;  %v1011_v28 = vmax.f32 %v1003_v18, 0.0  ;;  %v1006_v46 = vadd.f32 %v1104_v5, %v991_v6  ;;  %v989_v11 = vmul.f32 %v1103_v3, %v965_v9 }
 0x143   : > { %1030 = vst.msk [vmem:[%s1590_s30 + $0x18] sm:$0xf] %vm1023_vm3, %v1021_v45  ;;  %v1019_v47 = vpack.c.bf16 %v1011_v28, %v1011_v28  ;;  %v1014_v42 = vmax.f32 %v1006_v46, 0.0  ;;  %v1004_v19 = vadd.f32 %v1104_v5, %v989_v11 }
 0x145   : > { %1028 = vst.msk [vmem:[%s1590_s30 + $0x10] sm:$0xf] %vm1023_vm3, %v1019_v47  ;;  %v1022_v48 = vpack.c.bf16 %v1014_v42, %v1014_v42  ;;  %v1012_v49 = vmax.f32 %v1004_v19, 0.0 }
 0x147   : > { %1031 = vst.msk [vmem:[%s1590_s30 + $0x1c] sm:$0xf] %vm1023_vm3, %v1022_v48  ;;  %v1020_v50 = vpack.c.bf16 %v1012_v49, %v1012_v49 }
 0x149   : > { %1029 = vst.msk [vmem:[%s1590_s30 + $0x14] sm:$0xf] %vm1023_vm3, %v1020_v50 }
 0x14a PF: > { %s17_s24 = sadd.s32 1, %s1147_s24  }
 0x14b   : > { %p14_p4 = scmp.ge.s32.totalorder %s17_s24, 4  }
 0x14d   :  { %16 = sbr.rel (!%p14_p4) target bundleno = 1 (0x1), region = 78 }

// kernel: vgg_forward.4
= control target key start
LH: loop header
LB: loop body
LE: loop exit
PB: predicated region body
PF: predicated region fallthrough
CT: control target
= control target key end

     0   :  { %s1525_s15 = smov 0   ;;  %s1861_s0 = inlined_call_operand.vmem [shape: f32[8,9,9,3], index: 0, kind: input, shape index: {}]   ;;  %s1862_s1 = inlined_call_operand.vmem [shape: bf16[3,3,3,32], index: 1, kind: input, shape index: {}]   ;;  %s1863_s2 = inlined_call_operand.vmem [shape: f32[1,32], index: 2, kind: input, shape index: {}]   ;;  %s1864_s3 = inlined_call_operand.vmem [shape: f32[1,32], index: 3, kind: input, shape index: {}]   ;;  %s1865_s4 = inlined_call_operand.vmem [shape: bf16[2,8,8,32], index: 4, kind: output, shape index: {}]  }
   0x1 LB: > { %s1531_s16 = sadd.s32 4294967295, %s1497_s15   ;;  %p1298_p0 = scmp.ge.s32.totalorder %s1497_s15, 1  ;;  %s1497_s15 = sphi %s1525_s15, %s14_s15  }
   0x2   : > { %p164_p1 = scmp.lt.s32.totalorder %s1497_s15, 3 }
   0x4   : > { %p165_p2 = pnand %p1298_p0, %p164_p1 }
   0x5   : > { %s1299_s19 = sshll.u32 (!%p165_p2), %s1531_s16, 2  ;;  %p198_p4 = scmp.lt.s32.totalorder (!%p165_p2), %s1531_s16, 1 }
   0x6   : > { %168 = sbr.rel (%p165_p2) target bundleno = 297 (0x129), region = 36  ;;  %p192_p3 = scmp.lt.s32.totalorder (!%p165_p2), %s1299_s19, 7 }
   0xb   : > { %v256_v0 = vld [vmem:[%s1862_s1 + $0x2] sm:$0x3]  ;;  %vm285_vm0 = vcmask 1040384   ;;  %vm286_vm1 = vcmask 1041408   ;;  %v1499_v1 = vmov 65535   ;;  %s1867_s19 = smov (!%p192_p3, %s1299_s19), 7 }
   0xc   : > { %v287_v2 = vsel %vm285_vm0, 4294967295, %v1499_v1  ;;  %v255_v3 = vld [vmem:[%s1862_s1] sm:$0x3]  ;;  %v257_v5 = vld [vmem:[%s1862_s1 + $0x4] sm:$0x3]  ;;  %s1481_s24 = smul.u32 144, %s1867_s19 }
   0xd   : > { %v1542_v4 = vsel %vm286_vm1, %v287_v2, 0  ;;  %v258_v9 = vld [vmem:[%s1862_s1 + $0x6] sm:$0x3]  ;;  %v259_v10 = vld [vmem:[%s1862_s1 + $0x8] sm:$0x3]  ;;  %vm272_vm2 = vcmask 23552  }
   0xe   : > { %v290_v6 = vand.u32 %v1542_v4, %v256_v0  ;;  %v370_v7 = vand.u32 %v1542_v4, %v255_v3  ;;  %v503_v8 = vand.u32 %v1542_v4, %v257_v5  ;;  %s1553_s27 = scalar_lea.vmem %s1861_s0, %s1481_s24  ;;  %vm453_vm3 = vcmask 1046528   ;;  %v260_v48 = vld [vmem:[%s1862_s1 + $0xa] sm:$0x3]  ;;  %v261_v1 = vld [vmem:[%s1862_s1 + $0xc] sm:$0x3]  ;;  %s1869_s16 = smov (!%p198_p4, %s1531_s16), 1 }
   0xf   : > { %v222_v11 = vld [vmem:[%s1553_s27 + $0x90] sm:$0xff]  ;;  %v1563_v12 = vld [vmem:[%s1553_s27 + $0xa0] sm:$0xff]  ;;  %v205_v26 = vld [vmem:[%s1553_s27 + $0x8] sm:$0x1]  ;;  %v595_v28 = vand.u32 %v1542_v4, %v258_v9  ;;  %v687_v29 = vand.u32 %v1542_v4, %v259_v10  ;;  %v919_v9 = vand.u32 %v1542_v4, %v261_v1  ;;  %s1343_s20 = sshll.u32 %s1869_s16, 5  ;;  %vm1230_vm4 = vcmask 257024  }
  0x10   : > { %1479 = vmatprep.subr.bf16.mxu1 %v290_v6  ;;  %1389 = vmatprep.subr.bf16.mxu0 %v290_v6  ;;  %v1566_v13 = vld [vmem:[%s1553_s27 + $0xb0] sm:$0xff]  ;;  %v268_v14 = vpack.c.bf16 %v1563_v12, %v222_v11  ;;  %v1570_v15 = vld [vmem:[%s1553_s27 + $0xc0] sm:$0xff]  ;;  %v207_v27 = vld [vmem:[%s1553_s27 + $0x18] sm:$0x1]  ;;  %v455_v32 = vrot.slane %v205_v26, 1  ;;  %s1828_s22 = scalar_lea.vmem %s1865_s4, %s1343_s20 }
  0x11   : > { %1480 = vmatpush3.bf16.msra.mxu1 %v290_v6  ;;  %1390 = vmatpush3.bf16.msra.mxu0 %v290_v6  ;;  %v1573_v16 = vld [vmem:[%s1553_s27 + $0xd0] sm:$0xff]  ;;  %v1576_v17 = vld [vmem:[%s1553_s27 + $0xe0] sm:$0xff]  ;;  %v269_v20 = vpack.c.bf16 %v1570_v15, %v1566_v13  ;;  %v458_v33 = vrot.slane %v207_v27, 1  ;;  %v209_v39 = vld [vmem:[%s1553_s27 + $0x28] sm:$0x1] }
  0x12   : > { %1399 = vmatprep.subr.bf16.mxu1 %v370_v7  ;;  %1409 = vmatprep.subr.bf16.mxu0 %v503_v8  ;;  %v1579_v18 = vld [vmem:[%s1553_s27 + $0xf0] sm:$0xff]  ;;  %v1582_v19 = vld [vmem:[%s1553_s27 + $0x100] sm:$0xff]  ;;  %v270_v21 = vpack.c.bf16 %v1576_v17, %v1573_v16  ;;  %v211_v40 = vld [vmem:[%s1553_s27 + $0x38] sm:$0x1]  ;;  %v461_v43 = vrot.slane %v209_v39, 1 }
  0x13   : > { %v204_v22 = vld [vmem:[%s1553_s27] sm:$0xff]  ;;  %1391 = vmatprep.mubr.msk.bf16.mxu0 %vm272_vm2, %v268_v14  ;;  %v271_v23 = vpack.c.bf16 %v1582_v19, %v1579_v18  ;;  %v1593_v24 = vld [vmem:[%s1553_s27 + $0x10] sm:$0xff]  ;;  %v464_v44 = vrot.slane %v211_v40, 1  ;;  %v213_v46 = vld [vmem:[%s1553_s27 + $0x48] sm:$0x1] }
  0x14   : > { %v454_v25 = vrot.slane %v204_v22, 1  ;;  %1395 = vmatprep.mubr.msk.bf16.mxu1 %vm272_vm2, %v270_v21  ;;  %1392 = vmatmul.mubr.msk.bf16.vlgmr.msra.gmra.mxu0 %vm272_vm2, %v269_v20  ;;  %v264_v30 = vpack.c.bf16 %v1593_v24, %v204_v22  ;;  %v457_v31 = vrot.slane %v1593_v24, 1  ;;  %v1604_v34 = vld [vmem:[%s1553_s27 + $0x20] sm:$0xff]  ;;  %v1607_v35 = vld [vmem:[%s1553_s27 + $0x30] sm:$0xff]  ;;  %v215_v53 = vld [vmem:[%s1553_s27 + $0x58] sm:$0x1] }
  0x15   : > { %v1610_v36 = vld [vmem:[%s1553_s27 + $0x40] sm:$0xff]  ;;  %1396 = vmatmul.mubr.msk.bf16.vlgmr.msra.gmra.mxu1 %vm272_vm2, %v271_v23  ;;  %1410 = vmatpush3.bf16.msra.mxu0 %v503_v8  ;;  %v460_v37 = vrot.slane %v1604_v34, 1  ;;  %v463_v38 = vrot.slane %v1607_v35, 1  ;;  %v1623_v45 = vld [vmem:[%s1553_s27 + $0x50] sm:$0xff]  ;;  %v265_v50 = vpack.c.bf16 %v1607_v35, %v1604_v34  ;;  %v467_v57 = vrot.slane %v213_v46, 1 }
  0x16   : > { %1400 = vmatpush3.bf16.msra.mxu1 %v370_v7  ;;  %1401 = vmatprep.mubr.msk.bf16.mxu1 %vm272_vm2, %v264_v30  ;;  %v456_v41 = vsel %vm453_vm3, %v454_v25, %v455_v32  ;;  %v1620_v42 = vsel %vm453_vm3, %v457_v31, %v458_v33  ;;  %v1627_v47 = vld [vmem:[%s1553_s27 + $0x60] sm:$0xff]  ;;  %v466_v51 = vrot.slane %v1610_v36, 1  ;;  %v469_v52 = vrot.slane %v1623_v45, 1  ;;  %v1639_v54 = vld [vmem:[%s1553_s27 + $0x70] sm:$0xff]  ;;  %v217_v59 = vld [vmem:[%s1553_s27 + $0x68] sm:$0x1] }
  0x17   : > { %v486_v49 = vpack.c.bf16 %v1620_v42, %v456_v41  ;;  %1419 = vmatprep.subr.bf16.mxu1 %v595_v28  ;;  %1429 = vmatprep.subr.bf16.mxu0 %v687_v29  ;;  %v1642_v55 = vsel %vm453_vm3, %v460_v37, %v461_v43  ;;  %v1645_v56 = vsel %vm453_vm3, %v463_v38, %v464_v44  ;;  %v470_v58 = vrot.slane %v215_v53, 1  ;;  %v219_v60 = vld [vmem:[%s1553_s27 + $0x78] sm:$0x1]  ;;  %v247_v14 = vld [vmem:[%s1553_s27 + $0x1b0] sm:$0xff]  ;;  %v248_v20 = vld [vmem:[%s1553_s27 + $0x1c0] sm:$0xff] }
  0x18   : > { %v487_v61 = vpack.c.bf16 %v1645_v56, %v1642_v55  ;;  %v266_v62 = vpack.c.bf16 %v1623_v45, %v1610_v36  ;;  %v472_v63 = vrot.slane %v1627_v47, 1  ;;  %v475_v0 = vrot.slane %v1639_v54, 1  ;;  %v231_v21 = vld [vmem:[%s1553_s27 + $0x120] sm:$0xff]  ;;  %v233_v22 = vld [vmem:[%s1553_s27 + $0x130] sm:$0xff]  ;;  %v262_v33 = vld [vmem:[%s1862_s1 + $0xe] sm:$0x3] }
  0x19   : > { %1411 = vmatprep.mubr.msk.bf16.mxu0 %vm272_vm2, %v486_v49  ;;  %v1660_v2 = vsel %vm453_vm3, %v466_v51, %v467_v57  ;;  %v1663_v3 = vsel %vm453_vm3, %v469_v52, %v470_v58  ;;  %v473_v5 = vrot.slane %v217_v59, 1  ;;  %v476_v6 = vrot.slane %v219_v60, 1  ;;  %v250_v30 = vld [vmem:[%s1553_s27 + $0x1e0] sm:$0xff]  ;;  %v237_v32 = vld [vmem:[%s1553_s27 + $0x150] sm:$0xff]  ;;  %v232_v44 = vld [vmem:[%s1553_s27 + $0x128] sm:$0x1] }
  0x1a   : > { %v488_v7 = vpack.c.bf16 %v1663_v3, %v1660_v2  ;;  %v827_v8 = vand.u32 %v1542_v4, %v260_v48  ;;  %v267_v25 = vpack.c.bf16 %v1639_v54, %v1627_v47  ;;  %v670_v26 = vpack.c.bf16 %v248_v20, %v247_v14  ;;  %v235_v31 = vld [vmem:[%s1553_s27 + $0x140] sm:$0xff]  ;;  %v241_v39 = vld [vmem:[%s1553_s27 + $0x170] sm:$0xff]  ;;  %v234_v46 = vld [vmem:[%s1553_s27 + $0x138] sm:$0x1] }
  0x1b   : > { %v1672_v10 = vsel %vm453_vm3, %v472_v63, %v473_v5  ;;  %v1675_v11 = vsel %vm453_vm3, %v475_v0, %v476_v6  ;;  %v578_v27 = vpack.c.bf16 %v233_v22, %v231_v21  ;;  %v239_v38 = vld [vmem:[%s1553_s27 + $0x160] sm:$0xff]  ;;  %v251_v40 = vld [vmem:[%s1553_s27 + $0x1f0] sm:$0xff]  ;;  %v579_v48 = vpack.c.bf16 %v237_v32, %v235_v31  ;;  %v238_v6 = vld [vmem:[%s1553_s27 + $0x158] sm:$0x1] }
  0x1c   : > { %1412 = vmatmul.mubr.msk.bf16.vlgmr.msra.gmra.mxu0 %vm272_vm2, %v487_v61  ;;  %v489_v23 = vpack.c.bf16 %v1675_v11, %v1672_v10  ;;  %v252_v43 = vld [vmem:[%s1553_s27 + $0x200] sm:$0xff]  ;;  %v263_v49 = vld [vmem:[%s1862_s1 + $0x10] sm:$0x3]  ;;  %v580_v51 = vpack.c.bf16 %v241_v39, %v239_v38  ;;  %v1011_v52 = vand.u32 %v1542_v4, %v262_v33  ;;  %v781_v53 = vrot.slane %v233_v22, 1  ;;  %v242_v14 = vld [vmem:[%s1553_s27 + $0x178] sm:$0x1] }
  0x1d   : > { %1402 = vmatmul.mubr.msk.bf16.vlgmr.msra.gmra.mxu1 %vm272_vm2, %v265_v50  ;;  %1430 = vmatpush3.bf16.msra.mxu0 %v687_v29  ;;  %v249_v29 = vld [vmem:[%s1553_s27 + $0x1d0] sm:$0xff]  ;;  %v778_v50 = vrot.slane %v231_v21, 1  ;;  %v672_v57 = vpack.c.bf16 %v252_v43, %v251_v40  ;;  %v779_v58 = vrot.slane %v232_v44, 1  ;;  %v782_v59 = vrot.slane %v234_v46, 1  ;;  %v243_v63 = vld [vmem:[%s1553_s27 + $0x180] sm:$0xff] }
  0x1e   : > { %1420 = vmatpush3.bf16.msra.mxu1 %v595_v28  ;;  %1405 = vmatprep.mubr.msk.bf16.mxu1 %vm272_vm2, %v266_v62  ;;  %v1688_v28 = vld [vmem:[%s1553_s27 + $0x110] sm:$0xff]  ;;  %v671_v41 = vpack.c.bf16 %v250_v30, %v249_v29  ;;  %v1109_v60 = vand.u32 %v1542_v4, %v263_v49  ;;  %v254_v62 = vld [vmem:[%s1553_s27 + $0x220] sm:$0xff]  ;;  %v236_v4 = vld [vmem:[%s1553_s27 + $0x148] sm:$0x1]  ;;  %v784_v20 = vrot.slane %v235_v31, 1  ;;  %v787_v22 = vrot.slane %v237_v32, 1 }
  0x1f   : > { %1415 = vmatprep.mubr.msk.bf16.mxu0 %vm272_vm2, %v488_v7  ;;  %1439 = vmatprep.subr.bf16.mxu1 %v827_v8  ;;  %v997_v37 = vpack.c.bf16 %v1688_v28, %v1582_v19  ;;  %v253_v61 = vld [vmem:[%s1553_s27 + $0x210] sm:$0xff]  ;;  %v780_v1 = vsel %vm453_vm3, %v778_v50, %v779_v58  ;;  %v783_v5 = vsel %vm453_vm3, %v781_v53, %v782_v59  ;;  %v793_v29 = vrot.slane %v241_v39, 1  ;;  %v246_v39 = vld [vmem:[%s1553_s27 + $0x198] sm:$0x1] }
  0x20   : > { %1449 = vmatprep.subr.bf16.mxu0 %v919_v9  ;;  %v245_v0 = vld [vmem:[%s1553_s27 + $0x190] sm:$0xff]  ;;  %v673_v7 = vpack.c.bf16 %v254_v62, %v253_v61  ;;  %v794_v33 = vrot.slane %v242_v14, 1  ;;  %v903_v40 = vpack.c.bf16 %v1610_v36, %v1607_v35  ;;  %v800_v49 = vrot.slane %v246_v39, 1 }
  0x21   : > { %v581_v21 = vpack.c.bf16 %v245_v0, %v243_v63  ;;  %v799_v44 = vrot.slane %v245_v0, 1  ;;  %v904_v50 = vpack.c.bf16 %v1627_v47, %v1623_v45  ;;  %v1092_v45 = vpack.c.bf16 %v1642_v55, %v1620_v42 }
  0x22   : > { %v795_v32 = vsel %vm453_vm3, %v793_v29, %v794_v33  ;;  %v994_v47 = vpack.c.bf16 %v1566_v13, %v1563_v12  ;;  %v1093_v58 = vpack.c.bf16 %v1660_v2, %v1645_v56  ;;  %v1094_v42 = vpack.c.bf16 %v1672_v10, %v1663_v3 }
  0x23   : > { %v801_v36 = vsel %vm453_vm3, %v799_v44, %v800_v49  ;;  %v996_v13 = vpack.c.bf16 %v1579_v18, %v1576_v17 }
  0x24   : > { %1416 = vmatmul.mubr.msk.bf16.gmra.mxu0 %vm272_vm2, %v489_v23  ;;  %v810_v23 = vpack.c.bf16 %v783_v5, %v780_v1 }
  0x25   : > { %1406 = vmatmul.mubr.msk.bf16.gmra.mxu1 %vm272_vm2, %v267_v25  ;;  %1431 = vmatprep.mubr.msk.bf16.mxu0 %vm272_vm2, %v670_v26  ;;  %v785_v25 = vrot.slane %v236_v4, 1  ;;  %v788_v26 = vrot.slane %v238_v6, 1 }
  0x26   : > { %1421 = vmatprep.mubr.msk.bf16.mxu1 %vm272_vm2, %v578_v27  ;;  %v790_v27 = vrot.slane %v239_v38, 1  ;;  %v244_v38 = vld [vmem:[%s1553_s27 + $0x188] sm:$0x1] }
  0x2c   : > { %1432 = vmatmul.mubr.msk.bf16.vlgmr.msra.gmra.mxu0 %vm272_vm2, %v671_v41  ;;  %v796_v41 = vrot.slane %v243_v63, 1 }
  0x2d   : > { %1422 = vmatmul.mubr.msk.bf16.vlgmr.msra.gmra.mxu1 %vm272_vm2, %v579_v48  ;;  %1450 = vmatpush3.bf16.msra.mxu0 %v919_v9  ;;  %v240_v9 = vld [vmem:[%s1553_s27 + $0x168] sm:$0x1]  ;;  %v797_v48 = vrot.slane %v244_v38, 1 }
  0x2e   : > { %1440 = vmatpush3.bf16.msra.mxu1 %v827_v8  ;;  %1425 = vmatprep.mubr.msk.bf16.mxu1 %vm272_vm2, %v580_v51  ;;  %v902_v8 = vpack.c.bf16 %v1604_v34, %v1593_v24  ;;  %v791_v30 = vrot.slane %v240_v9, 1  ;;  %v786_v24 = vsel %vm453_vm3, %v784_v20, %v785_v25  ;;  %v789_v34 = vsel %vm453_vm3, %v787_v22, %v788_v26  ;;  %v220_v51 = vld [vmem:[%s1553_s27 + $0x80] sm:$0xff] }
  0x2f   : > { %1435 = vmatprep.mubr.msk.bf16.mxu0 %vm272_vm2, %v672_v57  ;;  %1459 = vmatprep.subr.bf16.mxu1 %v1011_v52  ;;  %v811_v43 = vpack.c.bf16 %v789_v34, %v786_v24  ;;  %v798_v35 = vsel %vm453_vm3, %v796_v41, %v797_v48  ;;  %v905_v53 = vpack.c.bf16 %v220_v51, %v1639_v54  ;;  %v1088_v59 = vrot.slane %v220_v51, 1 }
  0x30   : > { %1469 = vmatprep.subr.bf16.mxu0 %v1109_v60  ;;  %v792_v31 = vsel %vm453_vm3, %v790_v27, %v791_v30  ;;  %v813_v57 = vpack.c.bf16 %v801_v36, %v798_v35  ;;  %v995_v54 = vpack.c.bf16 %v1573_v16, %v1570_v15 }
  0x31   : > { %v812_v46 = vpack.c.bf16 %v795_v32, %v792_v31 }
  0x34   : > { %1436 = vmatmul.mubr.msk.bf16.gmra.mxu0 %vm272_vm2, %v673_v7 }
  0x35   : > { %1426 = vmatmul.mubr.msk.bf16.gmra.mxu1 %vm272_vm2, %v581_v21  ;;  %1451 = vmatprep.mubr.msk.bf16.mxu0 %vm272_vm2, %v902_v8 }
  0x36   : > { %1441 = vmatprep.mubr.msk.bf16.mxu1 %vm272_vm2, %v810_v23 }
  0x3c   : > { %1452 = vmatmul.mubr.msk.bf16.vlgmr.msra.gmra.mxu0 %vm272_vm2, %v903_v40 }
  0x3d   : > { %1442 = vmatmul.mubr.msk.bf16.vlgmr.msra.gmra.mxu1 %vm272_vm2, %v811_v43  ;;  %1470 = vmatpush3.bf16.msra.mxu0 %v1109_v60 }
  0x3e   : > { %1460 = vmatpush3.bf16.msra.mxu1 %v1011_v52  ;;  %1445 = vmatprep.mubr.msk.bf16.mxu1 %vm272_vm2, %v812_v46  ;;  %v221_v52 = vld [vmem:[%s1553_s27 + $0x88] sm:$0x1] }
  0x3f   : > { %1455 = vmatprep.mubr.msk.bf16.mxu0 %vm272_vm2, %v904_v50  ;;  %v1089_v12 = vrot.slane %v221_v52, 1 }
  0x41   : > { %v1090_v55 = vsel %vm453_vm3, %v1088_v59, %v1089_v12 }
  0x42   : > { %v1095_v15 = vpack.c.bf16 %v1090_v55, %v1675_v11 }
  0x44   : > { %1456 = vmatmul.mubr.msk.bf16.gmra.mxu0 %vm272_vm2, %v905_v53 }
  0x45   : > { %1446 = vmatmul.mubr.msk.bf16.gmra.mxu1 %vm272_vm2, %v813_v57  ;;  %1471 = vmatprep.mubr.msk.bf16.mxu0 %vm272_vm2, %v1092_v45 }
  0x46   : > { %1461 = vmatprep.mubr.msk.bf16.mxu1 %vm272_vm2, %v994_v47 }
  0x4c   : > { %1472 = vmatmul.mubr.msk.bf16.vlgmr.msra.gmra.mxu0 %vm272_vm2, %v1093_v58 }
  0x4d   : > { %1462 = vmatmul.mubr.msk.bf16.vlgmr.msra.gmra.mxu1 %vm272_vm2, %v995_v54  ;;  %1475 = vmatprep.mubr.msk.bf16.mxu0 %vm272_vm2, %v1094_v42 }
  0x4e   : > { %1465 = vmatprep.mubr.msk.bf16.mxu1 %vm272_vm2, %v996_v13 }
  0x54   : > { %1476 = vmatmul.mubr.msk.bf16.gmra.mxu0 %vm272_vm2, %v1095_v15 }
  0x55   : > { %1466 = vmatmul.mubr.msk.bf16.gmra.mxu1 %vm272_vm2, %v997_v37 }
  0xd4   : > { %v1393_v16 = vpop.f32.mrf.mxu0 }
  0xd5   : > { %v1397_v17 = vpop.f32.mrf.mxu1 }
  0xd6   : > { %v326_v18 = vpop.f32.mrf.mxu0 }
  0xd7   : > { %v342_v56 = vpop.f32.mrf.mxu1 }
  0xd8   : > { %v1394_v2 = vpop.f32.mrf.mxu0 }
  0xd9   : > { %v1398_v3 = vpop.f32.mrf.mxu1 }
  0xda   : > { %v329_v10 = vpop.f32.mrf.mxu0 }
  0xdb   : > { %v1780_v60 = vpop.f32.mrf.mxu1 }
  0xdc   : > { %v1413_v61 = vpop.f32.mrf.mxu0 }
  0xdd   : > { %v1403_v62 = vpop.f32.mrf.mxu1 }
  0xde   : > { %v539_v63 = vpop.f32.mrf.mxu0  ;;  %v415_v40 = vadd.f32 %v1403_v62, %v1393_v16 }
  0xdf   : > { %v406_v11 = vpop.f32.mrf.mxu1 }
  0xe0   : > { %v1414_v0 = vpop.f32.mrf.mxu0  ;;  %v407_v44 = vadd.f32 %v406_v11, %v326_v18  ;;  %v572_v49 = vadd.f32 %v1413_v61, %v415_v40 }
  0xe1   : > { %v1404_v1 = vpop.f32.mrf.mxu1 }
  0xe2   : > { %v542_v5 = vpop.f32.mrf.mxu0  ;;  %v418_v50 = vadd.f32 %v1404_v1, %v1394_v2  ;;  %v570_v36 = vadd.f32 %v539_v63, %v407_v44 }
  0xe3   : > { %v409_v4 = vpop.f32.mrf.mxu1 }
  0xe4   : > { %v1417_v19 = vpop.f32.mrf.mxu0  ;;  %v410_v53 = vadd.f32 %v409_v4, %v329_v10  ;;  %v573_v52 = vadd.f32 %v1414_v0, %v418_v50 }
  0xe5   : > { %v1407_v28 = vpop.f32.mrf.mxu1 }
  0xe6   : > { %v555_v37 = vpop.f32.mrf.mxu0  ;;  %v431_v59 = vadd.f32 %v1407_v28, %v1397_v17  ;;  %v571_v12 = vadd.f32 %v542_v5, %v410_v53 }
  0xe7   : > { %v422_v6 = vpop.f32.mrf.mxu1 }
  0xe8   : > { %v1418_v7 = vpop.f32.mrf.mxu0  ;;  %v423_v16 = vadd.f32 %v422_v6, %v342_v56  ;;  %v576_v11 = vadd.f32 %v1417_v19, %v431_v59 }
  0xe9   : > { %v1408_v9 = vpop.f32.mrf.mxu1 }
  0xea   : > { %v1782_v14 = vpop.f32.mrf.mxu0  ;;  %v434_v18 = vadd.f32 %v1408_v9, %v1398_v3  ;;  %v574_v5 = vadd.f32 %v555_v37, %v423_v16 }
  0xeb   : > { %v425_v20 = vpop.f32.mrf.mxu1 }
  0xec   : > { %v1433_v21 = vpop.f32.mrf.mxu0  ;;  %v426_v0 = vadd.f32 %v425_v20, %v1780_v60 }
  0xed   : > { %v1423_v8 = vpop.f32.mrf.mxu1 }
  0xee   : > { %v723_v22 = vpop.f32.mrf.mxu0  ;;  %v664_v57 = vadd.f32 %v1423_v8, %v572_v49  ;;  %v575_v19 = vadd.f32 %v1782_v14, %v426_v0 }
  0xef   : > { %v631_v23 = vpop.f32.mrf.mxu1 }
  0xf0   : > { %v1434_v25 = vpop.f32.mrf.mxu0  ;;  %v662_v58 = vadd.f32 %v631_v23, %v570_v36  ;;  %v756_v13 = vadd.f32 %v1433_v21, %v664_v57  ;;  %v577_v21 = vadd.f32 %v1418_v7, %v434_v18 }
  0xf1   : > { %v1424_v26 = vpop.f32.mrf.mxu1 }
  0xf2   : > { %v726_v27 = vpop.f32.mrf.mxu0  ;;  %v665_v55 = vadd.f32 %v1424_v26, %v573_v52  ;;  %v754_v61 = vadd.f32 %v723_v22, %v662_v58 }
  0xf3   : > { %v634_v29 = vpop.f32.mrf.mxu1 }
  0xf4   : > { %v1437_v30 = vpop.f32.mrf.mxu0  ;;  %v663_v62 = vadd.f32 %v634_v29, %v571_v12  ;;  %v757_v4 = vadd.f32 %v1434_v25, %v665_v55 }
  0xf5   : > { %v1427_v33 = vpop.f32.mrf.mxu1 }
  0xf6   : > { %v1784_v24 = vpop.f32.mrf.mxu0  ;;  %v668_v8 = vadd.f32 %v1427_v33, %v576_v11  ;;  %v755_v56 = vadd.f32 %v726_v27, %v663_v62  ;;  %v1802_v27 = vld [vmem:[%s1863_s2] ss:$0 sm:$0xff] }
  0xf7   : > { %v647_v34 = vpop.f32.mrf.mxu1 }
  0xf8   : > { %v1786_v31 = vpop.f32.mrf.mxu0  ;;  %v666_v22 = vadd.f32 %v647_v34, %v574_v5  ;;  %v760_v37 = vadd.f32 %v1437_v30, %v668_v8 }
  0xf9   : > { %v1428_v32 = vpop.f32.mrf.mxu1 }
  0xfa   : > { %v1788_v38 = vpop.f32.mrf.mxu0  ;;  %v669_v60 = vadd.f32 %v1428_v32, %v577_v21 }
  0xfb   : > { %v650_v39 = vpop.f32.mrf.mxu1 }
  0xfc   : > { %v1453_v41 = vpop.f32.mrf.mxu0  ;;  %v667_v7 = vadd.f32 %v650_v39, %v575_v19  ;;  %v761_v44 = vadd.f32 %v1786_v31, %v669_v60  ;;  %v1814_v39 = vld [vmem:[%s1864_s3] ss:$0 sm:$0xff] }
  0xfd   : > { %v1443_v43 = vpop.f32.mrf.mxu1 }
  0xfe   : > { %v955_v46 = vpop.f32.mrf.mxu0  ;;  %v896_v10 = vadd.f32 %v1443_v43, %v756_v13  ;;  %v758_v43 = vadd.f32 %v1784_v24, %v666_v22  ;;  %v759_v36 = vadd.f32 %v1788_v38, %v667_v7 }
  0xff   : > { %v863_v48 = vpop.f32.mrf.mxu1 }
 0x100   : > { %v1454_v51 = vpop.f32.mrf.mxu0  ;;  %v894_v17 = vadd.f32 %v863_v48, %v754_v61  ;;  %v988_v3 = vadd.f32 %v1453_v41, %v896_v10 }
 0x101   : > { %v1444_v35 = vpop.f32.mrf.mxu1 }
 0x102   : > { %v958_v45 = vpop.f32.mrf.mxu0  ;;  %v897_v6 = vadd.f32 %v1444_v35, %v757_v4  ;;  %v986_v25 = vadd.f32 %v955_v46, %v894_v17 }
 0x103   : > { %v866_v47 = vpop.f32.mrf.mxu1 }
 0x104   : > { %v1790_v54 = vpop.f32.mrf.mxu0  ;;  %v895_v26 = vadd.f32 %v866_v47, %v755_v56  ;;  %v989_v41 = vadd.f32 %v1454_v51, %v897_v6 }
 0x105   : > { %v1447_v42 = vpop.f32.mrf.mxu1 }
 0x106   : > { %v1792_v15 = vpop.f32.mrf.mxu0  ;;  %v900_v30 = vadd.f32 %v1447_v42, %v760_v37  ;;  %v987_v48 = vadd.f32 %v958_v45, %v895_v26 }
 0x107   : > { %v879_v2 = vpop.f32.mrf.mxu1 }
 0x108   : > { %v1458_v63 = vpop.f32.mrf.mxu0  ;;  %v898_v53 = vadd.f32 %v879_v2, %v758_v43  ;;  %v992_v45 = vadd.f32 %v1790_v54, %v900_v30 }
 0x109   : > { %v1448_v1 = vpop.f32.mrf.mxu1 }
 0x10a   : > { %v1795_v28 = vpop.f32.mrf.mxu0  ;;  %v901_v57 = vadd.f32 %v1448_v1, %v761_v44  ;;  %v990_v2 = vadd.f32 %v1792_v15, %v898_v53 }
 0x10b   : > { %v882_v23 = vpop.f32.mrf.mxu1 }
 0x10c   : > { %v1473_v9 = vpop.f32.mrf.mxu0  ;;  %v899_v42 = vadd.f32 %v882_v23, %v759_v36  ;;  %v993_v61 = vadd.f32 %v1458_v63, %v901_v57 }
 0x10d   : > { %v1463_v20 = vpop.f32.mrf.mxu1 }
 0x10e   : > { %v1080_v29 = vadd.f32 %v1463_v20, %v988_v3  ;;  %v1145_v40 = vpop.f32.mrf.mxu0  ;;  %v991_v4 = vadd.f32 %v1795_v28, %v899_v42 }
 0x10f   : > { %v1047_v33 = vpop.f32.mrf.mxu1 }
 0x110   : > { %v1178_v14 = vadd.f32 %v1473_v9, %v1080_v29  ;;  %v1078_v34 = vadd.f32 %v1047_v33, %v986_v25  ;;  %v1474_v32 = vpop.f32.mrf.mxu0 }
 0x111   : > { %v1464_v46 = vpop.f32.mrf.mxu1 }
 0x112   : > { %v1193_v49 = vmul.f32 %v1802_v27, %v1178_v14  ;;  %v1176_v50 = vadd.f32 %v1145_v40, %v1078_v34  ;;  %v1081_v51 = vadd.f32 %v1464_v46, %v989_v41  ;;  %v1148_v35 = vpop.f32.mrf.mxu0 }
 0x113   : > { %v1050_v24 = vpop.f32.mrf.mxu1 }
 0x114   : > { %v1208_v31 = vadd.f32 %v1814_v39, %v1193_v49  ;;  %v1191_v47 = vmul.f32 %v1802_v27, %v1176_v50  ;;  %v1179_v52 = vadd.f32 %v1474_v32, %v1081_v51  ;;  %v1079_v58 = vadd.f32 %v1050_v24, %v987_v48  ;;  %v1477_v59 = vpop.f32.mrf.mxu0 }
 0x115   : > { %v1467_v12 = vpop.f32.mrf.mxu1 }
 0x116   : > { %v1216_v13 = vmax.f32 %v1208_v31, 0.0  ;;  %v1206_v55 = vadd.f32 %v1814_v39, %v1191_v47  ;;  %v1194_v38 = vmul.f32 %v1802_v27, %v1179_v52  ;;  %v1177_v16 = vadd.f32 %v1148_v35, %v1079_v58  ;;  %v1161_v18 = vpop.f32.mrf.mxu0 }
 0x117   : > { %v1084_v54 = vadd.f32 %v1467_v12, %v992_v45  ;;  %v1063_v62 = vpop.f32.mrf.mxu1 }
 0x118   : > { %v1224_v10 = vpack.c.bf16 %v1216_v13, %v1216_v13  ;;  %v1214_v11 = vmax.f32 %v1206_v55, 0.0  ;;  %v1209_v0 = vadd.f32 %v1814_v39, %v1194_v38  ;;  %v1192_v1 = vmul.f32 %v1802_v27, %v1177_v16  ;;  %v1478_v5 = vpop.f32.mrf.mxu0 }
 0x119   : > { %v1182_v15 = vadd.f32 %v1477_v59, %v1084_v54  ;;  %v1082_v63 = vadd.f32 %v1063_v62, %v990_v2  ;;  %v1468_v17 = vpop.f32.mrf.mxu1 }
 0x11a   : > { %1233 = vst.msk [vmem:[%s1828_s22 + $0x8] sm:$0xf] %vm1230_vm4, %v1224_v10  ;;  %v1222_v21 = vpack.c.bf16 %v1214_v11, %v1214_v11  ;;  %v1217_v8 = vmax.f32 %v1209_v0, 0.0  ;;  %v1207_v23 = vadd.f32 %v1814_v39, %v1192_v1  ;;  %v1085_v56 = vadd.f32 %v1468_v17, %v993_v61  ;;  %v1164_v26 = vpop.f32.mrf.mxu0 }
 0x11b   : > { %v1197_v3 = vmul.f32 %v1802_v27, %v1182_v15  ;;  %v1180_v6 = vadd.f32 %v1161_v18, %v1082_v63  ;;  %v1066_v9 = vpop.f32.mrf.mxu1 }
 0x11c   : > { %1231 = vst.msk [vmem:[%s1828_s22] sm:$0xf] %vm1230_vm4, %v1222_v21  ;;  %v1225_v28 = vpack.c.bf16 %v1217_v8, %v1217_v8  ;;  %v1215_v19 = vmax.f32 %v1207_v23, 0.0  ;;  %v1183_v22 = vadd.f32 %v1478_v5, %v1085_v56  ;;  %v1083_v60 = vadd.f32 %v1066_v9, %v991_v4 }
 0x11d   : > { %v1212_v20 = vadd.f32 %v1814_v39, %v1197_v3  ;;  %v1195_v25 = vmul.f32 %v1802_v27, %v1180_v6 }
 0x11e   : > { %1234 = vst.msk [vmem:[%s1828_s22 + $0xc] sm:$0xf] %vm1230_vm4, %v1225_v28  ;;  %v1223_v29 = vpack.c.bf16 %v1215_v19, %v1215_v19  ;;  %v1198_v40 = vmul.f32 %v1802_v27, %v1183_v22  ;;  %v1181_v37 = vadd.f32 %v1164_v26, %v1083_v60 }
 0x11f   : > { %v1220_v7 = vmax.f32 %v1212_v20, 0.0  ;;  %v1210_v33 = vadd.f32 %v1814_v39, %v1195_v25 }
 0x120   : > { %1232 = vst.msk [vmem:[%s1828_s22 + $0x4] sm:$0xf] %vm1230_vm4, %v1223_v29  ;;  %v1213_v41 = vadd.f32 %v1814_v39, %v1198_v40  ;;  %v1196_v14 = vmul.f32 %v1802_v27, %v1181_v37 }
 0x121   : > { %v1228_v34 = vpack.c.bf16 %v1220_v7, %v1220_v7  ;;  %v1218_v32 = vmax.f32 %v1210_v33, 0.0 }
 0x122   : > { %v1221_v43 = vmax.f32 %v1213_v41, 0.0  ;;  %v1211_v44 = vadd.f32 %v1814_v39, %v1196_v14 }
 0x123   : > { %1237 = vst.msk [vmem:[%s1828_s22 + $0x18] sm:$0xf] %vm1230_vm4, %v1228_v34  ;;  %v1226_v30 = vpack.c.bf16 %v1218_v32, %v1218_v32 }
 0x124   : > { %v1229_v46 = vpack.c.bf16 %v1221_v43, %v1221_v43  ;;  %v1219_v48 = vmax.f32 %v1211_v44, 0.0 }
 0x125   : > { %1235 = vst.msk [vmem:[%s1828_s22 + $0x10] sm:$0xf] %vm1230_vm4, %v1226_v30 }
 0x126   : > { %1238 = vst.msk [vmem:[%s1828_s22 + $0x1c] sm:$0xf] %vm1230_vm4, %v1229_v46  ;;  %v1227_v49 = vpack.c.bf16 %v1219_v48, %v1219_v48 }
 0x128   : > { %1236 = vst.msk [vmem:[%s1828_s22 + $0x14] sm:$0xf] %vm1230_vm4, %v1227_v49 }
 0x129 PF: > { %s14_s15 = sadd.s32 1, %s1497_s15  }
 0x12a   : > { %p11_p5 = scmp.ge.s32.totalorder %s14_s15, 4  }
 0x12c   :  { %13 = sbr.rel (!%p11_p5) target bundleno = 1 (0x1), region = 66 }

// kernel: vgg_forward.6
= control target key start
LH: loop header
LB: loop body
LE: loop exit
PB: predicated region body
PF: predicated region fallthrough
CT: control target
= control target key end

     0   :  { %s1497_s24 = smov 0   ;;  %s1909_s0 = inlined_call_operand.vmem [shape: bf16[8,5,5,64], index: 0, kind: input, shape index: {}]   ;;  %s1910_s1 = inlined_call_operand.vmem [shape: f32[3,3,64], index: 1, kind: input, shape index: {}]   ;;  %s1911_s2 = inlined_call_operand.vmem [shape: f32[1,64], index: 2, kind: input, shape index: {}]   ;;  %s1912_s3 = inlined_call_operand.vmem [shape: f32[1,64], index: 3, kind: input, shape index: {}]   ;;  %s1913_s4 = inlined_call_operand.vmem [shape: bf16[64,1024], index: 4, kind: input, shape index: {}]   ;;  %s1914_s5 = inlined_call_operand.vmem [shape: f32[1,1024], index: 5, kind: input, shape index: {}]   ;;  %s1915_s6 = inlined_call_operand.vmem [shape: f32[1,1024], index: 6, kind: input, shape index: {}]   ;;  %s1916_s7 = inlined_call_operand.vmem [shape: bf16[2,4,4,1024], index: 7, kind: output, shape index: {}]  }
   0x1 LB: > { %s1503_s25 = sadd.s32 4294967295, %s1453_s24   ;;  %p1358_p0 = scmp.ge.s32.totalorder %s1453_s24, 1  ;;  %s1453_s24 = sphi %s1497_s24, %s17_s24  }
   0x2   : > { %p239_p1 = scmp.lt.s32.totalorder %s1453_s24, 3 }
   0x4   : > { %p240_p2 = pnand %p1358_p0, %p239_p1 }
   0x5   : > { %s1359_s9 = sshll.u32 (!%p240_p2), %s1503_s25, 2  ;;  %p279_p4 = scmp.lt.s32.totalorder (!%p240_p2), %s1503_s25, 1 }
   0x6   : > { %243 = sbr.rel (%p240_p2) target bundleno = 293 (0x125), region = 48  ;;  %p273_p3 = scmp.lt.s32.totalorder (!%p240_p2), %s1359_s9, 7 }
   0xb   : > { %v527_v0 = vld [vmem:[%s1913_s4 + $0xc0] sm:$0xff]  ;;  %v528_v2 = vld [vmem:[%s1913_s4 + $0xc8] sm:$0xff]  ;;  %v310_v3 = vlaneseq  ;;  %v1917_v9 = vmov 0   ;;  %s1921_s9 = smov (!%p273_p3, %s1359_s9), 7  ;;  %v1585_v29 = vld [vmem:[%s1913_s4 + $0xd0] sm:$0xff]  ;;  %vm695_vm0 = vcmask 523264  }
   0xc   : > { %v531_v1 = vld [vmem:[%s1913_s4 + $0xe0] sm:$0xff]  ;;  %v532_v5 = vld [vmem:[%s1913_s4 + $0xe8] sm:$0xff]  ;;  %731 = vmatprep.mubr.bf16.mxu0 %v1917_v9  ;;  %774 = vmatprep.mubr.bf16.mxu1 %v1917_v9  ;;  %v1590_v30 = vld [vmem:[%s1913_s4 + $0xf0] sm:$0xff]  ;;  %s1436_s20 = smul.u32 20, %s1921_s9  ;;  %s1923_s25 = smov (!%p279_p4, %s1503_s25), 1 }
   0xd   : > { %v1390_v4 = vcombine.high %v527_v0, %v531_v1  ;;  %v1389_v6 = vcombine.low %v527_v0, %v531_v1  ;;  %v519_v7 = vld [vmem:[%s1913_s4 + $0x80] sm:$0xff]  ;;  %v1392_v10 = vcombine.high %v528_v2, %v532_v5  ;;  %v1391_v11 = vcombine.low %v528_v2, %v532_v5  ;;  %v520_v13 = vld [vmem:[%s1913_s4 + $0x88] sm:$0xff]  ;;  %v1607_v36 = vld [vmem:[%s1913_s4 + $0xd8] sm:$0xff]  ;;  %s1435_s23 = sshll.u32 %s1923_s25, 6 }
   0xe   : > { %v523_v8 = vld [vmem:[%s1913_s4 + $0xa0] sm:$0xff]  ;;  %v524_v14 = vld [vmem:[%s1913_s4 + $0xa8] sm:$0xff]  ;;  %v1556_v20 = vshrl.u32 %v310_v3, 7  ;;  %v1612_v37 = vld [vmem:[%s1913_s4 + $0xf8] sm:$0xff]  ;;  %s1626_s30 = scalar_lea.vmem %s1909_s0, %s1436_s20  ;;  %v1394_v45 = vcombine.high %v1585_v29, %v1590_v30  ;;  %s1865_s25 = scalar_lea.vmem %s1916_s7, %s1435_s23 }
   0xf   : > { %v1382_v12 = vcombine.high %v519_v7, %v523_v8  ;;  %v1537_v15 = vld [vmem:[%s1913_s4 + $0x40] sm:$0xff]  ;;  %707 = vmatprep.subr.bf16.mxu0 %v1390_v4  ;;  %v1384_v16 = vcombine.high %v520_v13, %v524_v14  ;;  %v1547_v18 = vld [vmem:[%s1913_s4 + $0x48] sm:$0xff]  ;;  %750 = vmatprep.subr.bf16.mxu1 %v1392_v10  ;;  %v1381_v21 = vcombine.low %v519_v7, %v523_v8  ;;  %v1660_v53 = vld [vmem:[%s1626_s30 + $0x10] sm:$0x7] }
  0x10   : > { %v1542_v17 = vld [vmem:[%s1913_s4 + $0x60] sm:$0xff]  ;;  %v1552_v19 = vld [vmem:[%s1913_s4 + $0x68] sm:$0xff]  ;;  %708 = vmatpush1.bf16.msra.mxu0 %v1389_v6  ;;  %751 = vmatpush1.bf16.msra.mxu1 %v1391_v11  ;;  %v1383_v25 = vcombine.low %v520_v13, %v524_v14  ;;  %v1594_v31 = vsub.s32 0, %v1556_v20  ;;  %v1641_v44 = vsub.s32 1, %v1556_v20  ;;  %v1396_v46 = vcombine.high %v1607_v36, %v1612_v37  ;;  %v290_v54 = vld [vmem:[%s1626_s30 + $0x14] sm:$0x7] }
  0x11   : > { %v1561_v22 = vld [vmem:[%s1913_s4] sm:$0xff]  ;;  %v1571_v24 = vld [vmem:[%s1913_s4 + $0x8] sm:$0xff]  ;;  %709 = vmatprep.subr.bf16.mxu0 %v1382_v12  ;;  %v1374_v26 = vcombine.high %v1537_v15, %v1542_v17  ;;  %v1376_v27 = vcombine.high %v1547_v18, %v1552_v19  ;;  %752 = vmatprep.subr.bf16.mxu1 %v1384_v16  ;;  %v1373_v32 = vcombine.low %v1537_v15, %v1542_v17  ;;  %v1671_v59 = vld [vmem:[%s1626_s30 + $0x18] sm:$0x7]  ;;  %v322_v63 = vunpack.c.l.bf16 %v290_v54 }
  0x12   : > { %v1566_v23 = vld [vmem:[%s1913_s4 + $0x20] sm:$0xff]  ;;  %v1580_v28 = vld [vmem:[%s1913_s4 + $0x28] sm:$0xff]  ;;  %v1375_v33 = vcombine.low %v1547_v18, %v1552_v19  ;;  %v1674_v60 = vld [vmem:[%s1626_s30 + $0x1c] sm:$0x7]  ;;  %v418_v1 = vunpack.c.l.bf16 %v1660_v53  ;;  %v323_v7 = vunpack.c.l.bf16 %v1671_v59 }
  0x13   : > { %v1366_v34 = vcombine.high %v1561_v22, %v1566_v23  ;;  %v1365_v35 = vcombine.low %v1561_v22, %v1566_v23  ;;  %v1617_v38 = vld [vmem:[%s1910_s1] sm:$0x7]  ;;  %v1368_v39 = vcombine.high %v1571_v24, %v1580_v28  ;;  %v1367_v40 = vcombine.low %v1571_v24, %v1580_v28  ;;  %v1631_v41 = vld [vmem:[%s1910_s1 + $0x4] sm:$0x7]  ;;  %v1636_v42 = vld [vmem:[%s1910_s1 + $0x8] sm:$0x7] }
  0x14   : > { %v313_v43 = vrot.slane %v1617_v38, %v1594_v31  ;;  %710 = vmatpush1.bf16.msra.mxu0 %v1381_v21  ;;  %v1648_v47 = vld [vmem:[%s1626_s30] sm:$0x7]  ;;  %v286_v48 = vld [vmem:[%s1626_s30 + $0x4] sm:$0x7]  ;;  %v287_v49 = vld [vmem:[%s1626_s30 + $0x8] sm:$0x7]  ;;  %v369_v50 = vrot.slane %v1631_v41, %v1594_v31  ;;  %v1656_v51 = vrot.slane %v1636_v42, %v1594_v31  ;;  %753 = vmatpush1.bf16.msra.mxu1 %v1383_v25  ;;  %v324_v12 = vunpack.c.l.bf16 %v1674_v60 }
  0x15   : > { %711 = vmatprep.subr.bf16.mxu0 %v1374_v26  ;;  %v288_v52 = vld [vmem:[%s1626_s30 + $0xc] sm:$0x7]  ;;  %v306_v55 = vunpack.c.l.bf16 %v1648_v47  ;;  %v1664_v56 = vunpack.c.l.bf16 %v286_v48  ;;  %v1666_v57 = vunpack.c.l.bf16 %v287_v49  ;;  %v329_v58 = vrot.slane %v1617_v38, %v1641_v44  ;;  %754 = vmatprep.subr.bf16.mxu1 %v1376_v27  ;;  %v1677_v61 = vld [vmem:[%s1626_s30 + $0x20] sm:$0x7]  ;;  %v1685_v2 = vld [vmem:[%s1626_s30 + $0x28] sm:$0x7] }
  0x16   : > { %v1679_v62 = vunpack.c.l.bf16 %v288_v52  ;;  %v385_v0 = vrot.slane %v1631_v41, %v1641_v44  ;;  %v1688_v3 = vld [vmem:[%s1626_s30 + $0x2c] sm:$0x7]  ;;  %v297_v8 = vld [vmem:[%s1626_s30 + $0x30] sm:$0x7]  ;;  %v298_v10 = vld [vmem:[%s1626_s30 + $0x34] sm:$0x7]  ;;  %v325_v13 = vunpack.c.l.bf16 %v1677_v61  ;;  %v362_v17 = vunpack.c.l.bf16 %v1685_v2 }
  0x17   : > { %v314_v4 = vmul.f32 %v313_v43, %v306_v55  ;;  %v315_v5 = vmul.f32 %v313_v43, %v1664_v56  ;;  %v316_v6 = vmul.f32 %v313_v43, %v1666_v57  ;;  %v330_v14 = vmul.f32 %v329_v58, %v322_v63  ;;  %v299_v15 = vld [vmem:[%s1626_s30 + $0x3c] sm:$0x7]  ;;  %v300_v21 = vld [vmem:[%s1626_s30 + $0x40] sm:$0x7]  ;;  %v301_v25 = vld [vmem:[%s1626_s30 + $0x44] sm:$0x7] }
  0x18   : > { %712 = vmatpush1.bf16.msra.mxu0 %v1373_v32  ;;  %v317_v11 = vmul.f32 %v313_v43, %v1679_v62  ;;  %755 = vmatpush1.bf16.msra.mxu1 %v1375_v33  ;;  %v331_v16 = vmul.f32 %v329_v58, %v323_v7  ;;  %v363_v18 = vunpack.c.l.bf16 %v1688_v3  ;;  %v364_v19 = vunpack.c.l.bf16 %v297_v8 }
  0x19   : > { %713 = vmatprep.subr.bf16.mxu0 %v1366_v34  ;;  %756 = vmatprep.subr.bf16.mxu1 %v1368_v39  ;;  %v332_v26 = vmul.f32 %v329_v58, %v324_v12  ;;  %v333_v27 = vmul.f32 %v329_v58, %v325_v13  ;;  %v334_v32 = vadd.f32 %v330_v14, %v314_v4  ;;  %v1710_v33 = vsub.s32 2, %v1556_v20  ;;  %v302_v39 = vld [vmem:[%s1626_s30 + $0x48] sm:$0x7] }
  0x1a   : > { %v335_v34 = vadd.f32 %v331_v16, %v315_v5  ;;  %v365_v43 = vunpack.c.l.bf16 %v298_v10  ;;  %v370_v47 = vmul.f32 %v369_v50, %v362_v17  ;;  %v371_v48 = vmul.f32 %v369_v50, %v363_v18 }
  0x1b   : > { %v336_v49 = vadd.f32 %v332_v26, %v316_v6  ;;  %v337_v52 = vadd.f32 %v333_v27, %v317_v11  ;;  %v341_v54 = vrot.slane %v1617_v38, %v1710_v33  ;;  %v372_v63 = vmul.f32 %v369_v50, %v364_v19 }
  0x1c   : > { %714 = vmatpush1.bf16.msra.mxu0 %v1365_v35  ;;  %757 = vmatpush1.bf16.msra.mxu1 %v1367_v40  ;;  %v373_v58 = vmul.f32 %v369_v50, %v365_v43  ;;  %v378_v2 = vunpack.c.l.bf16 %v299_v15  ;;  %v379_v3 = vunpack.c.l.bf16 %v300_v21  ;;  %v380_v4 = vunpack.c.l.bf16 %v301_v25 }
  0x1d   : > { %793 = vmatprep.subr.bf16.mxu0 %v1394_v45  ;;  %836 = vmatprep.subr.bf16.mxu1 %v1396_v46  ;;  %v342_v22 = vmul.f32 %v341_v54, %v306_v55  ;;  %v343_v23 = vmul.f32 %v341_v54, %v1664_v56  ;;  %v344_v35 = vmul.f32 %v341_v54, %v1666_v57  ;;  %v381_v5 = vunpack.c.l.bf16 %v302_v39 }
  0x1e   : > { %v345_v38 = vmul.f32 %v341_v54, %v1679_v62  ;;  %v386_v6 = vmul.f32 %v385_v0, %v378_v2  ;;  %v387_v24 = vmul.f32 %v385_v0, %v379_v3  ;;  %v388_v28 = vmul.f32 %v385_v0, %v380_v4  ;;  %v294_v54 = vld [vmem:[%s1626_s30 + $0x24] sm:$0x7] }
  0x1f   : > { %v350_v40 = vrot.slane %v342_v22, 1  ;;  %v351_v45 = vrot.slane %v343_v23, 1  ;;  %v352_v50 = vrot.slane %v344_v35, 1  ;;  %v389_v10 = vmul.f32 %v385_v0, %v381_v5 }
  0x20   : > { %v353_v8 = vrot.slane %v345_v38, 1  ;;  %v397_v46 = vrot.slane %v1631_v41, %v1710_v33  ;;  %v423_v55 = vmul.f32 %v1656_v51, %v1664_v56  ;;  %v424_v11 = vmul.f32 %v1656_v51, %v1666_v57 }
  0x21   : > { %v358_v14 = vadd.f32 %v350_v40, %v334_v32  ;;  %v359_v15 = vadd.f32 %v351_v45, %v335_v34  ;;  %v360_v16 = vadd.f32 %v352_v50, %v336_v49  ;;  %v425_v34 = vmul.f32 %v1656_v51, %v1679_v62 }
  0x22   : > { %v361_v21 = vadd.f32 %v353_v8, %v337_v52  ;;  %v398_v25 = vmul.f32 %v397_v46, %v362_v17  ;;  %v399_v26 = vmul.f32 %v397_v46, %v363_v18  ;;  %v400_v27 = vmul.f32 %v397_v46, %v364_v19 }
  0x23   : > { %v401_v39 = vmul.f32 %v397_v46, %v365_v43  ;;  %v374_v2 = vadd.f32 %v370_v47, %v358_v14  ;;  %v375_v0 = vadd.f32 %v371_v48, %v359_v15  ;;  %v376_v3 = vadd.f32 %v372_v63, %v360_v16 }
  0x24   : > { %v377_v4 = vadd.f32 %v373_v58, %v361_v21  ;;  %v406_v41 = vrot.slane %v398_v25, 1  ;;  %v407_v22 = vrot.slane %v399_v26, 1  ;;  %v408_v23 = vrot.slane %v400_v27, 1 }
  0x25   : > { %v409_v35 = vrot.slane %v401_v39, 1  ;;  %v390_v38 = vadd.f32 %v386_v6, %v374_v2  ;;  %v391_v5 = vadd.f32 %v387_v24, %v375_v0  ;;  %v392_v9 = vadd.f32 %v388_v28, %v376_v3  ;;  %v521_v3 = vld [vmem:[%s1913_s4 + $0x90] sm:$0xff] }
  0x26   : > { %v393_v32 = vadd.f32 %v389_v10, %v377_v4  ;;  %v426_v17 = vmul.f32 %v1656_v51, %v418_v1  ;;  %v431_v18 = vunpack.c.l.bf16 %v294_v54  ;;  %v435_v19 = vrot.slane %v1636_v42, %v1641_v44  ;;  %v525_v4 = vld [vmem:[%s1913_s4 + $0xb0] sm:$0xff] }
  0x27   : > { %v414_v43 = vadd.f32 %v406_v41, %v390_v38  ;;  %v415_v47 = vadd.f32 %v407_v22, %v391_v5  ;;  %v416_v48 = vadd.f32 %v408_v23, %v392_v9  ;;  %v447_v45 = vrot.slane %v1636_v42, %v1710_v33  ;;  %v1363_v42 = vld [vmem:[%s1911_s2] ss:$0 sm:$0xff]  ;;  %v522_v41 = vld [vmem:[%s1913_s4 + $0x98] sm:$0xff] }
  0x28   : > { %v417_v49 = vadd.f32 %v409_v35, %v393_v32  ;;  %v436_v52 = vmul.f32 %v435_v19, %v323_v7  ;;  %v437_v63 = vmul.f32 %v435_v19, %v324_v12  ;;  %v438_v58 = vmul.f32 %v435_v19, %v325_v13  ;;  %v526_v22 = vld [vmem:[%s1913_s4 + $0xb8] sm:$0xff] }
  0x29   : > { %v439_v6 = vmul.f32 %v435_v19, %v431_v18  ;;  %v427_v24 = vadd.f32 %v423_v55, %v414_v43  ;;  %v428_v51 = vadd.f32 %v424_v11, %v415_v47  ;;  %v429_v28 = vadd.f32 %v425_v34, %v416_v48  ;;  %v513_v18 = vld [vmem:[%s1913_s4 + $0x50] sm:$0xff]  ;;  %v514_v43 = vld [vmem:[%s1913_s4 + $0x58] sm:$0xff] }
  0x2a   : > { %v430_v40 = vadd.f32 %v426_v17, %v417_v49  ;;  %v448_v59 = vmul.f32 %v447_v45, %v1664_v56  ;;  %v449_v60 = vmul.f32 %v447_v45, %v1666_v57  ;;  %v450_v7 = vmul.f32 %v447_v45, %v1679_v62  ;;  %v1364_v56 = vld [vmem:[%s1912_s3] ss:$0 sm:$0xff]  ;;  %v517_v19 = vld [vmem:[%s1913_s4 + $0x70] sm:$0xff] }
  0x2b   : > { %v440_v50 = vadd.f32 %v436_v52, %v427_v24  ;;  %v441_v9 = vadd.f32 %v437_v63, %v428_v51  ;;  %v442_v8 = vadd.f32 %v438_v58, %v429_v28  ;;  %v451_v61 = vmul.f32 %v447_v45, %v418_v1  ;;  %v505_v48 = vld [vmem:[%s1913_s4 + $0x10] sm:$0xff]  ;;  %v506_v52 = vld [vmem:[%s1913_s4 + $0x18] sm:$0xff] }
  0x2c   : > { %v443_v10 = vadd.f32 %v439_v6, %v430_v40  ;;  %v456_v12 = vrot.slane %v448_v59, 1  ;;  %v457_v13 = vrot.slane %v449_v60, 1  ;;  %v458_v46 = vrot.slane %v450_v7, 1  ;;  %v509_v49 = vld [vmem:[%s1913_s4 + $0x30] sm:$0xff]  ;;  %v510_v63 = vld [vmem:[%s1913_s4 + $0x38] sm:$0xff]  ;;  %v1815_v59 = vld [vmem:[%s1915_s6] sm:$0xff] }
  0x2d   : > { %v459_v55 = vrot.slane %v451_v61, 1  ;;  %v1393_v38 = vcombine.low %v1585_v29, %v1590_v30  ;;  %v1395_v5 = vcombine.low %v1607_v36, %v1612_v37  ;;  %v1386_v34 = vcombine.high %v521_v3, %v525_v4  ;;  %v518_v29 = vld [vmem:[%s1913_s4 + $0x78] sm:$0xff] }
  0x2e   : > { %v464_v11 = vadd.f32 %v456_v12, %v440_v50  ;;  %v465_v14 = vadd.f32 %v457_v13, %v441_v9  ;;  %v466_v15 = vadd.f32 %v458_v46, %v442_v8  ;;  %v1388_v17 = vcombine.high %v522_v41, %v526_v22  ;;  %v1809_v50 = vld [vmem:[%s1914_s5] sm:$0xff] }
  0x2f   : > { %v467_v16 = vadd.f32 %v459_v55, %v443_v10  ;;  %v1385_v30 = vcombine.low %v521_v3, %v525_v4  ;;  %v1387_v36 = vcombine.low %v522_v41, %v526_v22  ;;  %v1378_v37 = vcombine.high %v513_v18, %v517_v19 }
  0x30   : > { %v475_v57 = vmul.f32 %v1363_v42, %v464_v11  ;;  %v476_v62 = vmul.f32 %v1363_v42, %v465_v14  ;;  %v477_v53 = vmul.f32 %v1363_v42, %v466_v15  ;;  %v1380_v47 = vcombine.high %v514_v43, %v518_v29 }
  0x31   : > { %v478_v1 = vmul.f32 %v1363_v42, %v467_v16  ;;  %v1919_v58 = vmov 0   ;;  %v1377_v6 = vcombine.low %v513_v18, %v517_v19  ;;  %v1379_v24 = vcombine.low %v514_v43, %v518_v29 }
  0x32   : > { %v486_v21 = vadd.f32 %v1364_v56, %v475_v57  ;;  %v487_v25 = vadd.f32 %v1364_v56, %v476_v62  ;;  %v488_v26 = vadd.f32 %v1364_v56, %v477_v53  ;;  %v1370_v51 = vcombine.high %v505_v48, %v509_v49 }
  0x33   : > { %v489_v27 = vadd.f32 %v1364_v56, %v478_v1  ;;  %v1372_v28 = vcombine.high %v506_v52, %v510_v63  ;;  %v1369_v40 = vcombine.low %v505_v48, %v509_v49  ;;  %v1371_v45 = vcombine.low %v506_v52, %v510_v63 }
  0x34   : > { %v490_v39 = vmax.f32 %v486_v21, 0.0  ;;  %v491_v54 = vmax.f32 %v487_v25, 0.0  ;;  %v492_v2 = vmax.f32 %v488_v26, 0.0  ;;  %v887_v9 = vsub.s32 3, %v1556_v20 }
  0x35   : > { %v493_v0 = vmax.f32 %v489_v27, 0.0  ;;  %v1456_v8 = vmov 1983009808   ;;  %v876_v60 = vrot.slane %v1809_v50, %v1594_v31  ;;  %v884_v7 = vrot.slane %v1809_v50, %v1710_v33 }
  0x36   : > { %v498_v23 = vcombine.low %v490_v39, %v491_v54  ;;  %v1150_v10 = vunpack.c.l.s4 %v1456_v8  ;;  %v934_v61 = vrot.slane %v1815_v59, %v1594_v31  ;;  %v880_v12 = vrot.slane %v1809_v50, %v1641_v44 }
  0x37   : > { %v499_v35 = vcombine.low %v492_v2, %v493_v0  ;;  %v888_v13 = vrot.slane %v1809_v50, %v887_v9  ;;  %v942_v11 = vrot.slane %v1815_v59, %v1710_v33  ;;  %v938_v14 = vrot.slane %v1815_v59, %v1641_v44 }
  0x38   : > { %v1151_v46 = vunpack.c.0.s8 %v1150_v10  ;;  %v946_v15 = vrot.slane %v1815_v59, %v887_v9  ;;  %v891_v31 = vsub.s32 4, %v1556_v20  ;;  %v899_v57 = vsub.s32 6, %v1556_v20 }
  0x39   : > { %v502_v32 = vpack.c.bf16 %v499_v35, %v498_v23  ;;  %v895_v23 = vsub.s32 5, %v1556_v20  ;;  %v903_v35 = vsub.s32 7, %v1556_v20 }
  0x3a   : > { %v1834_v26 = vsub.s32 %v1151_v46, %v1556_v20  ;;  %v1838_v2 = vrot.slane %v1809_v50, %v891_v31  ;;  %v1841_v0 = vrot.slane %v1809_v50, %v899_v57  ;;  %v1844_v22 = vrot.slane %v1815_v59, %v891_v31 }
  0x3b   : > { %1397 = vmatmul.mubr.msk.bf16.vlgmr.msra.gmra.mxu0 %vm695_vm0, %v502_v32  ;;  %1398 = vmatmul.mubr.msk.bf16.vlgmr.msra.gmra.mxu1 %vm695_vm0, %v502_v32  ;;  %v896_v10 = vrot.slane %v1809_v50, %v895_v23  ;;  %v1868_v46 = vrot.slane %v1815_v59, %v895_v23 }
  0x3c   : > { %794 = vmatpush1.bf16.msra.mxu0 %v1393_v38  ;;  %837 = vmatpush1.bf16.msra.mxu1 %v1395_v5 }
  0x3d   : > { %795 = vmatprep.subr.bf16.mxu0 %v1386_v34  ;;  %838 = vmatprep.subr.bf16.mxu1 %v1388_v17 }
  0x3e   : > { %817 = vmatprep.mubr.bf16.mxu0 %v1919_v58  ;;  %860 = vmatprep.mubr.bf16.mxu1 %v1919_v58 }
  0x40   : > { %796 = vmatpush1.bf16.msra.mxu0 %v1385_v30  ;;  %839 = vmatpush1.bf16.msra.mxu1 %v1387_v36 }
  0x41   : > { %797 = vmatprep.subr.bf16.mxu0 %v1378_v37  ;;  %840 = vmatprep.subr.bf16.mxu1 %v1380_v47 }
  0x44   : > { %798 = vmatpush1.bf16.msra.mxu0 %v1377_v6  ;;  %841 = vmatpush1.bf16.msra.mxu1 %v1379_v24  ;;  %v1854_v6 = vrot.slane %v1815_v59, %v899_v57 }
  0x45   : > { %799 = vmatprep.subr.bf16.mxu0 %v1370_v51  ;;  %842 = vmatprep.subr.bf16.mxu1 %v1372_v28 }
  0x48   : > { %800 = vmatpush1.bf16.msra.mxu0 %v1369_v40  ;;  %843 = vmatpush1.bf16.msra.mxu1 %v1371_v45 }
  0x4b   : > { %1399 = vmatmul.mubr.msk.bf16.vlgmr.msra.gmra.mxu0 %vm695_vm0, %v502_v32  ;;  %1400 = vmatmul.mubr.msk.bf16.vlgmr.msra.gmra.mxu1 %vm695_vm0, %v502_v32 }
  0xfb   : > { %v733_v55 = vpop.f32.mrf.mxu0  ;;  %v776_v42 = vpop.f32.mrf.mxu1 }
  0xfc   : > { %v913_v16 = vmul.f32 %v876_v60, %v733_v55  ;;  %v915_v56 = vmul.f32 %v884_v7, %v776_v42  ;;  %v904_v55 = vrot.slane %v1809_v50, %v903_v35  ;;  %v1872_v42 = vrot.slane %v1815_v59, %v903_v35 }
  0xfd   : > { %v735_v62 = vpop.f32.mrf.mxu0  ;;  %v778_v53 = vpop.f32.mrf.mxu1 }
  0xfe   : > { %v971_v1 = vadd.f32 %v934_v61, %v913_v16  ;;  %v914_v21 = vmul.f32 %v880_v12, %v735_v62  ;;  %v916_v25 = vmul.f32 %v888_v13, %v778_v53  ;;  %v973_v33 = vadd.f32 %v942_v11, %v915_v56 }
  0xff   : > { %v737_v27 = vpop.f32.mrf.mxu0  ;;  %v780_v44 = vpop.f32.mrf.mxu1 }
 0x100   : > { %v972_v39 = vadd.f32 %v938_v14, %v914_v21  ;;  %v974_v54 = vadd.f32 %v946_v15, %v916_v25  ;;  %v921_v3 = vmul.f32 %v876_v60, %v737_v27  ;;  %v987_v38 = vmax.f32 %v971_v1, 0.0 }
 0x101   : > { %v739_v4 = vpop.f32.mrf.mxu0  ;;  %v782_v41 = vpop.f32.mrf.mxu1  ;;  %v923_v34 = vmul.f32 %v884_v7, %v780_v44  ;;  %v989_v17 = vmax.f32 %v973_v33, 0.0 }
 0x102   : > { %v988_v5 = vmax.f32 %v972_v39, 0.0  ;;  %v990_v32 = vmax.f32 %v974_v54, 0.0  ;;  %v979_v18 = vadd.f32 %v934_v61, %v921_v3  ;;  %v922_v19 = vmul.f32 %v880_v12, %v739_v4 }
 0x103   : > { %v924_v43 = vmul.f32 %v888_v13, %v782_v41  ;;  %v981_v58 = vadd.f32 %v942_v11, %v923_v34 }
 0x104   : > { %v1019_v29 = vcombine.low %v987_v38, %v988_v5  ;;  %v1020_v30 = vcombine.high %v987_v38, %v988_v5  ;;  %v1401_v36 = vcombine.low %v988_v5, %v988_v5  ;;  %v1405_v37 = vcombine.high %v988_v5, %v988_v5 }
 0x105   : > { %v1021_v47 = vcombine.low %v989_v17, %v990_v32  ;;  %v1022_v48 = vcombine.high %v989_v17, %v990_v32  ;;  %v1402_v49 = vcombine.low %v990_v32, %v990_v32  ;;  %v1406_v20 = vcombine.high %v990_v32, %v990_v32 }
 0x106   : > { %v1417_v52 = vpack.c.bf16 %v1401_v36, %v1019_v29  ;;  %v1421_v63 = vpack.c.bf16 %v1405_v37, %v1020_v30  ;;  %v980_v28 = vadd.f32 %v938_v14, %v922_v19  ;;  %v982_v40 = vadd.f32 %v946_v15, %v924_v43 }
 0x107   : > { %v1418_v24 = vpack.c.bf16 %v1402_v49, %v1021_v47  ;;  %v1422_v51 = vpack.c.bf16 %v1406_v20, %v1022_v48  ;;  %v995_v8 = vmax.f32 %v979_v18, 0.0  ;;  %v997_v13 = vmax.f32 %v981_v58, 0.0 }
 0x108   : > { %v1155_v45 = vrot.slane %v1417_v52, %v1834_v26  ;;  %v1189_v9 = vrot.slane %v1421_v63, %v1834_v26  ;;  %v996_v61 = vmax.f32 %v980_v28, 0.0  ;;  %v998_v12 = vmax.f32 %v982_v40, 0.0 }
 0x109   : > { %v1162_v60 = vrot.slane %v1418_v24, %v1834_v26  ;;  %v1196_v7 = vrot.slane %v1422_v51, %v1834_v26 }
 0x10a   : > { %v1027_v15 = vcombine.low %v995_v8, %v996_v61  ;;  %v1028_v16 = vcombine.high %v995_v8, %v996_v61  ;;  %v1409_v57 = vcombine.low %v996_v61, %v996_v61  ;;  %v1413_v62 = vcombine.high %v996_v61, %v996_v61 }
 0x10b   : > { %v1163_v11 = vcombine.low %v1155_v45, %v1162_v60  ;;  %v1197_v14 = vcombine.low %v1189_v9, %v1196_v7  ;;  %v819_v56 = vpop.f32.mrf.mxu0  ;;  %v862_v31 = vpop.f32.mrf.mxu1  ;;  %v1029_v53 = vcombine.low %v997_v13, %v998_v12  ;;  %v1030_v1 = vcombine.high %v997_v13, %v998_v12 }
 0x10c   : > { %v1410_v21 = vcombine.low %v998_v12, %v998_v12  ;;  %v1414_v25 = vcombine.high %v998_v12, %v998_v12  ;;  %v917_v33 = vmul.f32 %v1838_v2, %v819_v56  ;;  %v919_v50 = vmul.f32 %v1841_v0, %v862_v31 }
 0x10d   : > { %1291 = vst [vmem:[%s1865_s25] sm:$0xff] %v1163_v11  ;;  %1293 = vst [vmem:[%s1865_s25 + $0x10] sm:$0xff] %v1197_v14  ;;  %v821_v59 = vpop.f32.mrf.mxu0  ;;  %v864_v27 = vpop.f32.mrf.mxu1  ;;  %v1425_v44 = vpack.c.bf16 %v1409_v57, %v1027_v15  ;;  %v1429_v39 = vpack.c.bf16 %v1413_v62, %v1028_v16 }
 0x10e   : > { %v918_v54 = vmul.f32 %v896_v10, %v821_v59  ;;  %v920_v3 = vmul.f32 %v904_v55, %v864_v27  ;;  %v1426_v4 = vpack.c.bf16 %v1410_v21, %v1029_v53  ;;  %v1430_v41 = vpack.c.bf16 %v1414_v25, %v1030_v1 }
 0x10f   : > { %v975_v23 = vadd.f32 %v1844_v22, %v917_v33  ;;  %v977_v35 = vadd.f32 %v1854_v6, %v919_v50  ;;  %v823_v38 = vpop.f32.mrf.mxu0  ;;  %v866_v5 = vpop.f32.mrf.mxu1  ;;  %v1223_v32 = vrot.slane %v1425_v44, %v1834_v26  ;;  %v1257_v34 = vrot.slane %v1429_v39, %v1834_v26 }
 0x110   : > { %v976_v17 = vadd.f32 %v1868_v46, %v918_v54  ;;  %v978_v18 = vadd.f32 %v1872_v42, %v920_v3  ;;  %v1230_v19 = vrot.slane %v1426_v4, %v1834_v26  ;;  %v1264_v43 = vrot.slane %v1430_v41, %v1834_v26 }
 0x111   : > { %v991_v29 = vmax.f32 %v975_v23, 0.0  ;;  %v993_v30 = vmax.f32 %v977_v35, 0.0  ;;  %v825_v36 = vpop.f32.mrf.mxu0  ;;  %v868_v37 = vpop.f32.mrf.mxu1  ;;  %v925_v49 = vmul.f32 %v1838_v2, %v823_v38  ;;  %v927_v20 = vmul.f32 %v1841_v0, %v866_v5 }
 0x112   : > { %v992_v47 = vmax.f32 %v976_v17, 0.0  ;;  %v994_v48 = vmax.f32 %v978_v18, 0.0  ;;  %v1231_v52 = vcombine.low %v1223_v32, %v1230_v19  ;;  %v1265_v63 = vcombine.low %v1257_v34, %v1264_v43 }
 0x113   : > { %v926_v58 = vmul.f32 %v896_v10, %v825_v36  ;;  %v928_v24 = vmul.f32 %v904_v55, %v868_v37  ;;  %v983_v2 = vadd.f32 %v1844_v22, %v925_v49  ;;  %v985_v0 = vadd.f32 %v1854_v6, %v927_v20 }
 0x114   : > { %v1023_v51 = vcombine.low %v991_v29, %v992_v47  ;;  %v1024_v28 = vcombine.high %v991_v29, %v992_v47  ;;  %v1403_v40 = vcombine.low %v992_v47, %v992_v47  ;;  %v1407_v45 = vcombine.high %v992_v47, %v992_v47  ;;  %1295 = vst [vmem:[%s1865_s25 + $0x20] sm:$0xff] %v1231_v52 }
 0x115   : > { %1297 = vst [vmem:[%s1865_s25 + $0x30] sm:$0xff] %v1265_v63  ;;  %v1025_v9 = vcombine.low %v993_v30, %v994_v48  ;;  %v1026_v8 = vcombine.high %v993_v30, %v994_v48  ;;  %v1404_v60 = vcombine.low %v994_v48, %v994_v48  ;;  %v1408_v7 = vcombine.high %v994_v48, %v994_v48 }
 0x116   : > { %v1419_v61 = vpack.c.bf16 %v1403_v40, %v1023_v51  ;;  %v1423_v12 = vpack.c.bf16 %v1407_v45, %v1024_v28  ;;  %v984_v10 = vadd.f32 %v1868_v46, %v926_v58  ;;  %v986_v55 = vadd.f32 %v1872_v42, %v928_v24 }
 0x117   : > { %v1420_v13 = vpack.c.bf16 %v1404_v60, %v1025_v9  ;;  %v1424_v11 = vpack.c.bf16 %v1408_v7, %v1026_v8  ;;  %v999_v16 = vmax.f32 %v983_v2, 0.0  ;;  %v1001_v6 = vmax.f32 %v985_v0, 0.0 }
 0x118   : > { %v1172_v14 = vrot.slane %v1419_v61, %v1834_v26  ;;  %v1206_v15 = vrot.slane %v1423_v12, %v1834_v26  ;;  %v1000_v22 = vmax.f32 %v984_v10, 0.0  ;;  %v1002_v57 = vmax.f32 %v986_v55, 0.0 }
 0x119   : > { %v1179_v56 = vrot.slane %v1420_v13, %v1834_v26  ;;  %v1213_v31 = vrot.slane %v1424_v11, %v1834_v26 }
 0x11a   : > { %v1031_v1 = vcombine.low %v999_v16, %v1000_v22  ;;  %v1032_v46 = vcombine.high %v999_v16, %v1000_v22  ;;  %v1411_v21 = vcombine.low %v1000_v22, %v1000_v22  ;;  %v1415_v42 = vcombine.high %v1000_v22, %v1000_v22 }
 0x11b   : > { %v1180_v62 = vcombine.low %v1172_v14, %v1179_v56  ;;  %v1214_v53 = vcombine.low %v1206_v15, %v1213_v31  ;;  %v1033_v25 = vcombine.low %v1001_v6, %v1002_v57  ;;  %v1034_v33 = vcombine.high %v1001_v6, %v1002_v57 }
 0x11c   : > { %v1412_v50 = vcombine.low %v1002_v57, %v1002_v57  ;;  %v1416_v59 = vcombine.high %v1002_v57, %v1002_v57  ;;  %v1427_v27 = vpack.c.bf16 %v1411_v21, %v1031_v1  ;;  %v1431_v44 = vpack.c.bf16 %v1415_v42, %v1032_v46 }
 0x11d   : > { %1292 = vst [vmem:[%s1865_s25 + $0x8] sm:$0xff] %v1180_v62  ;;  %1294 = vst [vmem:[%s1865_s25 + $0x18] sm:$0xff] %v1214_v53 }
 0x11e   : > { %v1428_v39 = vpack.c.bf16 %v1412_v50, %v1033_v25  ;;  %v1432_v54 = vpack.c.bf16 %v1416_v59, %v1034_v33  ;;  %v1240_v3 = vrot.slane %v1427_v27, %v1834_v26  ;;  %v1274_v4 = vrot.slane %v1431_v44, %v1834_v26 }
 0x120   : > { %v1247_v41 = vrot.slane %v1428_v39, %v1834_v26  ;;  %v1281_v23 = vrot.slane %v1432_v54, %v1834_v26 }
 0x122   : > { %v1248_v35 = vcombine.low %v1240_v3, %v1247_v41  ;;  %v1282_v38 = vcombine.low %v1274_v4, %v1281_v23 }
 0x124   : > { %1296 = vst [vmem:[%s1865_s25 + $0x28] sm:$0xff] %v1248_v35  ;;  %1298 = vst [vmem:[%s1865_s25 + $0x38] sm:$0xff] %v1282_v38 }
 0x125 PF: > { %s17_s24 = sadd.s32 1, %s1453_s24  }
 0x126   : > { %p14_p5 = scmp.ge.s32.totalorder %s17_s24, 4  }
 0x128   :  { %16 = sbr.rel (!%p14_p5) target bundleno = 1 (0x1), region = 78 }

// kernel: vgg_forward.7
= control target key start
LH: loop header
LB: loop body
LE: loop exit
PB: predicated region body
PF: predicated region fallthrough
CT: control target
= control target key end

     0   :  { %vm376_vm0 = vcmask 1041409   ;;  %s1475_s0 = inlined_call_operand.vmem [shape: bf16[2,16,1024], index: 0, kind: input, shape index: {}]   ;;  %s1476_s1 = inlined_call_operand.vmem [shape: bf16[1024,128], index: 1, kind: input, shape index: {}]   ;;  %s1477_s2 = inlined_call_operand.vmem [shape: f32[1,128], index: 2, kind: input, shape index: {}]   ;;  %s1478_s3 = inlined_call_operand.hbm [shape: f32[2,128], index: 3, kind: output, shape index: {}]  }
   0x1   :  { %v1114_v0 = vld [vmem:[%s1476_s1 + $0x78] sm:$0xff]   ;;  %v1118_v4 = vld [vmem:[%s1476_s1 + $0x70] sm:$0xff]   ;;  %v1122_v8 = vld [vmem:[%s1476_s1 + $0x68] sm:$0xff]  }
   0x2   :  { %v1115_v1 = vld [vmem:[%s1476_s1 + $0xf8] sm:$0xff]   ;;  %1025 = vmatprep.subr.bf16.mxu0 %v1114_v0  ;;  %v1119_v5 = vld [vmem:[%s1476_s1 + $0xf0] sm:$0xff]   ;;  %v1123_v9 = vld [vmem:[%s1476_s1 + $0xe8] sm:$0xff]  }
   0x3   :  { %v1116_v2 = vld [vmem:[%s1476_s1 + $0x38] sm:$0xff]   ;;  %1047 = vmatprep.subr.bf16.mxu1 %v1115_v1  ;;  %v1120_v6 = vld [vmem:[%s1476_s1 + $0x30] sm:$0xff]   ;;  %v1124_v10 = vld [vmem:[%s1476_s1 + $0x28] sm:$0xff]  }
   0x4   :  { %v1117_v3 = vld [vmem:[%s1476_s1 + $0xb8] sm:$0xff]   ;;  %1026 = vmatpush3.bf16.msra.mxu0 %v1116_v2  ;;  %v1121_v7 = vld [vmem:[%s1476_s1 + $0xb0] sm:$0xff]   ;;  %v1125_v11 = vld [vmem:[%s1476_s1 + $0xa8] sm:$0xff]  }
   0x5   :  { %1048 = vmatpush3.bf16.msra.mxu1 %v1117_v3  ;;  %1027 = vmatprep.subr.bf16.mxu0 %v1118_v4  ;;  %v1126_v12 = vld [vmem:[%s1476_s1 + $0x60] sm:$0xff]   ;;  %v1130_v16 = vld [vmem:[%s1476_s1 + $0x58] sm:$0xff]   ;;  %v1134_v20 = vld [vmem:[%s1476_s1 + $0x50] sm:$0xff]  }
   0x6   :  { %1049 = vmatprep.subr.bf16.mxu1 %v1119_v5  ;;  %v1127_v13 = vld [vmem:[%s1476_s1 + $0xe0] sm:$0xff]   ;;  %v1131_v17 = vld [vmem:[%s1476_s1 + $0xd8] sm:$0xff]   ;;  %v1135_v21 = vld [vmem:[%s1476_s1 + $0xd0] sm:$0xff]  }
   0x7   :  { %v1128_v14 = vld [vmem:[%s1476_s1 + $0x20] sm:$0xff]   ;;  %v1132_v18 = vld [vmem:[%s1476_s1 + $0x18] sm:$0xff]   ;;  %v1136_v22 = vld [vmem:[%s1476_s1 + $0x10] sm:$0xff]  }
   0x8   :  { %1028 = vmatpush3.bf16.msra.mxu0 %v1120_v6  ;;  %v1129_v15 = vld [vmem:[%s1476_s1 + $0xa0] sm:$0xff]   ;;  %v1133_v19 = vld [vmem:[%s1476_s1 + $0x98] sm:$0xff]   ;;  %v1137_v23 = vld [vmem:[%s1476_s1 + $0x90] sm:$0xff]  }
   0x9   :  { %1050 = vmatpush3.bf16.msra.mxu1 %v1121_v7  ;;  %1029 = vmatprep.subr.bf16.mxu0 %v1122_v8  ;;  %v1138_v24 = vld [vmem:[%s1476_s1 + $0x48] sm:$0xff]   ;;  %v1142_v28 = vld [vmem:[%s1476_s1 + $0x40] sm:$0xff]   ;;  %v1146_v52 = vld [vmem:[%s1476_s1 + $0x178] sm:$0xff]  }
   0xa   :  { %1051 = vmatprep.subr.bf16.mxu1 %v1123_v9  ;;  %v1139_v25 = vld [vmem:[%s1476_s1 + $0xc8] sm:$0xff]   ;;  %v1143_v29 = vld [vmem:[%s1476_s1 + $0xc0] sm:$0xff]   ;;  %v1147_v57 = vld [vmem:[%s1476_s1 + $0x1f8] sm:$0xff]  }
   0xb   :  { %v1140_v26 = vld [vmem:[%s1476_s1 + $0x8] sm:$0xff]   ;;  %v1144_v30 = vld [vmem:[%s1476_s1] sm:$0xff]  }
   0xc   :  { %1030 = vmatpush3.bf16.msra.mxu0 %v1124_v10  ;;  %v1141_v27 = vld [vmem:[%s1476_s1 + $0x88] sm:$0xff]   ;;  %v1145_v31 = vld [vmem:[%s1476_s1 + $0x80] sm:$0xff]  }
   0xd   :  { %1052 = vmatpush3.bf16.msra.mxu1 %v1125_v11  ;;  %1031 = vmatprep.subr.bf16.mxu0 %v1126_v12  ;;  %v16_v32 = vld [vmem:[%s1475_s0] sm:$0xff]  ;;  %v17_v40 = vld [vmem:[%s1475_s0 + $0x8] sm:$0xff] }
   0xe   :  { %1053 = vmatprep.subr.bf16.mxu1 %v1127_v13  ;;  %v20_v33 = vld [vmem:[%s1475_s0 + $0x20] sm:$0xff]  ;;  %v32_v36 = vunpack.c.l.bf16 %v16_v32  ;;  %v33_v37 = vunpack.c.h.bf16 %v16_v32  ;;  %v21_v41 = vld [vmem:[%s1475_s0 + $0x28] sm:$0xff]  ;;  %v34_v49 = vunpack.c.l.bf16 %v17_v40  ;;  %v35_v50 = vunpack.c.h.bf16 %v17_v40 }
   0xf   :  { %v24_v34 = vld [vmem:[%s1475_s0 + $0x40] sm:$0xff]  ;;  %v40_v38 = vunpack.c.l.bf16 %v20_v33  ;;  %v41_v39 = vunpack.c.h.bf16 %v20_v33  ;;  %v25_v46 = vld [vmem:[%s1475_s0 + $0x48] sm:$0xff]  ;;  %v42_v51 = vunpack.c.l.bf16 %v21_v41  ;;  %v43_v54 = vunpack.c.h.bf16 %v21_v41 }
  0x10   :  { %1032 = vmatpush3.bf16.msra.mxu0 %v1128_v14  ;;  %v28_v35 = vld [vmem:[%s1475_s0 + $0x60] sm:$0xff]  ;;  %v48_v42 = vunpack.c.l.bf16 %v24_v34  ;;  %v49_v43 = vunpack.c.h.bf16 %v24_v34  ;;  %v29_v47 = vld [vmem:[%s1475_s0 + $0x68] sm:$0xff]  ;;  %v50_v55 = vunpack.c.l.bf16 %v25_v46  ;;  %v51_v56 = vunpack.c.h.bf16 %v25_v46 }
  0x11   :  { %1054 = vmatpush3.bf16.msra.mxu1 %v1129_v15  ;;  %1033 = vmatprep.subr.bf16.mxu0 %v1130_v16  ;;  %v56_v44 = vunpack.c.l.bf16 %v28_v35  ;;  %v57_v45 = vunpack.c.h.bf16 %v28_v35  ;;  %v71_v48 = vadd.f32 %v41_v39, %v33_v37  ;;  %v58_v59 = vunpack.c.l.bf16 %v29_v47 }
  0x12   :  { %1055 = vmatprep.subr.bf16.mxu1 %v1131_v17  ;;  %v59_v60 = vunpack.c.h.bf16 %v29_v47  ;;  %v64_v61 = vadd.f32 %v40_v38, %v32_v36  ;;  %v85_v63 = vadd.f32 %v43_v54, %v35_v50  ;;  %v78_v1 = vadd.f32 %v42_v51, %v34_v49 }
  0x13   :  { %v127_v53 = vadd.f32 %v57_v45, %v49_v43  ;;  %v72_v58 = vrot.slane %v71_v48, 4  ;;  %v120_v0 = vadd.f32 %v56_v44, %v48_v42  ;;  %v134_v5 = vadd.f32 %v58_v59, %v50_v55 }
  0x14   :  { %1034 = vmatpush3.bf16.msra.mxu0 %v1132_v18  ;;  %v141_v3 = vadd.f32 %v59_v60, %v51_v56  ;;  %v65_v4 = vrot.slane %v64_v61, 4  ;;  %v86_v7 = vrot.slane %v85_v63, 4  ;;  %v79_v9 = vrot.slane %v78_v1, 4 }
  0x15   :  { %1056 = vmatpush3.bf16.msra.mxu1 %v1133_v19  ;;  %1035 = vmatprep.subr.bf16.mxu0 %v1134_v20  ;;  %v128_v62 = vrot.slane %v127_v53, 4  ;;  %v73_v2 = vadd.f32 %v72_v58, %v71_v48  ;;  %v121_v8 = vrot.slane %v120_v0, 4  ;;  %v135_v13 = vrot.slane %v134_v5, 4 }
  0x16   :  { %1057 = vmatprep.subr.bf16.mxu1 %v1135_v21  ;;  %v142_v11 = vrot.slane %v141_v3, 4  ;;  %v66_v12 = vadd.f32 %v65_v4, %v64_v61  ;;  %v87_v15 = vadd.f32 %v86_v7, %v85_v63  ;;  %v80_v17 = vadd.f32 %v79_v9, %v78_v1 }
  0x17   :  { %v129_v6 = vadd.f32 %v128_v62, %v127_v53  ;;  %v74_v10 = vrot.slane %v73_v2, 2  ;;  %v122_v16 = vadd.f32 %v121_v8, %v120_v0  ;;  %v136_v21 = vadd.f32 %v135_v13, %v134_v5 }
  0x18   :  { %1036 = vmatpush3.bf16.msra.mxu0 %v1136_v22  ;;  %v143_v19 = vadd.f32 %v142_v11, %v141_v3  ;;  %v67_v20 = vrot.slane %v66_v12, 2 }
  0x19   :  { %1058 = vmatpush3.bf16.msra.mxu1 %v1137_v23  ;;  %1037 = vmatprep.subr.bf16.mxu0 %v1138_v24  ;;  %v130_v14 = vrot.slane %v129_v6, 2  ;;  %v75_v18 = vadd.f32 %v74_v10, %v73_v2  ;;  %v88_v23 = vrot.slane %v87_v15, 2  ;;  %v123_v24 = vrot.slane %v122_v16, 2 }
  0x1a   :  { %1059 = vmatprep.subr.bf16.mxu1 %v1139_v25  ;;  %v81_v25 = vrot.slane %v80_v17, 2 }
  0x1b   :  { %v131_v22 = vadd.f32 %v130_v14, %v129_v6  ;;  %v124_v32 = vadd.f32 %v123_v24, %v122_v16  ;;  %v1149_v14 = vld [vmem:[%s1476_s1 + $0x1b8] sm:$0xff]   ;;  %v1154_v24 = vld [vmem:[%s1476_s1 + $0x168] sm:$0xff]  }
  0x1c   :  { %1038 = vmatpush3.bf16.msra.mxu0 %v1140_v26  ;;  %v76_v26 = vrot.slane %v75_v18, 1  ;;  %v82_v33 = vadd.f32 %v81_v25, %v80_v17  ;;  %v1155_v25 = vld [vmem:[%s1476_s1 + $0x1e8] sm:$0xff]  }
  0x1d   :  { %1060 = vmatpush3.bf16.msra.mxu1 %v1141_v27  ;;  %1039 = vmatprep.subr.bf16.mxu0 %v1142_v28  ;;  %v144_v27 = vrot.slane %v143_v19, 2  ;;  %v68_v28 = vadd.f32 %v67_v20, %v66_v12  ;;  %v125_v40 = vrot.slane %v124_v32, 1  ;;  %v1148_v12 = vld [vmem:[%s1476_s1 + $0x138] sm:$0xff]  }
  0x1e   :  { %1061 = vmatprep.subr.bf16.mxu1 %v1143_v29  ;;  %v137_v29 = vrot.slane %v136_v21, 2  ;;  %v77_v34 = vadd.f32 %v76_v26, %v75_v18  ;;  %v83_v41 = vrot.slane %v82_v33, 1  ;;  %v1150_v18 = vld [vmem:[%s1476_s1 + $0x170] sm:$0xff]   ;;  %v1156_v26 = vld [vmem:[%s1476_s1 + $0x128] sm:$0xff]  }
  0x1f   :  { %v145_v35 = vadd.f32 %v144_v27, %v143_v19  ;;  %v69_v36 = vrot.slane %v68_v28, 1  ;;  %v126_v48 = vadd.f32 %v125_v40, %v124_v32  ;;  %v1157_v27 = vld [vmem:[%s1476_s1 + $0x1a8] sm:$0xff]   ;;  %v18_v32 = vld [vmem:[%s1475_s0 + $0x10] sm:$0xff]  ;;  %v19_v40 = vld [vmem:[%s1475_s0 + $0x18] sm:$0xff] }
  0x20   :  { %1040 = vmatpush3.bf16.msra.mxu0 %v1144_v30  ;;  %v132_v30 = vrot.slane %v131_v22, 1  ;;  %v138_v37 = vadd.f32 %v137_v29, %v136_v21  ;;  %v178_v42 = vmul.f32 0.0625, %v77_v34  ;;  %v84_v49 = vadd.f32 %v83_v41, %v82_v33  ;;  %v1151_v21 = vld [vmem:[%s1476_s1 + $0x1f0] sm:$0xff]   ;;  %v1159_v29 = vld [vmem:[%s1476_s1 + $0x1e0] sm:$0xff]  }
  0x21   :  { %1062 = vmatpush3.bf16.msra.mxu1 %v1145_v31  ;;  %1069 = vmatprep.subr.bf16.mxu0 %v1146_v52  ;;  %v89_v31 = vadd.f32 %v88_v23, %v87_v15  ;;  %v146_v43 = vrot.slane %v145_v35, 1  ;;  %v70_v44 = vadd.f32 %v69_v36, %v68_v28  ;;  %v185_v56 = vmul.f32 0.0625, %v126_v48  ;;  %v1153_v23 = vld [vmem:[%s1476_s1 + $0x1b0] sm:$0xff]   ;;  %v1158_v28 = vld [vmem:[%s1476_s1 + $0x160] sm:$0xff]  }
  0x22   :  { %1091 = vmatprep.subr.bf16.mxu1 %v1147_v57  ;;  %v133_v38 = vadd.f32 %v132_v30, %v131_v22  ;;  %v139_v45 = vrot.slane %v138_v37, 1  ;;  %v194_v50 = vpack.c.bf16 %v178_v42, %v178_v42  ;;  %v179_v57 = vmul.f32 0.0625, %v84_v49  ;;  %v1152_v22 = vld [vmem:[%s1476_s1 + $0x130] sm:$0xff]   ;;  %v1160_v30 = vld [vmem:[%s1476_s1 + $0x120] sm:$0xff]  }
  0x23   :  { %v90_v39 = vrot.slane %v89_v31, 1  ;;  %v147_v51 = vadd.f32 %v146_v43, %v145_v35  ;;  %v177_v52 = vmul.f32 0.0625, %v70_v44  ;;  %v201_v0 = vpack.c.bf16 %v185_v56, %v185_v56  ;;  %v22_v33 = vld [vmem:[%s1475_s0 + $0x30] sm:$0xff]  ;;  %v1161_v48 = vld [vmem:[%s1476_s1 + $0x1a0] sm:$0xff]  }
  0x24   :  { %v186_v46 = vmul.f32 0.0625, %v133_v38  ;;  %v140_v53 = vadd.f32 %v139_v45, %v138_v37  ;;  %v361_v58 = vunpack.c.l.b16 %v194_v50  ;;  %v195_v1 = vpack.c.bf16 %v179_v57, %v179_v57  ;;  %v26_v34 = vld [vmem:[%s1475_s0 + $0x50] sm:$0xff]  ;;  %v23_v45 = vld [vmem:[%s1475_s0 + $0x38] sm:$0xff] }
  0x25   :  { %v91_v47 = vadd.f32 %v90_v39, %v89_v31  ;;  %v188_v59 = vmul.f32 0.0625, %v147_v51  ;;  %v193_v60 = vpack.c.bf16 %v177_v52, %v177_v52  ;;  %v368_v7 = vunpack.c.l.b16 %v201_v0  ;;  %v1162_v31 = vld [vmem:[%s1476_s1 + $0x158] sm:$0xff]   ;;  %v30_v35 = vld [vmem:[%s1475_s0 + $0x70] sm:$0xff] }
  0x26   :  { %v202_v54 = vpack.c.bf16 %v186_v46, %v186_v46  ;;  %v187_v61 = vmul.f32 0.0625, %v140_v53  ;;  %v362_v8 = vunpack.c.l.b16 %v195_v1  ;;  %v36_v36 = vunpack.c.l.bf16 %v18_v32  ;;  %v27_v46 = vld [vmem:[%s1475_s0 + $0x58] sm:$0xff] }
  0x27   :  { %v180_v55 = vmul.f32 0.0625, %v91_v47  ;;  %v204_v2 = vpack.c.bf16 %v188_v59, %v188_v59  ;;  %v360_v3 = vunpack.c.l.b16 %v193_v60  ;;  %v37_v37 = vunpack.c.h.bf16 %v18_v32  ;;  %v31_v47 = vld [vmem:[%s1475_s0 + $0x78] sm:$0xff] }
  0x28   :  { %v369_v62 = vunpack.c.l.b16 %v202_v54  ;;  %v203_v4 = vpack.c.bf16 %v187_v61, %v187_v61  ;;  %v44_v38 = vunpack.c.l.bf16 %v22_v33  ;;  %v45_v39 = vunpack.c.h.bf16 %v22_v33 }
  0x29   :  { %v196_v63 = vpack.c.bf16 %v180_v55, %v180_v55  ;;  %v371_v10 = vunpack.c.l.b16 %v204_v2  ;;  %v377_v13 = vsel %vm376_vm0, %v368_v7, %v360_v3  ;;  %v52_v41 = vunpack.c.l.bf16 %v26_v34 }
  0x2a   :  { %v378_v5 = vsel %vm376_vm0, %v369_v62, %v361_v58  ;;  %v370_v11 = vunpack.c.l.b16 %v203_v4  ;;  %v385_v16 = vpack.c.b16 %v377_v13, %v377_v13  ;;  %v53_v42 = vunpack.c.h.bf16 %v26_v34 }
  0x2b   :  { %v363_v6 = vunpack.c.l.b16 %v196_v63  ;;  %v386_v9 = vpack.c.b16 %v378_v5, %v378_v5  ;;  %v60_v43 = vunpack.c.l.bf16 %v30_v35  ;;  %v61_v44 = vunpack.c.h.bf16 %v30_v35 }
  0x2c   :  { %v379_v17 = vsel %vm376_vm0, %v370_v11, %v362_v8  ;;  %v99_v49 = vadd.f32 %v45_v39, %v37_v37  ;;  %v38_v50 = vunpack.c.l.bf16 %v19_v40  ;;  %v39_v51 = vunpack.c.h.bf16 %v19_v40 }
  0x2d   :  { %817 = vmatprep.mubr.bf16.mxu0 %v386_v9  ;;  %v380_v15 = vsel %vm376_vm0, %v371_v10, %v363_v6  ;;  %v387_v20 = vpack.c.b16 %v379_v17, %v379_v17  ;;  %v46_v52 = vunpack.c.l.bf16 %v23_v45 }
  0x2e   :  { %v388_v19 = vpack.c.b16 %v380_v15, %v380_v15  ;;  %818 = vmatmul.mubr.bf16.vlgmr.msra.gmra.mxu0 %v385_v16 }
  0x2f   :  { %1070 = vmatpush3.bf16.msra.mxu0 %v1148_v12 }
  0x30   :  { %857 = vmatprep.mubr.bf16.mxu1 %v388_v19  ;;  %1071 = vmatprep.subr.bf16.mxu0 %v1150_v18 }
  0x31   :  { %858 = vmatmul.mubr.bf16.vlgmr.msra.gmra.mxu1 %v387_v20 }
  0x32   :  { %1092 = vmatpush3.bf16.msra.mxu1 %v1149_v14 }
  0x33   :  { %1093 = vmatprep.subr.bf16.mxu1 %v1151_v21  ;;  %1072 = vmatpush3.bf16.msra.mxu0 %v1152_v22 }
  0x34   :  { %1073 = vmatprep.subr.bf16.mxu0 %v1154_v24 }
  0x36   :  { %1094 = vmatpush3.bf16.msra.mxu1 %v1153_v23 }
  0x37   :  { %1095 = vmatprep.subr.bf16.mxu1 %v1155_v25  ;;  %1074 = vmatpush3.bf16.msra.mxu0 %v1156_v26 }
  0x38   :  { %1075 = vmatprep.subr.bf16.mxu0 %v1158_v28 }
  0x3a   :  { %1096 = vmatpush3.bf16.msra.mxu1 %v1157_v27 }
  0x3b   :  { %8 = vsyncpa [#allocation3], 0  ;;  %1097 = vmatprep.subr.bf16.mxu1 %v1159_v29  ;;  %v1163_v53 = vld [vmem:[%s1476_s1 + $0x1d8] sm:$0xff]   ;;  %v155_v54 = vadd.f32 %v61_v44, %v53_v42  ;;  %v47_v55 = vunpack.c.h.bf16 %v23_v45  ;;  %v54_v56 = vunpack.c.l.bf16 %v27_v46  ;;  %v55_v57 = vunpack.c.h.bf16 %v27_v46  ;;  %1076 = vmatpush3.bf16.msra.mxu0 %v1160_v30  ;;  %v1166_v63 = vld [vmem:[%s1476_s1 + $0x150] sm:$0xff]   ;;  %s1200_s9 = smov [#allocation2]  }
  0x3c   :  { %v1164_v58 = vld [vmem:[%s1476_s1 + $0x118] sm:$0xff]   ;;  %v100_v59 = vrot.slane %v99_v49, 4  ;;  %v62_v60 = vunpack.c.l.bf16 %v31_v47  ;;  %v63_v61 = vunpack.c.h.bf16 %v31_v47  ;;  %v92_v62 = vadd.f32 %v44_v38, %v36_v36  ;;  %1077 = vmatprep.subr.bf16.mxu0 %v1162_v31  ;;  %v1167_v9 = vld [vmem:[%s1476_s1 + $0x1d0] sm:$0xff]   ;;  %v1170_v19 = vld [vmem:[%s1476_s1 + $0x148] sm:$0xff]   ;;  %s952_s10 = sshll.u32 %s1200_s9, 4  ;;  %s953_s10 = int_to_ptr.vmem [resolvable:$true] %s952_s10 }
  0x3d   :  { %v156_v0 = vrot.slane %v155_v54, 4  ;;  %v113_v1 = vadd.f32 %v47_v55, %v39_v51  ;;  %v148_v2 = vadd.f32 %v60_v43, %v52_v41  ;;  %v106_v3 = vadd.f32 %v46_v52, %v38_v50  ;;  %v1165_v4 = vld [vmem:[%s1476_s1 + $0x198] sm:$0xff]   ;;  %v1168_v14 = vld [vmem:[%s1476_s1 + $0x110] sm:$0xff]   ;;  %v1171_v29 = vld [vmem:[%s1476_s1 + $0x1c8] sm:$0xff]   ;;  %p1183_p1 = scmp.lt.s32.totalorder %s953_s10, %s953_s10 }
  0x3e   :  { %1098 = vmatpush3.bf16.msra.mxu1 %v1161_v48  ;;  %v101_v5 = vadd.f32 %v100_v59, %v99_v49  ;;  %v169_v6 = vadd.f32 %v63_v61, %v55_v57  ;;  %v93_v7 = vrot.slane %v92_v62, 4  ;;  %v162_v8 = vadd.f32 %v62_v60, %v54_v56  ;;  %v1169_v24 = vld [vmem:[%s1476_s1 + $0x190] sm:$0xff]   ;;  %v1172_v34 = vld [vmem:[%s1476_s1 + $0x108] sm:$0xff]   ;;  %v1174_v39 = vld [vmem:[%s1476_s1 + $0x140] sm:$0xff]  }
  0x3f   :  { %1099 = vmatprep.subr.bf16.mxu1 %v1163_v53  ;;  %v157_v10 = vadd.f32 %v156_v0, %v155_v54  ;;  %v114_v11 = vrot.slane %v113_v1, 4  ;;  %v149_v12 = vrot.slane %v148_v2, 4  ;;  %v107_v13 = vrot.slane %v106_v3, 4  ;;  %1078 = vmatpush3.bf16.msra.mxu0 %v1164_v58  ;;  %v1173_v44 = vld [vmem:[%s1476_s1 + $0x188] sm:$0xff]   ;;  %v1175_v49 = vld [vmem:[%s1476_s1 + $0x1c0] sm:$0xff]  }
  0x40   :  { %v102_v15 = vrot.slane %v101_v5, 2  ;;  %v170_v16 = vrot.slane %v169_v6, 4  ;;  %v94_v17 = vadd.f32 %v93_v7, %v92_v62  ;;  %v163_v18 = vrot.slane %v162_v8, 4  ;;  %1079 = vmatprep.subr.bf16.mxu0 %v1166_v63  ;;  %v1176_v54 = vld [vmem:[%s1476_s1 + $0x100] sm:$0xff]  }
  0x41   :  { %v158_v20 = vrot.slane %v157_v10, 2  ;;  %v115_v21 = vadd.f32 %v114_v11, %v113_v1  ;;  %v150_v22 = vadd.f32 %v149_v12, %v148_v2  ;;  %v108_v23 = vadd.f32 %v107_v13, %v106_v3  ;;  %v1177_v63 = vld [vmem:[%s1476_s1 + $0x180] sm:$0xff]  }
  0x42   :  { %1100 = vmatpush3.bf16.msra.mxu1 %v1165_v4  ;;  %v103_v25 = vadd.f32 %v102_v15, %v101_v5  ;;  %v171_v26 = vadd.f32 %v170_v16, %v169_v6  ;;  %v95_v27 = vrot.slane %v94_v17, 2  ;;  %v164_v28 = vadd.f32 %v163_v18, %v162_v8 }
  0x43   :  { %1101 = vmatprep.subr.bf16.mxu1 %v1167_v9  ;;  %v159_v30 = vadd.f32 %v158_v20, %v157_v10  ;;  %v116_v31 = vrot.slane %v115_v21, 2  ;;  %v151_v32 = vrot.slane %v150_v22, 2  ;;  %v109_v33 = vrot.slane %v108_v23, 2  ;;  %1080 = vmatpush3.bf16.msra.mxu0 %v1168_v14 }
  0x44   :  { %v104_v35 = vrot.slane %v103_v25, 1  ;;  %v172_v36 = vrot.slane %v171_v26, 2  ;;  %v96_v37 = vadd.f32 %v95_v27, %v94_v17  ;;  %v165_v38 = vrot.slane %v164_v28, 2  ;;  %1081 = vmatprep.subr.bf16.mxu0 %v1170_v19 }
  0x45   :  { %v160_v40 = vrot.slane %v159_v30, 1  ;;  %v117_v41 = vadd.f32 %v116_v31, %v115_v21  ;;  %v152_v42 = vadd.f32 %v151_v32, %v150_v22  ;;  %v110_v43 = vadd.f32 %v109_v33, %v108_v23 }
  0x46   :  { %1102 = vmatpush3.bf16.msra.mxu1 %v1169_v24  ;;  %v105_v45 = vadd.f32 %v104_v35, %v103_v25  ;;  %v173_v46 = vadd.f32 %v172_v36, %v171_v26  ;;  %v97_v47 = vrot.slane %v96_v37, 1  ;;  %v166_v48 = vadd.f32 %v165_v38, %v164_v28 }
  0x47   :  { %1103 = vmatprep.subr.bf16.mxu1 %v1171_v29  ;;  %v161_v50 = vadd.f32 %v160_v40, %v159_v30  ;;  %v118_v51 = vrot.slane %v117_v41, 1  ;;  %v153_v52 = vrot.slane %v152_v42, 1  ;;  %v111_v53 = vrot.slane %v110_v43, 1  ;;  %1082 = vmatpush3.bf16.msra.mxu0 %v1172_v34 }
  0x48   :  { %v182_v55 = vmul.f32 0.0625, %v105_v45  ;;  %v174_v56 = vrot.slane %v173_v46, 1  ;;  %v98_v57 = vadd.f32 %v97_v47, %v96_v37  ;;  %v167_v58 = vrot.slane %v166_v48, 1  ;;  %1083 = vmatprep.subr.bf16.mxu0 %v1174_v39 }
  0x49   :  { %v190_v59 = vmul.f32 0.0625, %v161_v50  ;;  %v119_v60 = vadd.f32 %v118_v51, %v117_v41  ;;  %v154_v61 = vadd.f32 %v153_v52, %v152_v42  ;;  %v112_v62 = vadd.f32 %v111_v53, %v110_v43  ;;  %v960_v41 = vld [vmem:[%s1477_s2] ss:$0 sm:$0xff]  ;;  %s1178_s2 = scalar_lea.vmem %s953_s10, 32 }
  0x4a   :  { %1104 = vmatpush3.bf16.msra.mxu1 %v1173_v44  ;;  %v198_v0 = vpack.c.bf16 %v182_v55, %v182_v55  ;;  %v175_v1 = vadd.f32 %v174_v56, %v173_v46  ;;  %v181_v2 = vmul.f32 0.0625, %v98_v57  ;;  %v168_v3 = vadd.f32 %v167_v58, %v166_v48  ;;  %p1179_p0 = scmp.ne.s32.totalorder %s953_s10, %s1178_s2  ;;  %p1184_p2 = scmp.lt.s32.totalorder %s1178_s2, %s1178_s2 }
  0x4b   :  { %1105 = vmatprep.subr.bf16.mxu1 %v1175_v49  ;;  %v206_v4 = vpack.c.bf16 %v190_v59, %v190_v59  ;;  %v184_v5 = vmul.f32 0.0625, %v119_v60  ;;  %v189_v6 = vmul.f32 0.0625, %v154_v61  ;;  %v183_v7 = vmul.f32 0.0625, %v112_v62  ;;  %1084 = vmatpush3.bf16.msra.mxu0 %v1176_v54 }
  0x4c   :  { %v365_v8 = vunpack.c.l.b16 %v198_v0  ;;  %v192_v9 = vmul.f32 0.0625, %v175_v1  ;;  %v197_v10 = vpack.c.bf16 %v181_v2, %v181_v2  ;;  %v191_v11 = vmul.f32 0.0625, %v168_v3  ;;  %p1185_p3 = por %p1184_p2, %p1183_p1 }
  0x4d   :  { %v373_v12 = vunpack.c.l.b16 %v206_v4  ;;  %v200_v13 = vpack.c.bf16 %v184_v5, %v184_v5  ;;  %v205_v14 = vpack.c.bf16 %v189_v6, %v189_v6  ;;  %v199_v15 = vpack.c.bf16 %v183_v7, %v183_v7 }
  0x4e   :  { %1106 = vmatpush3.bf16.msra.mxu1 %v1177_v63  ;;  %v208_v16 = vpack.c.bf16 %v192_v9, %v192_v9  ;;  %v364_v17 = vunpack.c.l.b16 %v197_v10  ;;  %v207_v18 = vpack.c.bf16 %v191_v11, %v191_v11  ;;  %p1186_p4 = pnand %p1185_p3, %p1179_p0 }
  0x4f   :  { %v382_v19 = vsel %vm376_vm0, %v373_v12, %v365_v8  ;;  %v367_v20 = vunpack.c.l.b16 %v200_v13  ;;  %v372_v21 = vunpack.c.l.b16 %v205_v14  ;;  %v366_v22 = vunpack.c.l.b16 %v199_v15 }
  0x50   :  { %v390_v23 = vpack.c.b16 %v382_v19, %v382_v19  ;;  %v375_v24 = vunpack.c.l.b16 %v208_v16  ;;  %v374_v25 = vunpack.c.l.b16 %v207_v18 }
  0x51   :  { %v381_v26 = vsel %vm376_vm0, %v372_v21, %v364_v17 }
  0x52   :  { %897 = vmatprep.mubr.bf16.mxu0 %v390_v23  ;;  %v384_v27 = vsel %vm376_vm0, %v375_v24, %v367_v20  ;;  %v389_v28 = vpack.c.b16 %v381_v26, %v381_v26  ;;  %v383_v29 = vsel %vm376_vm0, %v374_v25, %v366_v22 }
  0x53   :  { %v392_v30 = vpack.c.b16 %v384_v27, %v384_v27  ;;  %v391_v31 = vpack.c.b16 %v383_v29, %v383_v29 }
  0x54   :  { %898 = vmatmul.mubr.bf16.vlgmr.msra.gmra.mxu0 %v389_v28 }
  0x55   :  { %937 = vmatprep.mubr.bf16.mxu1 %v392_v30 }
  0x56   :  { %938 = vmatmul.mubr.bf16.vlgmr.msra.gmra.mxu1 %v391_v31 }
  0xee   :  { %v1041_v32 = vpop.f32.mrf.mxu0 }
  0xf0   :  { %v1042_v34 = vpop.f32.mrf.mxu0 }
  0xf1   :  { %v1063_v33 = vpop.f32.mrf.mxu1  ;;  %v1043_v40 = vadd.f32 %v1042_v34, %v1041_v32 }
  0xf2   :  { %v1044_v36 = vpop.f32.mrf.mxu0 }
  0xf3   :  { %v1064_v35 = vpop.f32.mrf.mxu1  ;;  %v820_v42 = vadd.f32 %v1043_v40, %v960_v41 }
  0xf4   :  { %v1045_v38 = vpop.f32.mrf.mxu0  ;;  %v1065_v43 = vadd.f32 %v1064_v35, %v1063_v33 }
  0xf5   :  { %v1066_v37 = vpop.f32.mrf.mxu1 }
  0xf6   :  { %v860_v47 = vadd.f32 %v1065_v43, %v820_v42 }
  0xf7   :  { %v1067_v39 = vpop.f32.mrf.mxu1 }
 0x114   :  { %v1085_v44 = vpop.f32.mrf.mxu0 }
 0x116   :  { %v1107_v45 = vpop.f32.mrf.mxu1  ;;  %v1086_v46 = vpop.f32.mrf.mxu0 }
 0x117   :  { %v1087_v48 = vadd.f32 %v1086_v46, %v1085_v44 }
 0x118   :  { %v1108_v49 = vpop.f32.mrf.mxu1  ;;  %v1088_v50 = vpop.f32.mrf.mxu0 }
 0x119   :  { %v900_v51 = vadd.f32 %v1087_v48, %v860_v47  ;;  %v1109_v52 = vadd.f32 %v1108_v49, %v1107_v45 }
 0x11a   :  { %v1110_v53 = vpop.f32.mrf.mxu1  ;;  %v1089_v54 = vpop.f32.mrf.mxu0 }
 0x11b   :  { %v940_v55 = vadd.f32 %v1109_v52, %v900_v51 }
 0x11c   :  { %v1111_v56 = vpop.f32.mrf.mxu1 }
 0x11d   :  { %945 = vst [vmem:[#allocation2] sm:$0x3] %v940_v55 }
 0x11e   :  { %1189 = shalt.err (!%p1186_p4)
}
 0x11f   :  { %955 = dma.vmem_to_hbm [thread:$0]  %s953_s10, 32, %s1478_s3, [#allocation3]  }
 0x120   :  { %1198 = dma.done.wait [#allocation3], 32  }
 0x121   :  { %1199 = vsyncadd [#allocation3], 4294967264 }
 0x122   :  { %959 = vsyncpa [#allocation3], 1 }

</bundles_post_ra>
